<compile_context>
chip_gen: v6e
topology: v6e:2x2x1
jax: 0.10.0
libtpu: 0.0.40
codegen_flags: <defaults>
</compile_context>

<pallas_src>
import math

import jax
import jax.numpy as jnp
from jax.experimental import pallas as pl
from jax.experimental.pallas import tpu as pltpu


def _round_up(x, m):
    return -(-x // m) * m


def _auto_flags():
    """Pick the kernel variant for the current TPU generation.

    Returns (split_first_matmul, bf16_sigmoid):
      v6e / v7x  -> merged K=256 first matmul + bf16 sigmoid (EUP bf16 path)
      v5e/older  -> split K=128 matmuls + f32 sigmoid (no bf16 VPU/EUP)
    """
    try:
        kind = jax.devices()[0].device_kind.lower()
    except Exception:
        kind = ""
    legacy = any(tag in kind for tag in ("v2", "v3", "v4", "v5"))
    return legacy, (not legacy)


def _make_kernel(split_first_matmul: bool, bf16_sigmoid: bool):
    def timestep_embedder_kernel(t_ref, freqs_ref, w1_ref, b1_ref, w2_ref, b2_ref, o_ref):
        half = freqs_ref.shape[1]
        t = t_ref[...]                       # (tile_n, 1) f32
        freqs = freqs_ref[...]               # (1, half)  f32
        # args reach ~1000 rad -> must stay f32 (bf16 arg error ~ radians).
        args = t * freqs                     # (tile_n, half) f32
        cos_e = jnp.cos(args).astype(jnp.bfloat16)
        sin_e = jnp.sin(args).astype(jnp.bfloat16)

        if split_first_matmul:
            # v5e: 128x128 MXU -> K=128 already fills the array depth.
            h = (
                jnp.dot(cos_e, w1_ref[0:half, :], preferred_element_type=jnp.float32)
                + jnp.dot(sin_e, w1_ref[half:2 * half, :], preferred_element_type=jnp.float32)
            )
        else:
            # v6e/v7x: 256-deep MXU -> one K=256 pass; cos|sin are two adjacent
            # 128-lane tiles, so this concat is layout-only (no XLU shuffle).
            emb = jnp.concatenate([cos_e, sin_e], axis=-1)   # (tile_n, 2*half) bf16
            h = jnp.dot(emb, w1_ref[...], preferred_element_type=jnp.float32)
        h = h + b1_ref[...]

        if bf16_sigmoid:
            # Sigmoid is bounded/smooth -> bf16-safe; EUP bf16 path ~2x f32 rate.
            gate = jax.nn.sigmoid(h.astype(jnp.bfloat16)).astype(jnp.float32)
        else:
            gate = jax.nn.sigmoid(h)
        h = h * gate                          # SiLU with f32 accumulator

        out = (
            jnp.dot(h.astype(jnp.bfloat16), w2_ref[...], preferred_element_type=jnp.float32)
            + b2_ref[...]
        )
        o_ref[...] = out.astype(o_ref.dtype)

    return timestep_embedder_kernel


def prepare_params(freqs, w1, b1, w2, b2):
    """One-time dtype prep; hoists per-call casts off the hot path.

    w1 / w2 are the *transposed* PyTorch Linear weights, i.e. (in, out).
    """
    return (
        freqs.astype(jnp.float32),
        w1.astype(jnp.bfloat16),
        b1.reshape(1, -1).astype(jnp.float32),
        w2.astype(jnp.bfloat16),
        b2.reshape(1, -1).astype(jnp.float32),
    )


def timestep_embedder(
    t, freqs, w1, b1, w2, b2, *,
    tile_n=512,
    out_dtype=jnp.float32,
    split_first_matmul=None,
    bf16_sigmoid=None,
):
    """t: (N,) f32 timesteps. Returns (N, H) embedding (PyTorch TimestepEmbedder.forward)."""
    auto_split, auto_bf16 = _auto_flags()
    if split_first_matmul is None:
        split_first_matmul = auto_split
    if bf16_sigmoid is None:
        bf16_sigmoid = auto_bf16

    n = t.shape[0]
    half = freqs.shape[1]
    hidden = w2.shape[1]
    # TODO(synk): odd frequency_embedding_size (PyTorch's zero-pad branch) is
    # not handled; F is assumed even (module default F=256).
    assert w1.shape[0] == 2 * half

    # ---- batch tiling ------------------------------------------------------
    n8 = _round_up(max(n, 1), 8)                     # sublane-aligned row count
    tile = max(8, min(_round_up(tile_n, 8), n8))
    # Keep >=2 grid steps once the batch is big enough (v7x has 2 TensorCores).
    if n8 >= 512 and tile > _round_up(-(-n8 // 2), 8):
        tile = _round_up(-(-n8 // 2), 8)
    grid_n = -(-n8 // tile)
    n_in = grid_n * tile                             # padded row count for t only

    t2d = t.astype(jnp.float32).reshape(n, 1)
    if n_in != n:
        t2d = jnp.pad(t2d, ((0, n_in - n), (0, 0)))  # tiny (N,1) pad; cheap

    # Output emitted at (or within 7 rows of) its natural size: no big slice
    # copy.  A ragged last block's store is masked by Pallas.
    out_rows = n if n == n8 else n8

    # No-op if params were already prepared via prepare_params().
    freqs_f = freqs if freqs.dtype == jnp.float32 else freqs.astype(jnp.float32)
    w1_b = w1 if w1.dtype == jnp.bfloat16 else w1.astype(jnp.bfloat16)
    w2_b = w2 if w2.dtype == jnp.bfloat16 else w2.astype(jnp.bfloat16)
    b1_f = b1.reshape(1, hidden)
    b1_f = b1_f if b1_f.dtype == jnp.float32 else b1_f.astype(jnp.float32)
    b2_f = b2.reshape(1, hidden)
    b2_f = b2_f if b2_f.dtype == jnp.float32 else b2_f.astype(jnp.float32)

    out_isize = jnp.dtype(out_dtype).itemsize
    cost = pl.CostEstimate(
        flops=int(2 * grid_n * tile * hidden * (2 * half + hidden)),
        transcendentals=int(grid_n * tile * (2 * half + hidden)),   # cos+sin+sigmoid
        bytes_accessed=int(
            n_in * 4
            + out_rows * hidden * out_isize
            + (w1_b.size + w2_b.size) * 2
            + (freqs_f.size + b1_f.size + b2_f.size) * 4
        ),
    )

    cparams = dict(dimension_semantics=("parallel",))   # megacore-shard batch
    # Rough per-step VMEM: double-buffered t/out tiles + weights + f32 intermediates.
    vmem_need = (
        2 * tile * (4 + hidden * out_isize)
        + 2 * (w1_b.size + w2_b.size) * 2
        + 2 * (freqs_f.size + b1_f.size + b2_f.size) * 4
        + tile * (half * 4 + 2 * half * 2 + 3 * hidden * 4)
    )
    if vmem_need > 12 * 1024 * 1024:   # only when sweeping very large tiles (v5e: 16 MiB default)
        cparams["vmem_limit_bytes"] = int(min(2 * vmem_need, 64 * 1024 * 1024))

    out = pl.pallas_call(
        _make_kernel(split_first_matmul, bf16_sigmoid),
        out_shape=jax.ShapeDtypeStruct((out_rows, hidden), out_dtype),
        grid_spec=pltpu.PrefetchScalarGridSpec(
            num_scalar_prefetch=0,
            grid=(grid_n,),
            in_specs=[
                # Per-batch-tile operand.
                pl.BlockSpec((tile, 1), lambda i: (i, 0)),            # t
                # Resident operands (same block every grid step -> stay in VMEM).
                pl.BlockSpec((1, half), lambda i: (0, 0)),            # freqs
                pl.BlockSpec((2 * half, hidden), lambda i: (0, 0)),   # w1^T
                pl.BlockSpec((1, hidden), lambda i: (0, 0)),          # b1
                pl.BlockSpec((hidden, hidden), lambda i: (0, 0)),     # w2^T
                pl.BlockSpec((1, hidden), lambda i: (0, 0)),          # b2
            ],
            out_specs=pl.BlockSpec((tile, hidden), lambda i: (i, 0)),
        ),
        compiler_params=pltpu.CompilerParams(**cparams),
        cost_estimate=cost,
    )(t2d, freqs_f, w1_b, b1_f, w2_b, b2_f)
    return out if out_rows == n else out[:n]


# ----------------------------- references ----------------------------------
def make_params(key, freq_emb_size, hidden_size):
    half = freq_emb_size // 2
    freqs = jnp.exp(
        -math.log(10000.0) * jnp.arange(half, dtype=jnp.float32) / half
    ).reshape(1, half)
    k1, k2, k3, k4 = jax.random.split(key, 4)
    w1 = jax.random.normal(k1, (freq_emb_size, hidden_size), jnp.float32) / math.sqrt(
        freq_emb_size
    )
    b1 = jax.random.normal(k2, (1, hidden_size), jnp.float32) * 0.01
    w2 = jax.random.normal(k3, (hidden_size, hidden_size), jnp.float32) / math.sqrt(
        hidden_size
    )
    b2 = jax.random.normal(k4, (1, hidden_size), jnp.float32) * 0.01
    return freqs, w1, b1, w2, b2


def reference_f32(t, freqs, w1, b1, w2, b2):
    """Pure-f32 reference matching the PyTorch module's math."""
    args = t.astype(jnp.float32)[:, None] * freqs
    emb = jnp.concatenate([jnp.cos(args), jnp.sin(args)], axis=-1)
    h = emb @ w1 + b1
    h = h * jax.nn.sigmoid(h)
    return h @ w2 + b2


def reference_mixed(t, freqs, w1, b1, w2, b2, *, bf16_sigmoid):
    """Reference mirroring the kernel's bf16-operand / f32-accumulate scheme."""
    half = freqs.shape[1]
    args = t.astype(jnp.float32)[:, None] * freqs
    cos_e = jnp.cos(args).astype(jnp.bfloat16)
    sin_e = jnp.sin(args).astype(jnp.bfloat16)
    h = (
        jnp.dot(cos_e, w1[:half].astype(jnp.bfloat16), preferred_element_type=jnp.float32)
        + jnp.dot(sin_e, w1[half:].astype(jnp.bfloat16), preferred_element_type=jnp.float32)
        + b1
    )
    if bf16_sigmoid:
        gate = jax.nn.sigmoid(h.astype(jnp.bfloat16)).astype(jnp.float32)
    else:
        gate = jax.nn.sigmoid(h)
    h = h * gate
    return (
        jnp.dot(h.astype(jnp.bfloat16), w2.astype(jnp.bfloat16),
                preferred_element_type=jnp.float32)
        + b2
    )


if __name__ == "__main__":
    key = jax.random.PRNGKey(0)
    kp, kt = jax.random.split(key)

    hidden_size = 128        # lane-dense output / second-matmul N
    freq_emb_size = 256      # module default
    batch = 200              # small; exercises 1-step and ragged 2-step paths

    freqs, w1, b1, w2, b2 = make_params(kp, freq_emb_size, hidden_size)
    t = jax.random.uniform(kt, (batch,), jnp.float32, minval=0.0, maxval=1000.0)

    # One-time dtype prep (bf16 weights etc.) -- off the per-call hot path.
    freqs_p, w1_p, b1_p, w2_p, b2_p = prepare_params(freqs, w1, b1, w2, b2)

    split_auto, bf16_sig_auto = _auto_flags()

    # 1) Default config: auto generation flags, auto tile (single grid step here).
    out = timestep_embedder(t, freqs_p, w1_p, b1_p, w2_p, b2_p)
    out = jax.block_until_ready(out)
    assert out.shape == (batch, hidden_size) and out.dtype == jnp.float32

    ref_mixed = reference_mixed(t, freqs, w1, b1, w2, b2, bf16_sigmoid=bf16_sig_auto)
    # Looser tol when the bf16-sigmoid EUP path is active (EUP vs XLA rounding).
    tol = 2e-2 if bf16_sig_auto else 5e-3
    assert jnp.allclose(out, ref_mixed, atol=tol, rtol=tol), "mismatch vs mixed ref"

    ref = reference_f32(t, freqs, w1, b1, w2, b2)
    assert jnp.allclose(out, ref, atol=5e-2, rtol=5e-2), "mismatch vs f32 reference"

    # 2) Forced legacy (v5e-style) variant with a small tile: exercises the
    #    split-K / f32-sigmoid body, the multi-step grid, and the masked ragged
    #    last output block.
    out2 = timestep_embedder(
        t, freqs_p, w1_p, b1_p, w2_p, b2_p,
        tile_n=128, split_first_matmul=True, bf16_sigmoid=False)
    out2 = jax.block_until_ready(out2)
    assert out2.shape == (batch, hidden_size)
    ref_mixed2 = reference_mixed(t, freqs, w1, b1, w2, b2, bf16_sigmoid=False)
    assert jnp.allclose(out2, ref_mixed2, atol=5e-3, rtol=5e-3), "mismatch (legacy variant)"
    assert jnp.allclose(out2, ref, atol=5e-2, rtol=5e-2), "mismatch vs f32 reference (legacy)"

    print("KERNEL_OK")
</pallas_src>

<mosaic_0001>
module attributes {stable_mosaic.version = 11 : i64} {
  func.func @timestep_embedder_kernel(%arg0: i32, %arg1: memref<200x1xf32, #tpu.memory_space<vmem>>, %arg2: memref<1x128xf32, #tpu.memory_space<vmem>>, %arg3: memref<256x128xbf16, #tpu.memory_space<vmem>>, %arg4: memref<1x128xf32, #tpu.memory_space<vmem>>, %arg5: memref<128x128xbf16, #tpu.memory_space<vmem>>, %arg6: memref<1x128xf32, #tpu.memory_space<vmem>>, %arg7: memref<200x128xf32, #tpu.memory_space<vmem>>) attributes {dimension_semantics = [#tpu.dimension_semantics<parallel>], iteration_bounds = array<i64: 1>, scalar_prefetch = 0 : i64, scratch_operands = 0 : i64, tpu.core_type = #tpu.core_type<tc>, window_params = [{transform_indices = @transform_0, window_bounds = array<i64: 200, 1>}, {pipeline_mode = #tpu.pipeline_mode<synchronous>, transform_indices = @transform_1, window_bounds = array<i64: 1, 128>}, {pipeline_mode = #tpu.pipeline_mode<synchronous>, transform_indices = @transform_2, window_bounds = array<i64: 256, 128>}, {pipeline_mode = #tpu.pipeline_mode<synchronous>, transform_indices = @transform_3, window_bounds = array<i64: 1, 128>}, {pipeline_mode = #tpu.pipeline_mode<synchronous>, transform_indices = @transform_4, window_bounds = array<i64: 128, 128>}, {pipeline_mode = #tpu.pipeline_mode<synchronous>, transform_indices = @transform_5, window_bounds = array<i64: 1, 128>}, {transform_indices = @transform_6, window_bounds = array<i64: 200, 128>}]} {
    %c0 = arith.constant 0 : index
    %c0_0 = arith.constant 0 : index
    %0 = vector.load %arg1[%c0, %c0_0] : memref<200x1xf32, #tpu.memory_space<vmem>>, vector<200x1xf32>
    %c0_1 = arith.constant 0 : index
    %c0_2 = arith.constant 0 : index
    %1 = vector.load %arg2[%c0_1, %c0_2] : memref<1x128xf32, #tpu.memory_space<vmem>>, vector<1x128xf32>
    %2 = vector.broadcast %0 : vector<200x1xf32> to vector<200x128xf32>
    %3 = vector.broadcast %1 : vector<1x128xf32> to vector<200x128xf32>
    %4 = arith.mulf %2, %3 : vector<200x128xf32>
    %5 = math.cos %4 : vector<200x128xf32>
    %6 = arith.truncf %5 : vector<200x128xf32> to vector<200x128xbf16>
    %7 = math.sin %4 : vector<200x128xf32>
    %8 = arith.truncf %7 : vector<200x128xf32> to vector<200x128xbf16>
    %9 = tpu.concatenate %6, %8 in 1 : vector<200x128xbf16>, vector<200x128xbf16> -> vector<200x256xbf16>
    %c0_3 = arith.constant 0 : index
    %c0_4 = arith.constant 0 : index
    %10 = vector.load %arg3[%c0_3, %c0_4] : memref<256x128xbf16, #tpu.memory_space<vmem>>, vector<256x128xbf16>
    %cst = arith.constant dense<0.000000e+00> : vector<200x128xf32>
    %11 = tpu.matmul %9, %10, %cst {dimension_numbers = #tpu.dot_dimension_numbers<[1], [0], [0], [1], [0, 0, 1, 1], [], []>} : vector<200x256xbf16>, vector<256x128xbf16>, vector<200x128xf32> -> vector<200x128xf32>
    %c0_5 = arith.constant 0 : index
    %c0_6 = arith.constant 0 : index
    %12 = vector.load %arg4[%c0_5, %c0_6] : memref<1x128xf32, #tpu.memory_space<vmem>>, vector<1x128xf32>
    %13 = vector.broadcast %12 : vector<1x128xf32> to vector<200x128xf32>
    %14 = arith.addf %11, %13 : vector<200x128xf32>
    %15 = arith.truncf %14 : vector<200x128xf32> to vector<200x128xbf16>
    %16 = arith.negf %15 : vector<200x128xbf16>
    %17 = math.exp %16 : vector<200x128xbf16>
    %cst_7 = arith.constant 1.000000e+00 : bf16
    %18 = vector.broadcast %cst_7 : bf16 to vector<200x128xbf16>
    %19 = arith.addf %18, %17 : vector<200x128xbf16>
    %20 = arith.divf %18, %19 : vector<200x128xbf16>
    %21 = arith.extf %20 : vector<200x128xbf16> to vector<200x128xf32>
    %22 = arith.mulf %14, %21 : vector<200x128xf32>
    %23 = arith.truncf %22 : vector<200x128xf32> to vector<200x128xbf16>
    %c0_8 = arith.constant 0 : index
    %c0_9 = arith.constant 0 : index
    %24 = vector.load %arg5[%c0_8, %c0_9] : memref<128x128xbf16, #tpu.memory_space<vmem>>, vector<128x128xbf16>
    %cst_10 = arith.constant dense<0.000000e+00> : vector<200x128xf32>
    %25 = tpu.matmul %23, %24, %cst_10 {dimension_numbers = #tpu.dot_dimension_numbers<[1], [0], [0], [1], [0, 0, 1, 1], [], []>} : vector<200x128xbf16>, vector<128x128xbf16>, vector<200x128xf32> -> vector<200x128xf32>
    %c0_11 = arith.constant 0 : index
    %c0_12 = arith.constant 0 : index
    %26 = vector.load %arg6[%c0_11, %c0_12] : memref<1x128xf32, #tpu.memory_space<vmem>>, vector<1x128xf32>
    %27 = vector.broadcast %26 : vector<1x128xf32> to vector<200x128xf32>
    %28 = arith.addf %25, %27 : vector<200x128xf32>
    %c0_13 = arith.constant 0 : index
    %c0_14 = arith.constant 0 : index
    %29 = vector.load %arg7[%c0_13, %c0_14] : memref<200x128xf32, #tpu.memory_space<vmem>>, vector<200x128xf32>
    tpu.vector_store %arg7[%c0_13, %c0_14], %28 {strides = array<i32>} : memref<200x128xf32, #tpu.memory_space<vmem>>, vector<200x128xf32>,
    return
  }
  func.func @transform_0(%arg0: i32) -> (i32, i32) {
    %c0_i32 = arith.constant 0 : i32
    %c0_i32_0 = arith.constant 0 : i32
    return %arg0, %c0_i32 : i32, i32
  }
  func.func @transform_1(%arg0: i32) -> (i32, i32) {
    %c0_i32 = arith.constant 0 : i32
    %c0_i32_0 = arith.constant 0 : i32
    %c0_i32_1 = arith.constant 0 : i32
    return %c0_i32, %c0_i32_0 : i32, i32
  }
  func.func @transform_2(%arg0: i32) -> (i32, i32) {
    %c0_i32 = arith.constant 0 : i32
    %c0_i32_0 = arith.constant 0 : i32
    %c0_i32_1 = arith.constant 0 : i32
    return %c0_i32, %c0_i32_0 : i32, i32
  }
  func.func @transform_3(%arg0: i32) -> (i32, i32) {
    %c0_i32 = arith.constant 0 : i32
    %c0_i32_0 = arith.constant 0 : i32
    %c0_i32_1 = arith.constant 0 : i32
    return %c0_i32, %c0_i32_0 : i32, i32
  }
  func.func @transform_4(%arg0: i32) -> (i32, i32) {
    %c0_i32 = arith.constant 0 : i32
    %c0_i32_0 = arith.constant 0 : i32
    %c0_i32_1 = arith.constant 0 : i32
    return %c0_i32, %c0_i32_0 : i32, i32
  }
  func.func @transform_5(%arg0: i32) -> (i32, i32) {
    %c0_i32 = arith.constant 0 : i32
    %c0_i32_0 = arith.constant 0 : i32
    %c0_i32_1 = arith.constant 0 : i32
    return %c0_i32, %c0_i32_0 : i32, i32
  }
  func.func @transform_6(%arg0: i32) -> (i32, i32) {
    %c0_i32 = arith.constant 0 : i32
    %c0_i32_0 = arith.constant 0 : i32
    return %arg0, %c0_i32 : i32, i32
  }
}

</mosaic_0001>

<bundles_post_ra>
// kernel: tpu_custom_call.1
= control target key start
LH: loop header
LB: loop body
LE: loop exit
PB: predicated region body
PF: predicated region fallthrough
CT: control target
= control target key end

     0   :  { %v6833_v2 = vmov 0   ;;  %s9640_s0 = inlined_call_operand.vmem [shape: f32[200,1], index: 0, kind: input, shape index: {}]   ;;  %s9641_s1 = inlined_call_operand.vmem [shape: f32[1,128], index: 1, kind: input, shape index: {}]   ;;  %s9642_s2 = inlined_call_operand.vmem [shape: bf16[256,128], index: 2, kind: input, shape index: {}]   ;;  %s9643_s3 = inlined_call_operand.vmem [shape: f32[1,128], index: 3, kind: input, shape index: {}]   ;;  %s9644_s4 = inlined_call_operand.vmem [shape: bf16[128,128], index: 4, kind: input, shape index: {}]   ;;  %s9645_s5 = inlined_call_operand.vmem [shape: f32[1,128], index: 5, kind: input, shape index: {}]   ;;  %s9646_s6 = inlined_call_operand.hbm [shape: f32[200,128], index: 6, kind: output, shape index: {}]  }
   0x1   :  { %v28_v0 = vld [vmem:[%s9640_s0 + $0x10] sm:$0xff]  ;;  %v26_v1 = vld [vmem:[%s9640_s0] sm:$0xff]  ;;  %6631 = vset.pattern.permute.xlu1 %v6833_v2  ;;  %6630 = vset.pattern.permute.xlu0 %v6833_v2  ;;  %v29_v3 = vld [vmem:[%s9640_s0 + $0x18] sm:$0xff] }
   0x2   :  { %64 = vperm.xlu1 %6631, %v28_v0   ;;  %54 = vperm.xlu0 %6630, %v26_v1   ;;  %v27_v4 = vld [vmem:[%s9640_s0 + $0x8] sm:$0xff]  ;;  %v30_v6 = vld [vmem:[%s9640_s0 + $0x20] sm:$0xff]  ;;  %v33_v7 = vld [vmem:[%s9640_s0 + $0x38] sm:$0xff] }
   0x3   :  { %v31_v5 = vld [vmem:[%s9640_s0 + $0x28] sm:$0xff]  ;;  %v32_v8 = vld [vmem:[%s9640_s0 + $0x30] sm:$0xff]  ;;  %v34_v10 = vld [vmem:[%s9640_s0 + $0x40] sm:$0xff] }
   0x4   :  { %v35_v9 = vld [vmem:[%s9640_s0 + $0x48] sm:$0xff]  ;;  %v37_v11 = vld [vmem:[%s9640_s0 + $0x58] sm:$0xff]  ;;  %v36_v12 = vld [vmem:[%s9640_s0 + $0x50] sm:$0xff] }
   0x5   :  { %v39_v13 = vld [vmem:[%s9640_s0 + $0x68] sm:$0xff]  ;;  %v38_v14 = vld [vmem:[%s9640_s0 + $0x60] sm:$0xff] }
   0x6   :  { %69 = vperm.xlu1 %6631, %v29_v3   ;;  %59 = vperm.xlu0 %6630, %v27_v4  }
   0xa   :  { %79 = vperm.xlu1 %6631, %v31_v5   ;;  %74 = vperm.xlu0 %6630, %v30_v6  }
   0xe   :  { %89 = vperm.xlu1 %6631, %v33_v7   ;;  %84 = vperm.xlu0 %6630, %v32_v8  }
  0x12   :  { %99 = vperm.xlu1 %6631, %v35_v9   ;;  %94 = vperm.xlu0 %6630, %v34_v10  }
  0x16   :  { %109 = vperm.xlu1 %6631, %v37_v11   ;;  %104 = vperm.xlu0 %6630, %v36_v12  }
  0x17   :  { %11 = vsyncpa [#allocation3], 0  ;;  %v41_v15 = vld [vmem:[%s9640_s0 + $0x78] sm:$0xff]  ;;  %v40_v16 = vld [vmem:[%s9640_s0 + $0x70] sm:$0xff]  ;;  %v9663_v63 = vmov 683565275  }
  0x18   :  { %v43_v17 = vld [vmem:[%s9640_s0 + $0x88] sm:$0xff]  ;;  %v42_v18 = vld [vmem:[%s9640_s0 + $0x80] sm:$0xff]  ;;  %v45_v19 = vld [vmem:[%s9640_s0 + $0x98] sm:$0xff]  ;;  %v9655_v1 = vmov 2475754826  }
  0x19   :  { %v44_v20 = vld [vmem:[%s9640_s0 + $0x90] sm:$0xff]  ;;  %v47_v21 = vld [vmem:[%s9640_s0 + $0xa8] sm:$0xff]  ;;  %v46_v22 = vld [vmem:[%s9640_s0 + $0xa0] sm:$0xff]  ;;  %v9659_v3 = vmov 2131351028  }
  0x1a   :  { %119 = vperm.xlu1 %6631, %v39_v13   ;;  %114 = vperm.xlu0 %6630, %v38_v14   ;;  %v49_v23 = vld [vmem:[%s9640_s0 + $0xb8] sm:$0xff]  ;;  %v48_v24 = vld [vmem:[%s9640_s0 + $0xb0] sm:$0xff]  ;;  %v50_v25 = vld [vmem:[%s9640_s0 + $0xc0] sm:$0xff]  ;;  %v9657_v5 = vmov 2102212464  }
  0x1b   :  { %v6958_v26 = vld [vmem:[%s9641_s1] ss:$0 sm:$0xff]  ;;  %v9661_v7 = vmov 920167782  }
  0x1e   :  { %129 = vperm.xlu1 %6631, %v41_v15   ;;  %124 = vperm.xlu0 %6630, %v40_v16   ;;  %v9652_v15 = vmov 1326507024  }
  0x22   :  { %139 = vperm.xlu1 %6631, %v43_v17   ;;  %134 = vperm.xlu0 %6630, %v42_v18  }
  0x26   :  { %149 = vperm.xlu1 %6631, %v45_v19   ;;  %144 = vperm.xlu0 %6630, %v44_v20  }
  0x2a   :  { %159 = vperm.xlu1 %6631, %v47_v21   ;;  %154 = vperm.xlu0 %6630, %v46_v22  }
  0x2e   :  { %169 = vperm.xlu1 %6631, %v49_v23   ;;  %164 = vperm.xlu0 %6630, %v48_v24  }
  0x32   :  { %174 = vperm.xlu0 %6630, %v50_v25  }
  0x7d   :  { %v65_v27 = vpop.permute.xlu1 %64  ;;  %v55_v28 = vpop.permute.xlu0 %54 }
  0x7e   :  { %v6961_v29 = vmul.f32 %v6958_v26, %v65_v27  ;;  %v6964_v30 = vmul.f32 %v6958_v26, %v55_v28 }
  0x80   :  { %v414_v31 = vand.u32 2147483647, %v6961_v29  ;;  %v417_v32 = vand.u32 2139095040, %v6961_v29  ;;  %v9648_v33 = vand.u32 2147483647, %v6964_v30  ;;  %v211_v34 = vand.u32 2139095040, %v6964_v30 }
  0x81   :  { %v70_v35 = vpop.permute.xlu1 %69  ;;  %v60_v42 = vpop.permute.xlu0 %59 }
  0x82   :  { %v418_v36 = vshrl.u32 %v417_v32, 23  ;;  %v421_v37 = vand.u32 8388607, %v414_v31  ;;  %v6973_v38 = vmul.f32 %v6958_v26, %v70_v35  ;;  %v212_v39 = vshrl.u32 %v211_v34, 23 }
  0x83   :  { %v215_v40 = vand.u32 8388607, %v9648_v33  ;;  %v6980_v51 = vmul.f32 %v6958_v26, %v60_v42 }
  0x84   :  { %9814 = vst [vmem:[#allocation5_spill] sm:$0xff] %v6973_v38  ;;  %v6104_v41 = vadd.s32 4294967169, %v418_v36  ;;  %v422_v43 = vor.u32 8388608, %v421_v37  ;;  %v6096_v44 = vadd.s32 4294967169, %v212_v39  ;;  %v520_v45 = vand.u32 2139095040, %v6973_v38 }
  0x85   :  { %v517_v47 = vand.u32 2147483647, %v6973_v38  ;;  %v216_v48 = vor.u32 8388608, %v215_v40  ;;  %v314_v61 = vand.u32 2139095040, %v6980_v51 }
  0x86   :  { %v424_v46 = vadd.s32 1, %v6104_v41  ;;  %v218_v49 = vadd.s32 1, %v6096_v44  ;;  %v521_v50 = vshrl.u32 %v520_v45, 23  ;;  %v6982_v53 = vshll.u32 %v422_v43, 8 }
  0x87   :  { %v6986_v57 = vand.u32 8388607, %v517_v47  ;;  %v6990_v59 = vshll.u32 %v216_v48, 8 }
  0x88   :  { %vm425_vm0 = vcmp.gt.s32.totalorder %v424_v46, 0  ;;  %vm219_vm1 = vcmp.gt.s32.totalorder %v218_v49, 0  ;;  %v6108_v60 = vadd.s32 4294967169, %v521_v50 }
  0x89   :  { %v426_v52 = vsel %vm425_vm0, %v424_v46, 0  ;;  %v220_v56 = vsel %vm219_vm1, %v218_v49, 0 }
  0x8a   :  { %v427_v54 = vshrl.u32 %v426_v52, 5  ;;  %v428_v55 = vand.u32 31, %v426_v52  ;;  %v6988_v58 = vand.u32 31, %v220_v56  ;;  %v6998_v9 = vshrl.u32 %v220_v56, 5 }
  0x8b   :  { %v527_v23 = vadd.s32 1, %v6108_v60 }
  0x8c   :  { %v429_v62 = vsub.s32 32, %v428_v55  ;;  %v431_v0 = vshll.u32 %v9663_v63, %v428_v55  ;;  %v434_v2 = vshll.u32 %v9655_v1, %v428_v55  ;;  %v437_v4 = vshll.u32 %v9659_v3, %v428_v55 }
  0x8d   :  { %v440_v6 = vshll.u32 %v9657_v5, %v428_v55  ;;  %v443_v8 = vshll.u32 %v9661_v7, %v428_v55  ;;  %vm446_vm2 = vcmp.lt.s32.totalorder %v427_v54, 1  ;;  %vm448_vm3 = vcmp.lt.s32.totalorder %v427_v54, 3 }
  0x8e   :  { %v430_v10 = vshrl.u32 %v9663_v63, %v429_v62  ;;  %v432_v11 = vshrl.u32 %v9655_v1, %v429_v62  ;;  %v435_v12 = vshrl.u32 %v9659_v3, %v429_v62  ;;  %v438_v13 = vshrl.u32 %v9657_v5, %v429_v62 }
  0x8f   :  { %v441_v14 = vshrl.u32 %v9661_v7, %v429_v62  ;;  %v444_v16 = vshrl.u32 %v9652_v15, %v429_v62  ;;  %vm449_vm4 = vcmp.lt.s32.totalorder %v427_v54, 4  ;;  %v223_v20 = vsub.s32 32, %v6988_v58 }
  0x90   :  { %v433_v17 = vor.u32 %v432_v11, %v431_v0  ;;  %v436_v18 = vor.u32 %v435_v12, %v434_v2  ;;  %v439_v19 = vor.u32 %v438_v13, %v437_v4  ;;  %vm447_vm5 = vcmp.lt.s32.totalorder %v427_v54, 2 }
  0x91   :  { %v442_v21 = vor.u32 %v441_v14, %v440_v6  ;;  %v445_v22 = vor.u32 %v444_v16, %v443_v8  ;;  %v225_v36 = vshll.u32 %v9663_v63, %v6988_v58  ;;  %v226_v40 = vshrl.u32 %v9655_v1, %v223_v20 }
  0x92   :  { %v450_v24 = vsel %vm446_vm2, %v430_v10, %v433_v17  ;;  %v451_v25 = vsel %vm449_vm4, %v439_v19, 2102212464  ;;  %v454_v27 = vsel %vm446_vm2, %v433_v17, %v436_v18  ;;  %v458_v28 = vsel %vm446_vm2, %v436_v18, %v439_v19 }
  0x93   :  { %v452_v32 = vsel %vm448_vm3, %v436_v18, %v451_v25  ;;  %v455_v34 = vsel %vm449_vm4, %v442_v21, 920167782  ;;  %v459_v35 = vsel %vm449_vm4, %v445_v22, 1326507024  ;;  %v228_v41 = vshll.u32 %v9655_v1, %v6988_v58 }
  0x94   :  { %v456_v37 = vsel %vm448_vm3, %v439_v19, %v455_v34  ;;  %v460_v39 = vsel %vm448_vm3, %v442_v21, %v459_v35  ;;  %v453_v42 = vsel %vm447_vm5, %v450_v24, %v452_v32  ;;  %v229_v45 = vshrl.u32 %v9659_v3, %v223_v20 }
  0x95   :  { %v457_v43 = vsel %vm447_vm5, %v454_v27, %v456_v37  ;;  %v461_v44 = vsel %vm447_vm5, %v458_v28, %v460_v39  ;;  %v227_v52 = vor.u32 %v226_v40, %v225_v36  ;;  %v231_v56 = vshll.u32 %v9659_v3, %v6988_v58 }
  0x96   :  { %v7023_v46 = vmul.u32.u64.low %v6982_v53, %v461_v44  ;;  %v7024_v48 = vmul.u32.u64.high %v6982_v53, %v461_v44, %v7023_v46  ;;  %v7027_v49 = vmul.u32.u64.low %v6982_v53, %v457_v43  ;;  %v7028_v50 = vmul.u32.u64.high %v6982_v53, %v457_v43, %v7027_v49 }
  0x97   :  { %v230_v55 = vor.u32 %v229_v45, %v228_v41  ;;  %v232_v60 = vshrl.u32 %v9657_v5, %v223_v20  ;;  %v224_v54 = vshrl.u32 %v9663_v63, %v223_v20  ;;  %v234_v62 = vshll.u32 %v9657_v5, %v6988_v58 }
  0x98   :  { %v235_v0 = vshrl.u32 %v9661_v7, %v223_v20  ;;  %v238_v2 = vshrl.u32 %v9652_v15, %v223_v20  ;;  %v469_v4 = vmul.u32 %v6982_v53, %v453_v42  ;;  %v237_v8 = vshll.u32 %v9661_v7, %v6988_v58 }
  0x99   :  { %v233_v6 = vor.u32 %v232_v60, %v231_v56  ;;  %vm240_vm6 = vcmp.lt.s32.totalorder %v6998_v9, 1  ;;  %vm471_vm7 = vc.u32 %v7024_v48, %v7027_v49  ;;  %v472_v10 = vadd.s32 1, %v7028_v50 }
  0x9a   :  { %v236_v11 = vor.u32 %v235_v0, %v234_v62  ;;  %vm241_vm8 = vcmp.lt.s32.totalorder %v6998_v9, 2  ;;  %v239_v12 = vor.u32 %v238_v2, %v237_v8  ;;  %vm242_vm9 = vcmp.lt.s32.totalorder %v6998_v9, 3 }
  0x9b   :  { %vm243_vm10 = vcmp.lt.s32.totalorder %v6998_v9, 4  ;;  %v248_v53 = vsel %vm240_vm6, %v227_v52, %v230_v55  ;;  %v473_v13 = vsel %vm471_vm7, %v472_v10, %v7028_v50  ;;  %v252_v16 = vsel %vm240_vm6, %v230_v55, %v233_v6 }
  0x9c   :  { %v245_v14 = vsel %vm243_vm10, %v233_v6, 2102212464  ;;  %v249_v58 = vsel %vm243_vm10, %v236_v11, 920167782  ;;  %v474_v17 = vadd.s32 %v473_v13, %v469_v4  ;;  %v244_v18 = vsel %vm240_vm6, %v224_v54, %v227_v52 }
  0x9d   :  { %v250_v19 = vsel %vm242_vm9, %v233_v6, %v249_v58  ;;  %v253_v20 = vsel %vm243_vm10, %v239_v12, 1326507024  ;;  %v246_v21 = vsel %vm242_vm9, %v230_v55, %v245_v14  ;;  %vm528_vm11 = vcmp.gt.s32.totalorder %v527_v23, 0 }
  0x9e   :  { %v251_v22 = vsel %vm241_vm8, %v248_v53, %v250_v19  ;;  %v254_v24 = vsel %vm242_vm9, %v236_v11, %v253_v20  ;;  %v475_v25 = vadd.s32 536870912, %v474_v17  ;;  %v529_v36 = vsel %vm528_vm11, %v527_v23, 0 }
  0x9f   :  { %v255_v27 = vsel %vm241_vm8, %v252_v16, %v254_v24  ;;  %v7055_v28 = vmul.u32.u64.low %v6990_v59, %v251_v22  ;;  %v7056_v32 = vmul.u32.u64.high %v6990_v59, %v251_v22, %v7055_v28  ;;  %v247_v39 = vsel %vm241_vm8, %v244_v18, %v246_v21 }
  0xa0   :  { %v7060_v34 = vmul.u32.u64.low %v6990_v59, %v255_v27  ;;  %v7061_v35 = vmul.u32.u64.high %v6990_v59, %v255_v27, %v7060_v34  ;;  %v7063_v37 = vshrl.u32 %v475_v25, 30  ;;  %v531_v40 = vand.u32 31, %v529_v36 }
  0xa1   :  { %v525_v41 = vor.u32 8388608, %v6986_v57  ;;  %v315_v42 = vshrl.u32 %v314_v61, 23  ;;  %v266_v44 = vadd.s32 1, %v7056_v32  ;;  %v263_v23 = vmul.u32 %v6990_v59, %v247_v39 }
  0xa2   :  { %v477_v43 = vshll.u32 %v7063_v37, 30  ;;  %v532_v45 = vsub.s32 32, %v531_v40  ;;  %v534_v46 = vshll.u32 %v9663_v63, %v531_v40  ;;  %vm265_vm12 = vc.u32 %v7061_v35, %v7055_v28 }
  0xa3   :  { %v537_v9 = vshll.u32 %v9655_v1, %v531_v40  ;;  %v540_v50 = vshll.u32 %v9659_v3, %v531_v40  ;;  %v267_v61 = vsel %vm265_vm12, %v266_v44, %v7056_v32  ;;  %v530_v52 = vshrl.u32 %v529_v36, 5 }
  0xa4   :  { %v7078_v57 = vsub.s32 %v474_v17, %v477_v43  ;;  %v535_v55 = vshrl.u32 %v9655_v1, %v532_v45  ;;  %v268_v56 = vadd.s32 %v267_v61, %v263_v23  ;;  %v538_v60 = vshrl.u32 %v9659_v3, %v532_v45 }
  0xa5   :  { %v541_v54 = vshrl.u32 %v9657_v5, %v532_v45  ;;  %v543_v59 = vshll.u32 %v9657_v5, %v531_v40  ;;  %v544_v2 = vshrl.u32 %v9661_v7, %v532_v45  ;;  %v546_v4 = vshll.u32 %v9661_v7, %v531_v40 }
  0xa6   :  { %v480_v62 = vsub.s32 0, %v7078_v57  ;;  %v536_v0 = vor.u32 %v535_v55, %v534_v46  ;;  %v269_v6 = vadd.s32 536870912, %v268_v56  ;;  %v539_v8 = vor.u32 %v538_v60, %v537_v9  ;;  %v80_v46 = vpop.permute.xlu1 %79 }
  0xa7   :  { %v542_v10 = vor.u32 %v541_v54, %v540_v50  ;;  %v547_v11 = vshrl.u32 %v9652_v15, %v532_v45  ;;  %v533_v53 = vshrl.u32 %v9663_v63, %v532_v45  ;;  %v545_v13 = vor.u32 %v544_v2, %v543_v59 }
  0xa8   :  { %v6105_v12 = vmin.u32 %v480_v62, %v7078_v57  ;;  %v565_v14 = vshll.u32 %v525_v41, 8  ;;  %v7091_v58 = vshrl.u32 %v269_v6, 30  ;;  %vm549_vm13 = vcmp.lt.s32.totalorder %v530_v52, 1 }
  0xa9   :  { %v548_v16 = vor.u32 %v547_v11, %v546_v4  ;;  %vm552_vm14 = vcmp.lt.s32.totalorder %v530_v52, 4  ;;  %v557_v19 = vsel %vm549_vm13, %v536_v0, %v539_v8  ;;  %v6100_v20 = vadd.s32 4294967169, %v315_v42 }
  0xaa   :  { %v482_v17 = vclz %v6105_v12  ;;  %v554_v18 = vsel %vm552_vm14, %v542_v10, 2102212464  ;;  %vm550_vm15 = vcmp.lt.s32.totalorder %v530_v52, 2  ;;  %vm551_vm0 = vcmp.lt.s32.totalorder %v530_v52, 3 }
  0xab   :  { %v558_v21 = vsel %vm552_vm14, %v545_v13, 920167782  ;;  %v561_v22 = vsel %vm549_vm13, %v539_v8, %v542_v10  ;;  %v271_v25 = vshll.u32 %v7091_v58, 30  ;;  %v562_v32 = vsel %vm552_vm14, %v548_v16, 1326507024 }
  0xac   :  { %v6106_v24 = vadd.s32 4294967294, %v482_v17  ;;  %v559_v27 = vsel %vm551_vm0, %v542_v10, %v558_v21  ;;  %v553_v34 = vsel %vm549_vm13, %v533_v53, %v536_v0  ;;  %v555_v36 = vsel %vm551_vm0, %v539_v8, %v554_v18 }
  0xad   :  { %v560_v39 = vsel %vm550_vm15, %v557_v19, %v559_v27  ;;  %v563_v40 = vsel %vm551_vm0, %v545_v13, %v562_v32  ;;  %v7103_v23 = vsub.s32 %v268_v56, %v271_v25  ;;  %v556_v9 = vsel %vm550_vm15, %v553_v34, %v555_v36 }
  0xae   :  { %vm6107_vm1 = vcmp.lt.s32.totalorder %v6106_v24, 0  ;;  %v564_v41 = vsel %vm550_vm15, %v561_v22, %v563_v40  ;;  %v7096_v43 = vmul.u32.u64.low %v565_v14, %v560_v39  ;;  %v7097_v44 = vmul.u32.u64.high %v565_v14, %v560_v39, %v7096_v43 }
  0xaf   :  { %v7100_v42 = vmul.u32.u64.low %v565_v14, %v564_v41  ;;  %v7101_v45 = vmul.u32.u64.high %v565_v14, %v564_v41, %v7100_v42  ;;  %v321_v50 = vadd.s32 1, %v6100_v20  ;;  %v485_v61 = vsel %vm6107_vm1, 0, %v6106_v24 }
  0xb0   :  { %v9647_v55 = vand.u32 2147483647, %v6980_v51  ;;  %v575_v60 = vadd.s32 1, %v7097_v44  ;;  %v7109_v54 = vmul.f32 %v6958_v26, %v80_v46  ;;  %v572_v59 = vmul.u32 %v565_v14, %v556_v9 }
  0xb1   :  { %vm322_vm2 = vcmp.gt.s32.totalorder %v321_v50, 0  ;;  %vm574_vm3 = vc.u32 %v7101_v45, %v7096_v43  ;;  %v490_v0 = vsub.s32 4294967266, %v485_v61  ;;  %v274_v56 = vsub.s32 0, %v7103_v23 }
  0xb2   :  { %9815 = vst [vmem:[#allocation6_spill] sm:$0xff] %v7109_v54  ;;  %v323_v62 = vsel %vm322_vm2, %v321_v50, 0  ;;  %v576_v52 = vsel %vm574_vm3, %v575_v60, %v7097_v44  ;;  %v318_v4 = vand.u32 8388607, %v9647_v55  ;;  %v486_v8 = vsub.s32 32, %v485_v61 }
  0xb3   :  { %v577_v2 = vadd.s32 %v576_v52, %v572_v59  ;;  %v325_v6 = vand.u32 31, %v323_v62  ;;  %v726_v10 = vand.u32 2139095040, %v7109_v54  ;;  %v470_v53 = vadd.s32 %v7027_v49, %v7024_v48 }
  0xb4   :  { %v491_v13 = vadd.s32 127, %v490_v0  ;;  %v6097_v14 = vmin.u32 %v274_v56, %v7103_v23  ;;  %v487_v16 = vshll.u32 %v7078_v57, %v485_v61  ;;  %v319_v18 = vor.u32 8388608, %v318_v4 }
  0xb5   :  { %v578_v11 = vadd.s32 536870912, %v577_v2  ;;  %v326_v12 = vsub.s32 32, %v325_v6  ;;  %v488_v19 = vshrl.u32 %v470_v53, %v486_v8  ;;  %v727_v22 = vshrl.u32 %v726_v10, 23 }
  0xb6   :  { %v328_v25 = vshll.u32 %v9663_v63, %v325_v6  ;;  %v331_v48 = vshll.u32 %v9655_v1, %v325_v6  ;;  %v492_v27 = vshll.u32 %v491_v13, 23  ;;  %v276_v32 = vclz %v6097_v14 }
  0xb7   :  { %v7122_v17 = vshrl.u32 %v578_v11, 30  ;;  %v329_v20 = vshrl.u32 %v9655_v1, %v326_v12  ;;  %v332_v21 = vshrl.u32 %v9659_v3, %v326_v12  ;;  %v335_v49 = vshrl.u32 %v9657_v5, %v326_v12 }
  0xb8   :  { %v324_v57 = vshrl.u32 %v323_v62, 5  ;;  %v334_v34 = vshll.u32 %v9659_v3, %v325_v6  ;;  %v337_v41 = vshll.u32 %v9657_v5, %v325_v6  ;;  %v338_v42 = vshrl.u32 %v9661_v7, %v326_v12 }
  0xb9   :  { %v580_v24 = vshll.u32 %v7122_v17, 30  ;;  %v330_v39 = vor.u32 %v329_v20, %v328_v25  ;;  %v333_v40 = vor.u32 %v332_v21, %v331_v48  ;;  %v340_v46 = vshll.u32 %v9661_v7, %v325_v6 }
  0xba   :  { %v336_v44 = vor.u32 %v335_v49, %v334_v34  ;;  %v341_v9 = vshrl.u32 %v9652_v15, %v326_v12  ;;  %v489_v50 = vor.u32 %v488_v19, %v487_v16  ;;  %v359_v60 = vshll.u32 %v319_v18, 8 }
  0xbb   :  { %v7131_v36 = vsub.s32 %v577_v2, %v580_v24  ;;  %v9651_v59 = vand.u32 2147483647, %v7109_v54  ;;  %v6098_v62 = vadd.s32 4294967294, %v276_v32  ;;  %v339_v0 = vor.u32 %v338_v42, %v337_v41 }
  0xbc   :  { %v342_v56 = vor.u32 %v341_v9, %v340_v46  ;;  %v6116_v52 = vadd.s32 4294967169, %v727_v22  ;;  %v493_v2 = vor.u32 4788187, %v492_v27  ;;  %vm343_vm4 = vcmp.lt.s32.totalorder %v324_v57, 1 }
  0xbd   :  { %v583_v61 = vsub.s32 0, %v7131_v36  ;;  %vm346_vm5 = vcmp.lt.s32.totalorder %v324_v57, 4  ;;  %vm345_vm6 = vcmp.lt.s32.totalorder %v324_v57, 3  ;;  %v351_v6 = vsel %vm343_vm4, %v330_v39, %v333_v40 }
  0xbe   :  { %v348_v8 = vsel %vm346_vm5, %v336_v44, 2102212464  ;;  %v352_v10 = vsel %vm346_vm5, %v339_v0, 920167782  ;;  %v327_v53 = vshrl.u32 %v9663_v63, %v326_v12  ;;  %vm344_vm7 = vcmp.lt.s32.totalorder %v324_v57, 2 }
  0xbf   :  { %v6109_v4 = vmin.u32 %v583_v61, %v7131_v36  ;;  %v353_v13 = vsel %vm345_vm6, %v336_v44, %v352_v10  ;;  %vm6099_vm8 = vcmp.lt.s32.totalorder %v6098_v62, 0  ;;  %v355_v16 = vsel %vm343_vm4, %v333_v40, %v336_v44 }
  0xc0   :  { %v354_v14 = vsel %vm344_vm7, %v351_v6, %v353_v13  ;;  %v356_v18 = vsel %vm346_vm5, %v342_v56, 1326507024  ;;  %v347_v20 = vsel %vm343_vm4, %v327_v53, %v330_v39  ;;  %v349_v21 = vsel %vm345_vm6, %v333_v40, %v348_v8 }
  0xc1   :  { %v585_v11 = vclz %v6109_v4  ;;  %v357_v22 = vsel %vm345_vm6, %v339_v0, %v356_v18  ;;  %v494_v24 = vand.u32 2147483647, %v493_v2  ;;  %v7147_v27 = vsel %vm6099_vm8, 0, %v6098_v62  ;;  %v75_v2 = vpop.permute.xlu0 %74 }
  0xc2   :  { %v358_v25 = vsel %vm344_vm7, %v355_v16, %v357_v22  ;;  %v7143_v48 = vmul.u32.u64.low %v359_v60, %v354_v14  ;;  %v7144_v49 = vmul.u32.u64.high %v359_v60, %v354_v14, %v7143_v48  ;;  %v350_v41 = vsel %vm344_vm7, %v347_v20, %v349_v21 }
  0xc3   :  { %v6110_v19 = vadd.s32 4294967294, %v585_v11  ;;  %v7149_v12 = vmul.u32.u64.low %v359_v60, %v358_v25  ;;  %v7150_v32 = vmul.u32.u64.high %v359_v60, %v358_v25, %v7149_v12  ;;  %v733_v39 = vadd.s32 1, %v6116_v52 }
  0xc4   :  { %v496_v40 = vcvt.s32.f32 %v489_v50  ;;  %v264_v44 = vadd.s32 %v7055_v28, %v7061_v35  ;;  %v280_v46 = vsub.s32 32, %v7147_v27  ;;  %v284_v9 = vsub.s32 4294967266, %v7147_v27 }
  0xc5   :  { %vm6111_vm9 = vcmp.lt.s32.totalorder %v6110_v19, 0  ;;  %v369_v61 = vadd.s32 1, %v7144_v49  ;;  %vm734_vm10 = vcmp.gt.s32.totalorder %v733_v39, 0  ;;  %v366_v0 = vmul.u32 %v359_v60, %v350_v41 }
  0xc6   :  { %v7152_v34 = vsel %vm6111_vm9, 0, %v6110_v19  ;;  %v7161_v62 = vmul.f32 %v496_v40, %v494_v24  ;;  %vm368_vm11 = vc.u32 %v7150_v32, %v7143_v48  ;;  %v730_v57 = vand.u32 8388607, %v9651_v59 }
  0xc7   :  { %v593_v42 = vsub.s32 4294967266, %v7152_v34  ;;  %v589_v28 = vsub.s32 32, %v7152_v34  ;;  %v370_v50 = vsel %vm368_vm11, %v369_v61, %v7144_v49  ;;  %v735_v56 = vsel %vm734_vm10, %v733_v39, 0 }
  0xc8   :  { %v371_v52 = vadd.s32 %v370_v50, %v366_v0  ;;  %v281_v4 = vshll.u32 %v7103_v23, %v7147_v27  ;;  %v7171_v8 = vshrl.u32 %v264_v44, %v280_v46  ;;  %v573_v60 = vadd.s32 %v7096_v43, %v7101_v45 }
  0xc9   :  { %v594_v35 = vadd.s32 127, %v593_v42  ;;  %v737_v6 = vand.u32 31, %v735_v56  ;;  %v498_v10 = vxor.u32 2147483648, %v7161_v62  ;;  %v285_v11 = vadd.s32 127, %v284_v9 }
  0xca   :  { %v372_v53 = vadd.s32 536870912, %v371_v52  ;;  %v731_v13 = vor.u32 8388608, %v730_v57  ;;  %v591_v14 = vshrl.u32 %v573_v60, %v589_v28  ;;  %v7177_v19 = vmul.f32 %v6958_v26, %v75_v2 }
  0xcb   :  { %v595_v16 = vshll.u32 %v594_v35, 23  ;;  %v738_v18 = vsub.s32 32, %v737_v6  ;;  %v736_v21 = vshrl.u32 %v735_v56, 5  ;;  %v740_v22 = vshll.u32 %v9663_v63, %v737_v6 }
  0xcc   :  { %v7179_v20 = vshrl.u32 %v372_v53, 30  ;;  %v743_v24 = vshll.u32 %v9655_v1, %v737_v6  ;;  %v746_v25 = vshll.u32 %v9659_v3, %v737_v6  ;;  %v749_v41 = vshll.u32 %v9657_v5, %v737_v6 }
  0xcd   :  { %v741_v43 = vshrl.u32 %v9655_v1, %v738_v18  ;;  %v744_v45 = vshrl.u32 %v9659_v3, %v738_v18  ;;  %v747_v49 = vshrl.u32 %v9657_v5, %v738_v18  ;;  %v750_v39 = vshrl.u32 %v9661_v7, %v738_v18 }
  0xce   :  { %v374_v12 = vshll.u32 %v7179_v20, 30  ;;  %v753_v40 = vshrl.u32 %v9652_v15, %v738_v18  ;;  %v752_v9 = vshll.u32 %v9661_v7, %v737_v6  ;;  %v286_v61 = vshll.u32 %v285_v11, 23 }
  0xcf   :  { %v742_v44 = vor.u32 %v741_v43, %v740_v22  ;;  %v745_v42 = vor.u32 %v744_v45, %v743_v24  ;;  %v748_v46 = vor.u32 %v747_v49, %v746_v25  ;;  %v590_v0 = vshll.u32 %v7131_v36, %v7152_v34  ;;  %v90_v36 = vpop.permute.xlu1 %89 }
  0xd0   :  { %v751_v57 = vor.u32 %v750_v39, %v749_v41  ;;  %vm755_vm12 = vcmp.lt.s32.totalorder %v736_v21, 1  ;;  %v7194_v28 = vsub.s32 %v371_v52, %v374_v12  ;;  %v754_v35 = vor.u32 %v753_v40, %v752_v9 }
  0xd1   :  { %vm758_vm13 = vcmp.lt.s32.totalorder %v736_v21, 4  ;;  %v763_v50 = vsel %vm755_vm12, %v742_v44, %v745_v42  ;;  %vm757_vm14 = vcmp.lt.s32.totalorder %v736_v21, 3  ;;  %v771_v2 = vshll.u32 %v731_v13, 8 }
  0xd2   :  { %v764_v56 = vsel %vm758_vm13, %v751_v57, 920167782  ;;  %v623_v60 = vand.u32 2139095040, %v7177_v19  ;;  %v592_v53 = vor.u32 %v591_v14, %v590_v0  ;;  %v596_v6 = vor.u32 4788187, %v595_v16 }
  0xd3   :  { %vm756_vm15 = vcmp.lt.s32.totalorder %v736_v21, 2  ;;  %v765_v11 = vsel %vm757_vm14, %v748_v46, %v764_v56  ;;  %v739_v34 = vshrl.u32 %v9663_v63, %v738_v18  ;;  %v760_v52 = vsel %vm758_vm13, %v748_v46, 2102212464 }
  0xd4   :  { %v766_v22 = vsel %vm756_vm15, %v763_v50, %v765_v11  ;;  %v767_v24 = vsel %vm755_vm12, %v745_v42, %v748_v46  ;;  %v377_v43 = vsub.s32 0, %v7194_v28  ;;  %v768_v13 = vsel %vm758_vm13, %v754_v35, 1326507024 }
  0xd5   :  { %v7206_v45 = vmul.u32.u64.low %v771_v2, %v766_v22  ;;  %v7207_v25 = vmul.u32.u64.high %v771_v2, %v766_v22, %v7206_v45  ;;  %v287_v14 = vor.u32 4788187, %v286_v61  ;;  %v769_v16 = vsel %vm757_vm14, %v751_v57, %v768_v13 }
  0xd6   :  { %v624_v49 = vshrl.u32 %v623_v60, 23  ;;  %v7212_v18 = vmul.f32 %v6958_v26, %v90_v36  ;;  %v759_v12 = vsel %vm755_vm12, %v739_v34, %v742_v44  ;;  %v761_v41 = vsel %vm757_vm14, %v745_v42, %v760_v52 }
  0xd7   :  { %v770_v39 = vsel %vm756_vm15, %v767_v24, %v769_v16  ;;  %v9650_v40 = vand.u32 2147483647, %v7177_v19  ;;  %v597_v46 = vand.u32 2147483647, %v596_v6  ;;  %v283_v61 = vor.u32 %v7171_v8, %v281_v4 }
  0xd8   :  { %9816 = vst [vmem:[#allocation7_spill] sm:$0xff] %v7212_v18  ;;  %v7218_v9 = vmul.u32.u64.low %v771_v2, %v770_v39  ;;  %v7219_v0 = vmul.u32.u64.high %v771_v2, %v770_v39, %v7218_v9  ;;  %v6112_v35 = vadd.s32 4294967169, %v624_v49  ;;  %v599_v57 = vcvt.s32.f32 %v592_v53 }
  0xd9   :  { %v6101_v50 = vmin.u32 %v377_v43, %v7194_v28  ;;  %v762_v44 = vsel %vm756_vm15, %v759_v12, %v761_v41  ;;  %v781_v42 = vadd.s32 1, %v7207_v25  ;;  %v932_v60 = vand.u32 2139095040, %v7212_v18 }
  0xda   :  { %v630_v56 = vadd.s32 1, %v6112_v35  ;;  %vm9734_vm0 = vcmp.lt.s32.totalorder %v6961_v29, 0  ;;  %v288_v27 = vand.u32 2147483647, %v287_v14  ;;  %v7235_v4 = vmul.f32 %v599_v57, %v597_v46 }
  0xdb   :  { %v499_v23 = vsel %vm9734_vm0, %v498_v10, %v7161_v62  ;;  %v627_v8 = vand.u32 8388607, %v9650_v40  ;;  %v379_v21 = vclz %v6101_v50  ;;  %v778_v53 = vmul.u32 %v771_v2, %v762_v44 }
  0xdc   :  { %vm780_vm1 = vc.u32 %v7219_v0, %v7206_v45  ;;  %vm631_vm2 = vcmp.gt.s32.totalorder %v630_v56, 0  ;;  %v290_v6 = vcvt.s32.f32 %v283_v61  ;;  %v933_v34 = vshrl.u32 %v932_v60, 23 }
  0xdd   :  { %v782_v11 = vsel %vm780_vm1, %v781_v42, %v7207_v25  ;;  %v632_v36 = vsel %vm631_vm2, %v630_v56, 0  ;;  %vm7244_vm3 = vcmp.le.f32.partialorder %v414_v31, 0.7853982  ;;  %v601_v24 = vxor.u32 2147483648, %v7235_v4 }
  0xde   :  { %v783_v10 = vadd.s32 %v782_v11, %v778_v53  ;;  %v634_v52 = vand.u32 31, %v632_v36  ;;  %v7251_v2 = vsel %vm7244_vm3, %v6961_v29, %v499_v23  ;;  %v7253_v22 = vmul.f32 %v290_v6, %v288_v27 }
  0xdf   :  { %v9649_v43 = vand.u32 2147483647, %v7212_v18  ;;  %v6102_v13 = vadd.s32 4294967294, %v379_v21  ;;  %v628_v14 = vor.u32 8388608, %v627_v8  ;;  %v633_v16 = vshrl.u32 %v632_v36, 5 }
  0xe0   :  { %v784_v25 = vadd.s32 536870912, %v783_v10  ;;  %v635_v31 = vsub.s32 32, %v634_v52  ;;  %v637_v49 = vshll.u32 %v9663_v63, %v634_v52  ;;  %v640_v12 = vshll.u32 %v9655_v1, %v634_v52 }
  0xe1   :  { %v6124_v41 = vadd.s32 4294967169, %v933_v34  ;;  %v643_v35 = vshll.u32 %v9659_v3, %v634_v52  ;;  %v646_v57 = vshll.u32 %v9657_v5, %v634_v52  ;;  %v649_v44 = vshll.u32 %v9661_v7, %v634_v52 }
  0xe2   :  { %v7259_v39 = vshrl.u32 %v784_v25, 30  ;;  %v638_v46 = vshrl.u32 %v9655_v1, %v635_v31  ;;  %v641_v9 = vshrl.u32 %v9659_v3, %v635_v31  ;;  %v644_v61 = vshrl.u32 %v9657_v5, %v635_v31 }
  0xe3   :  { %v647_v50 = vshrl.u32 %v9661_v7, %v635_v31  ;;  %vm9733_vm4 = vcmp.lt.s32.totalorder %v6973_v38, 0  ;;  %v650_v23 = vshrl.u32 %v9652_v15, %v635_v31  ;;  %v668_v21 = vshll.u32 %v628_v14, 8 }
  0xe4   :  { %9819 = vst [vmem:[#allocation8_spill] sm:$0xff] %v7259_v39  ;;  %v786_v42 = vshll.u32 %v7259_v39, 30  ;;  %v639_v56 = vor.u32 %v638_v46, %v637_v49  ;;  %v642_v60 = vor.u32 %v641_v9, %v640_v12  ;;  %v645_v27 = vor.u32 %v644_v61, %v643_v35 }
  0xe5   :  { %v648_v8 = vor.u32 %v647_v50, %v646_v57  ;;  %v936_v53 = vand.u32 8388607, %v9649_v43  ;;  %v651_v11 = vor.u32 %v650_v23, %v649_v44  ;;  %vm652_vm5 = vcmp.lt.s32.totalorder %v633_v16, 1 }
  0xe6   :  { %v7273_v6 = vsub.s32 %v783_v10, %v786_v42  ;;  %v939_v36 = vadd.s32 1, %v6124_v41  ;;  %v636_v34 = vshrl.u32 %v9663_v63, %v635_v31  ;;  %vm654_vm6 = vcmp.lt.s32.totalorder %v633_v16, 3 }
  0xe7   :  { %vm655_vm7 = vcmp.lt.s32.totalorder %v633_v16, 4  ;;  %v660_v52 = vsel %vm652_vm5, %v639_v56, %v642_v60  ;;  %vm7278_vm8 = vcmp.le.f32.partialorder %v517_v47, 0.7853982  ;;  %v9820_v25 = vmov 0 }
  0xe8   :  { %v9821_v25 = vsel %vm7278_vm8, 4294967295, %v9820_v25  ;;  %v789_v14 = vsub.s32 0, %v7273_v6  ;;  %v657_v49 = vsel %vm655_vm7, %v645_v27, 2102212464  ;;  %v661_v12 = vsel %vm655_vm7, %v648_v8, 920167782 }
  0xe9   :  { %9822 = vst [vmem:[#allocation9_spill] sm:$0xff] %v9821_v25  ;;  %v664_v10 = vsel %vm652_vm5, %v642_v60, %v645_v27  ;;  %vm653_vm9 = vcmp.lt.s32.totalorder %v633_v16, 2  ;;  %v656_v46 = vsel %vm652_vm5, %v636_v34, %v639_v56  ;;  %v662_v9 = vsel %vm654_vm6, %v645_v27, %v661_v12  ;;  %v85_v56 = vpop.permute.xlu0 %84 }
  0xea   :  { %v665_v41 = vsel %vm655_vm7, %v651_v11, 1326507024  ;;  %v6117_v31 = vmin.u32 %v789_v14, %v7273_v6  ;;  %v658_v35 = vsel %vm654_vm6, %v642_v60, %v657_v49  ;;  %v663_v61 = vsel %vm653_vm9, %v660_v52, %v662_v9 }
  0xeb   :  { %v666_v57 = vsel %vm654_vm6, %v648_v8, %v665_v41  ;;  %vm6103_vm10 = vcmp.lt.s32.totalorder %v6102_v13, 0  ;;  %v7286_v50 = vmul.u32.u64.low %v668_v21, %v663_v61  ;;  %v7287_v44 = vmul.u32.u64.high %v668_v21, %v663_v61, %v7286_v50 }
  0xec   :  { %v667_v47 = vsel %vm653_vm9, %v664_v10, %v666_v57  ;;  %v791_v42 = vclz %v6117_v31  ;;  %vm940_vm11 = vcmp.gt.s32.totalorder %v939_v36, 0  ;;  %6656 = vcosq.f32 %v7251_v2 }
  0xed   :  { %v7290_v23 = vmul.u32.u64.low %v668_v21, %v667_v47  ;;  %v7291_v55 = vmul.u32.u64.high %v668_v21, %v667_v47, %v7290_v23  ;;  %v602_v60 = vsel %vm9733_vm4, %v601_v24, %v7235_v4  ;;  %v659_v27 = vsel %vm653_vm9, %v656_v46, %v658_v35 }
  0xee   :  { %v941_v8 = vsel %vm940_vm11, %v939_v36, 0  ;;  %v7298_v11 = vsel %vm6103_vm10, 0, %v6102_v13  ;;  %v6118_v34 = vadd.s32 4294967294, %v791_v42  ;;  %v937_v52 = vor.u32 8388608, %v936_v53 }
  0xef   :  { %v943_v14 = vand.u32 31, %v941_v8  ;;  %6658 = vsinq.f32 %v7251_v2  ;;  %v292_v49 = vxor.u32 2147483648, %v7253_v22  ;;  %v678_v12 = vadd.s32 1, %v7287_v44 }
  0xf0   :  { %v7304_v10 = vmul.f32 %v6958_v26, %v85_v56  ;;  %vm6119_vm12 = vcmp.lt.s32.totalorder %v6118_v34, 0  ;;  %v675_v9 = vmul.u32 %v668_v21, %v659_v27  ;;  %vm677_vm13 = vc.u32 %v7291_v55, %v7286_v50 }
  0xf1   :  { %v944_v4 = vsub.s32 32, %v943_v14  ;;  %v7311_v24 = vsel %vm7278_vm8, %v6973_v38, %v602_v60  ;;  %v387_v2 = vsub.s32 4294967266, %v7298_v11  ;;  %v7314_v13 = vsel %vm6119_vm12, 0, %v6118_v34 }
  0xf2   :  { %9823 = vst [vmem:[#allocation10_spill] sm:$0xff] %v7304_v10  ;;  %v679_v16 = vsel %vm677_vm13, %v678_v12, %v7287_v44  ;;  %v779_v26 = vadd.s32 %v7206_v45, %v7219_v0  ;;  %v799_v21 = vsub.s32 4294967266, %v7314_v13  ;;  %v7320_v36 = vshll.u32 %v937_v52, 8 }
  0xf3   :  { %v680_v53 = vadd.s32 %v679_v16, %v675_v9  ;;  %v942_v46 = vshrl.u32 %v941_v8, 5  ;;  %v947_v41 = vshrl.u32 %v9655_v1, %v944_v4  ;;  %v950_v31 = vshrl.u32 %v9659_v3, %v944_v4 }
  0xf4   :  { %v829_v35 = vand.u32 2139095040, %v7304_v10  ;;  %v946_v57 = vshll.u32 %v9663_v63, %v943_v14  ;;  %v949_v47 = vshll.u32 %v9655_v1, %v943_v14  ;;  %v953_v44 = vshrl.u32 %v9657_v5, %v944_v4 }
  0xf5   :  { %v681_v61 = vadd.s32 536870912, %v680_v53  ;;  %v800_v45 = vadd.s32 127, %v799_v21  ;;  %v952_v0 = vshll.u32 %v9659_v3, %v943_v14  ;;  %v955_v42 = vshll.u32 %v9657_v5, %v943_v14 }
  0xf6   :  { %v956_v23 = vshrl.u32 %v9661_v7, %v944_v4  ;;  %v948_v60 = vor.u32 %v947_v41, %v946_v57  ;;  %v951_v27 = vor.u32 %v950_v31, %v949_v47  ;;  %v9654_v8 = vand.u32 2147483647, %v7304_v10 }
  0xf7   :  { %v7331_v56 = vshrl.u32 %v681_v61, 30  ;;  %vm9735_vm14 = vcmp.lt.s32.totalorder %v6964_v30, 0  ;;  %v954_v34 = vor.u32 %v953_v44, %v952_v0  ;;  %v958_v12 = vshll.u32 %v9661_v7, %v943_v14 }
  0xf8   :  { %v957_v52 = vor.u32 %v956_v23, %v955_v42  ;;  %v959_v9 = vshrl.u32 %v9652_v15, %v944_v4  ;;  %v795_v16 = vsub.s32 32, %v7314_v13  ;;  %v796_v21 = vshll.u32 %v7273_v6, %v7314_v13 }
  0xf9   :  { %9824 = vst [vmem:[#allocation11_spill] sm:$0xff] %v7331_v56  ;;  %v683_v61 = vshll.u32 %v7331_v56, 30  ;;  %v830_v33 = vshrl.u32 %v829_v35, 23  ;;  %v801_v41 = vshll.u32 %v800_v45, 23  ;;  %v945_v31 = vshrl.u32 %v9663_v63, %v944_v4  ;;  %v7342_v47 = vpop.eup %6656 }
  0xfa   :  { %v960_v57 = vor.u32 %v959_v9, %v958_v12  ;;  %vm961_vm15 = vcmp.lt.s32.totalorder %v942_v46, 1  ;;  %vm963_vm1 = vcmp.lt.s32.totalorder %v942_v46, 3  ;;  %vm964_vm2 = vcmp.lt.s32.totalorder %v942_v46, 4 }
  0xfb   :  { %v7344_v44 = vsub.s32 %v680_v53, %v683_v61  ;;  %v969_v14 = vsel %vm961_vm15, %v948_v60, %v951_v27  ;;  %v966_v0 = vsel %vm964_vm2, %v954_v34, 2102212464  ;;  %v970_v42 = vsel %vm964_vm2, %v957_v52, 920167782 }
  0xfc   :  { %v973_v6 = vsel %vm961_vm15, %v951_v27, %v954_v34  ;;  %v974_v13 = vsel %vm964_vm2, %v960_v57, 1326507024  ;;  %v7348_v23 = vpop.eup %6658  ;;  %v797_v35 = vshrl.u32 %v779_v26, %v795_v16  ;;  %vm962_vm5 = vcmp.lt.s32.totalorder %v942_v46, 2  ;;  %v100_v26 = vpop.permute.xlu1 %99 }
  0xfd   :  { %v686_v4 = vsub.s32 0, %v7344_v44  ;;  %v971_v45 = vsel %vm963_vm1, %v954_v34, %v970_v42  ;;  %v802_v12 = vor.u32 4788187, %v801_v41  ;;  %v975_v9 = vsel %vm963_vm1, %v957_v52, %v974_v13 }
  0xfe   :  { %v972_v53 = vsel %vm962_vm5, %v969_v14, %v971_v45  ;;  %v6120_v61 = vadd.s32 4294967169, %v830_v33  ;;  %v965_v40 = vsel %vm961_vm15, %v945_v31, %v948_v60  ;;  %v967_v57 = vsel %vm963_vm1, %v951_v27, %v966_v0  ;;  %v7381_v14 = vld [vmem:[%s9641_s1] ss:$0 sm:$0xff] }
  0xff   :  { %v6113_v43 = vmin.u32 %v686_v4, %v7344_v44  ;;  %v976_v59 = vsel %vm962_vm5, %v973_v6, %v975_v9  ;;  %v7363_v34 = vmul.u32.u64.low %v7320_v36, %v972_v53  ;;  %v7364_v41 = vmul.u32.u64.high %v7320_v36, %v972_v53, %v7363_v34 }
 0x100   :  { %v7359_v16 = vmul.u32.u64.low %v7320_v36, %v976_v59  ;;  %v7360_v15 = vmul.u32.u64.high %v7320_v36, %v976_v59, %v7359_v16  ;;  %v7372_v33 = vsel %vm9735_vm14, %v292_v49, %v7253_v22  ;;  %v367_v60 = vadd.s32 %v7143_v48, %v7150_v32 }
 0x101   :  { %v688_v27 = vclz %v6113_v43  ;;  %v836_v52 = vadd.s32 1, %v6120_v61  ;;  %6660 = vcosq.f32 %v7311_v24  ;;  %v798_v59 = vor.u32 %v797_v35, %v796_v21 }
 0x102   :  { %v968_v31 = vsel %vm962_vm5, %v965_v40, %v967_v57  ;;  %v7384_v0 = vmul.f32 %v7381_v14, %v100_v26  ;;  %v383_v22 = vsub.s32 32, %v7298_v11  ;;  %v7389_v48 = vadd.s32 127, %v387_v2 }
 0x103   :  { %v6114_v32 = vadd.s32 4294967294, %v688_v27  ;;  %vm837_vm6 = vcmp.gt.s32.totalorder %v836_v52, 0  ;;  %v803_v43 = vand.u32 2147483647, %v802_v12  ;;  %vm986_vm7 = vc.u32 %v7360_v15, %v7363_v34 }
 0x104   :  { %9825 = vst [vmem:[#allocation12_spill] sm:$0xff] %v7384_v0  ;;  %v987_v40 = vadd.s32 1, %v7364_v41  ;;  %v833_v49 = vand.u32 8388607, %v9654_v8  ;;  %6662 = vsinq.f32 %v7311_v24  ;;  %v984_v21 = vmul.u32 %v7320_v36, %v968_v31 }
 0x105   :  { %v838_v2 = vsel %vm837_vm6, %v836_v52, 0  ;;  %v805_v42 = vcvt.s32.f32 %v798_v59  ;;  %vm6115_vm9 = vcmp.lt.s32.totalorder %v6114_v32, 0  ;;  %v385_v35 = vshrl.u32 %v367_v60, %v383_v22 }
 0x106   :  { %v988_v6 = vsel %vm986_vm7, %v987_v40, %v7364_v41  ;;  %v840_v13 = vand.u32 31, %v838_v2  ;;  %v834_v24 = vor.u32 8388608, %v833_v49  ;;  %v1138_v61 = vand.u32 2139095040, %v7384_v0 }
 0x107   :  { %v989_v45 = vadd.s32 %v988_v6, %v984_v21  ;;  %v7403_v53 = vmul.f32 %v805_v42, %v803_v43  ;;  %v7406_v57 = vsel %vm6115_vm9, 0, %v6114_v32  ;;  %v839_v31 = vshrl.u32 %v838_v2, 5 }
 0x108   :  { %v841_v9 = vsub.s32 32, %v840_v13  ;;  %v843_v26 = vshll.u32 %v9663_v63, %v840_v13  ;;  %v846_v16 = vshll.u32 %v9655_v1, %v840_v13  ;;  %v849_v27 = vshll.u32 %v9659_v3, %v840_v13 }
 0x109   :  { %v990_v36 = vadd.s32 536870912, %v989_v45  ;;  %v852_v22 = vshll.u32 %v9657_v5, %v840_v13  ;;  %v807_v43 = vxor.u32 2147483648, %v7403_v53  ;;  %v874_v8 = vshll.u32 %v834_v24, 8 }
 0x10a   :  { %v844_v41 = vshrl.u32 %v9655_v1, %v841_v9  ;;  %v847_v60 = vshrl.u32 %v9659_v3, %v841_v9  ;;  %v850_v52 = vshrl.u32 %v9657_v5, %v841_v9  ;;  %v853_v32 = vshrl.u32 %v9661_v7, %v841_v9 }
 0x10b   :  { %v7414_v59 = vshrl.u32 %v990_v36, 30  ;;  %v1139_v1 = vshrl.u32 %v1138_v61, 23  ;;  %vm9701_vm10 = vcmp.lt.s32.totalorder %v7109_v54, 0  ;;  %v692_v36 = vsub.s32 32, %v7406_v57 }
 0x10c   :  { %v845_v40 = vor.u32 %v844_v41, %v843_v26  ;;  %v848_v49 = vor.u32 %v847_v60, %v846_v16  ;;  %v851_v21 = vor.u32 %v850_v52, %v849_v27  ;;  %v854_v6 = vor.u32 %v853_v32, %v852_v22 }
 0x10d   :  { %9826 = vst [vmem:[#allocation13_spill] sm:$0xff] %v7414_v59  ;;  %v992_v42 = vshll.u32 %v7414_v59, 30  ;;  %v696_v2 = vsub.s32 4294967266, %v7406_v57  ;;  %v855_v5 = vshll.u32 %v9661_v7, %v840_v13  ;;  %v9827_v3 = vmov 1326507024  }
 0x10e   :  { %v856_v12 = vshrl.u32 %v9827_v3, %v841_v9  ;;  %v7425_v4 = vpop.eup %6660  ;;  %vm858_vm11 = vcmp.lt.s32.totalorder %v839_v31, 1  ;;  %vm860_vm12 = vcmp.lt.s32.totalorder %v839_v31, 3  ;;  %vm861_vm13 = vcmp.lt.s32.totalorder %v839_v31, 4 }
 0x10f   :  { %9828 = vst [vmem:[#allocation14_spill] sm:$0xff] %v7425_v4  ;;  %v7427_v26 = vsub.s32 %v989_v45, %v992_v42  ;;  %v863_v24 = vsel %vm861_vm13, %v851_v21, 2102212464  ;;  %v866_v61 = vsel %vm858_vm11, %v845_v40, %v848_v49  ;;  %v867_v41 = vsel %vm861_vm13, %v854_v6, 920167782 }
 0x110   :  { %v857_v16 = vor.u32 %v856_v12, %v855_v5  ;;  %v842_v27 = vshrl.u32 %v9663_v63, %v841_v9  ;;  %vm859_vm15 = vcmp.lt.s32.totalorder %v839_v31, 2  ;;  %v868_v13 = vsel %vm860_vm12, %v851_v21, %v867_v41  ;;  %v95_v5 = vpop.permute.xlu0 %94 }
 0x111   :  { %v995_v60 = vsub.s32 0, %v7427_v26  ;;  %v7433_v52 = vpop.eup %6662  ;;  %v697_v22 = vadd.s32 127, %v696_v2  ;;  %v869_v45 = vsel %vm859_vm15, %v866_v61, %v868_v13  ;;  %v870_v32 = vsel %vm858_vm11, %v848_v49, %v851_v21 }
 0x112   :  { %9829 = vst [vmem:[#allocation15_spill] sm:$0xff] %v7433_v52  ;;  %v871_v42 = vsel %vm861_vm13, %v857_v16, 1326507024  ;;  %v862_v7 = vsel %vm858_vm11, %v842_v27, %v845_v40  ;;  %v864_v46 = vsel %vm860_vm12, %v848_v49, %v863_v24  ;;  %v6132_v2 = vadd.s32 4294967169, %v1139_v1 }
 0x113   :  { %v6125_v12 = vmin.u32 %v995_v60, %v7427_v26  ;;  %v872_v9 = vsel %vm860_vm12, %v854_v6, %v871_v42  ;;  %v7442_v41 = vmul.u32.u64.low %v874_v8, %v869_v45  ;;  %v7443_v59 = vmul.u32.u64.high %v874_v8, %v869_v45, %v7442_v41 }
 0x114   :  { %v873_v63 = vsel %vm859_vm15, %v870_v32, %v872_v9  ;;  %v7450_v16 = vmul.f32 %v7381_v14, %v95_v5  ;;  %v9831_v40 = vshll.u32 %v7194_v28, %v7298_v11  ;;  %v676_v6 = vadd.s32 %v7286_v50, %v7291_v55 }
 0x115   :  { %v997_v61 = vclz %v6125_v12  ;;  %v7446_v13 = vmul.u32.u64.low %v874_v8, %v873_v63  ;;  %v7447_v21 = vmul.u32.u64.high %v874_v8, %v873_v63, %v7446_v13  ;;  %v865_v24 = vsel %vm859_vm15, %v862_v7, %v864_v46 }
 0x116   :  { %9830 = vst [vmem:[#allocation16_spill] sm:$0xff] %v7450_v16  ;;  %v7455_v49 = vor.u32 %v385_v35, %v9831_v40  ;;  %v1145_v60 = vadd.s32 1, %v6132_v2  ;;  %v9832_v1 = vshll.u32 %v7389_v48, 23  ;;  %v7467_v63 = vsel %vm9701_vm10, %v807_v43, %v7403_v53 }
 0x117   :  { %v6126_v45 = vadd.s32 4294967294, %v997_v61  ;;  %v9833_v28 = vand.u32 2147483647, %v7384_v0  ;;  %v694_v35 = vshrl.u32 %v676_v6, %v692_v36  ;;  %v698_v32 = vshll.u32 %v697_v22, 23 }
 0x118   :  { %v7462_v27 = vor.u32 4788187, %v9832_v1  ;;  %v884_v55 = vadd.s32 1, %v7443_v59  ;;  %vm1146_vm1 = vcmp.gt.s32.totalorder %v1145_v60, 0  ;;  %v881_v7 = vmul.u32 %v874_v8, %v865_v24  ;;  %v110_v1 = vpop.permute.xlu1 %109 }
 0x119   :  { %v1142_v11 = vand.u32 8388607, %v9833_v28  ;;  %vm6127_vm2 = vcmp.lt.s32.totalorder %v6126_v45, 0  ;;  %vm883_vm5 = vc.u32 %v7447_v21, %v7442_v41  ;;  %v1147_v50 = vsel %vm1146_vm1, %v1145_v60, 0 }
 0x11a   :  { %v693_v48 = vshll.u32 %v7344_v44, %v7406_v57  ;;  %v7476_v46 = vsel %vm6127_vm2, 0, %v6126_v45  ;;  %v885_v53 = vsel %vm883_vm5, %v884_v55, %v7443_v59  ;;  %v1149_v31 = vand.u32 31, %v1147_v50 }
 0x11b   :  { %v985_v43 = vadd.s32 %v7363_v34, %v7360_v15  ;;  %v886_v36 = vadd.s32 %v885_v53, %v881_v7  ;;  %v1143_v22 = vor.u32 8388608, %v1142_v11  ;;  %v7484_v5 = vor.u32 4788187, %v698_v32 }
 0x11c   :  { %v7482_v8 = vor.u32 %v694_v35, %v693_v48  ;;  %v1001_v12 = vsub.s32 32, %v7476_v46  ;;  %v1150_v9 = vsub.s32 32, %v1149_v31  ;;  %v1005_v44 = vsub.s32 4294967266, %v7476_v46 }
 0x11d   :  { %v887_v57 = vadd.s32 536870912, %v886_v36  ;;  %v9834_v2 = vmov 683565275   ;;  %v9835_v61 = vmov 2475754826   ;;  %v1148_v28 = vshrl.u32 %v1147_v50, 5 }
 0x11e   :  { %v1152_v59 = vshll.u32 %v9834_v2, %v1149_v31  ;;  %v1155_v13 = vshll.u32 %v9835_v61, %v1149_v31  ;;  %v1153_v15 = vshrl.u32 %v9835_v61, %v1150_v9  ;;  %v9836_v34 = vmov 2131351028  }
 0x11f   :  { %v1156_v40 = vshrl.u32 %v9836_v34, %v1150_v9  ;;  %v1158_v6 = vshll.u32 %v9836_v34, %v1149_v31  ;;  %v9837_v24 = vmov 2102212464   ;;  %v7494_v45 = vshrl.u32 %v887_v57, 30 }
 0x120   :  { %v1159_v60 = vshrl.u32 %v9837_v24, %v1150_v9  ;;  %v1161_v11 = vshll.u32 %v9837_v24, %v1149_v31  ;;  %v9839_v35 = vmov 920167782   ;;  %v1154_v55 = vor.u32 %v1153_v15, %v1152_v59 }
 0x121   :  { %9838 = vst [vmem:[#allocation17_spill] sm:$0xff] %v7494_v45  ;;  %v1162_v32 = vshrl.u32 %v9839_v35, %v1150_v9  ;;  %v1157_v7 = vor.u32 %v1156_v40, %v1155_v13  ;;  %v1183_v53 = vshll.u32 %v1143_v22, 8  ;;  %v889_v42 = vshll.u32 %v7494_v45, 30 }
 0x122   :  { %v1160_v48 = vor.u32 %v1159_v60, %v1158_v6  ;;  %v1035_v56 = vand.u32 2139095040, %v7450_v16  ;;  %v7501_v4 = vmul.f32 %v7381_v14, %v110_v1  ;;  %v1003_v52 = vshrl.u32 %v985_v43, %v1001_v12 }
 0x123   :  { %v1163_v39 = vor.u32 %v1162_v32, %v1161_v11  ;;  %v1006_v57 = vadd.s32 127, %v1005_v44  ;;  %v1164_v50 = vshll.u32 %v9839_v35, %v1149_v31  ;;  %v1165_v25 = vshrl.u32 %v9827_v3, %v1150_v9 }
 0x124   :  { %9840 = vst [vmem:[#allocation18_spill] sm:$0xff] %v7501_v4  ;;  %v9841_v38 = vand.u32 2147483647, %v7109_v54  ;;  %v9842_v59 = vmov 0  ;;  %v7511_v22 = vsub.s32 %v886_v36, %v889_v42  ;;  %vm1167_vm7 = vcmp.lt.s32.totalorder %v1148_v28, 1 }
 0x125   :  { %vm1169_vm9 = vcmp.lt.s32.totalorder %v1148_v28, 3  ;;  %vm1170_vm11 = vcmp.lt.s32.totalorder %v1148_v28, 4  ;;  %v1166_v13 = vor.u32 %v1165_v25, %v1164_v50  ;;  %v1175_v43 = vsel %vm1167_vm7, %v1154_v55, %v1157_v7 }
 0x126   :  { %vm7507_vm6 = vcmp.le.f32.partialorder %v9841_v38, 0.7853982  ;;  %v1172_v15 = vsel %vm1170_vm11, %v1160_v48, 2102212464  ;;  %v1176_v12 = vsel %vm1170_vm11, %v1163_v39, 920167782  ;;  %v1151_v44 = vshrl.u32 %v9834_v2, %v1150_v9 }
 0x127   :  { %v9843_v59 = vsel %vm7507_vm6, 4294967295, %v9842_v59  ;;  %v892_v31 = vsub.s32 0, %v7511_v22  ;;  %vm1168_vm12 = vcmp.lt.s32.totalorder %v1148_v28, 2  ;;  %v1177_v38 = vsel %vm1169_vm9, %v1160_v48, %v1176_v12 }
 0x128   :  { %9844 = vst [vmem:[#allocation19_spill] sm:$0xff] %v9843_v59  ;;  %v1007_v40 = vshll.u32 %v1006_v57, 23  ;;  %v1178_v6 = vsel %vm1168_vm12, %v1175_v43, %v1177_v38  ;;  %v1179_v36 = vsel %vm1167_vm7, %v1157_v7, %v1160_v48  ;;  %v1180_v42 = vsel %vm1170_vm11, %v1166_v13, 1326507024 }
 0x129   :  { %v6121_v60 = vmin.u32 %v892_v31, %v7511_v22  ;;  %v1171_v25 = vsel %vm1167_vm7, %v1151_v44, %v1154_v55  ;;  %v1173_v1 = vsel %vm1169_vm9, %v1157_v7, %v1172_v15  ;;  %v1181_v11 = vsel %vm1169_vm9, %v1163_v39, %v1180_v42 }
 0x12a   :  { %v1182_v32 = vsel %vm1168_vm12, %v1179_v36, %v1181_v11  ;;  %v7524_v9 = vmul.u32.u64.low %v1183_v53, %v1178_v6  ;;  %v7525_v50 = vmul.u32.u64.high %v1183_v53, %v1178_v6, %v7524_v9  ;;  %v1036_v57 = vshrl.u32 %v1035_v56, 23 }
 0x12b   :  { %v700_v43 = vand.u32 2147483647, %v7484_v5  ;;  %v894_v12 = vclz %v6121_v60  ;;  %v7529_v48 = vmul.u32.u64.low %v1183_v53, %v1182_v32  ;;  %v7530_v13 = vmul.u32.u64.high %v1183_v53, %v1182_v32, %v7529_v48 }
 0x12c   :  { %v1002_v55 = vshll.u32 %v7427_v26, %v7476_v46  ;;  %v1008_v31 = vor.u32 4788187, %v1007_v40  ;;  %v1174_v7 = vsel %vm1168_vm12, %v1171_v25, %v1173_v1  ;;  %v6128_v39 = vadd.s32 4294967169, %v1036_v57 }
 0x12d   :  { %v702_v15 = vcvt.s32.f32 %v7482_v8  ;;  %v6122_v44 = vadd.s32 4294967294, %v894_v12  ;;  %v9845_v38 = vand.u32 2147483647, %v7450_v16  ;;  %v1344_v56 = vand.u32 2139095040, %v7501_v4 }
 0x12e   :  { %v7543_v5 = vsel %vm7507_vm6, %v7109_v54, %v7467_v63  ;;  %v1004_v36 = vor.u32 %v1003_v52, %v1002_v55  ;;  %v1193_v26 = vadd.s32 1, %v7525_v50  ;;  %v1042_v46 = vadd.s32 1, %v6128_v39 }
 0x12f   :  { %v1039_v6 = vand.u32 8388607, %v9845_v38  ;;  %v7546_v28 = vmul.f32 %v702_v15, %v700_v43  ;;  %vm6123_vm13 = vcmp.lt.s32.totalorder %v6122_v44, 0  ;;  %v1190_v8 = vmul.u32 %v1183_v53, %v1174_v7 }
 0x130   :  { %vm1192_vm15 = vc.u32 %v7530_v13, %v7524_v9  ;;  %v1009_v40 = vand.u32 2147483647, %v1008_v31  ;;  %v897_v42 = vsel %vm6123_vm13, 0, %v6122_v44  ;;  %vm1043_vm1 = vcmp.gt.s32.totalorder %v1042_v46, 0 }
 0x131   :  { %v1194_v60 = vsel %vm1192_vm15, %v1193_v26, %v7525_v50  ;;  %v902_v25 = vsub.s32 4294967266, %v897_v42  ;;  %v1040_v63 = vor.u32 8388608, %v1039_v6  ;;  %v1345_v11 = vshrl.u32 %v1344_v56, 23 }
 0x132   :  { %v1195_v1 = vadd.s32 %v1194_v60, %v1190_v8  ;;  %v1011_v52 = vcvt.s32.f32 %v1004_v36  ;;  %v898_v32 = vsub.s32 32, %v897_v42  ;;  %v1044_v57 = vsel %vm1043_vm1, %v1042_v46, 0 }
 0x133   :  { %v9676_v43 = vand.u32 2147483647, %v7501_v4  ;;  %6664 = vcosq.f32 %v7543_v5  ;;  %v903_v53 = vadd.s32 127, %v902_v25  ;;  %v882_v50 = vadd.s32 %v7442_v41, %v7447_v21 }
 0x134   :  { %v1196_v48 = vadd.s32 536870912, %v1195_v1  ;;  %v7555_v31 = vmul.f32 %v1011_v52, %v1009_v40  ;;  %v1046_v7 = vand.u32 31, %v1044_v57  ;;  %v899_v39 = vshll.u32 %v7511_v22, %v897_v42 }
 0x135   :  { %v7562_v44 = vshll.u32 %v1040_v63, 8  ;;  %v6140_v38 = vadd.s32 4294967169, %v1345_v11  ;;  %v900_v6 = vshrl.u32 %v882_v50, %v898_v32  ;;  %v1045_v56 = vshrl.u32 %v1044_v57, 5 }
 0x136   :  { %v7560_v15 = vshrl.u32 %v1196_v48, 30  ;;  %v1047_v36 = vsub.s32 32, %v1046_v7  ;;  %v7566_v26 = vand.u32 8388607, %v9676_v43  ;;  %v904_v46 = vshll.u32 %v903_v53, 23 }
 0x137   :  { %v1049_v41 = vshll.u32 %v9834_v2, %v1046_v7  ;;  %v1052_v21 = vshll.u32 %v9835_v61, %v1046_v7  ;;  %v1055_v42 = vshll.u32 %v9836_v34, %v1046_v7  ;;  %v1058_v63 = vshll.u32 %v9837_v24, %v1046_v7 }
 0x138   :  { %9846 = vst [vmem:[#allocation20_spill] sm:$0xff] %v7560_v15  ;;  %v1198_v8 = vshll.u32 %v7560_v15, 30  ;;  %v1050_v22 = vshrl.u32 %v9835_v61, %v1047_v36  ;;  %v1053_v40 = vshrl.u32 %v9836_v34, %v1047_v36  ;;  %v1056_v60 = vshrl.u32 %v9837_v24, %v1047_v36 }
 0x139   :  { %v1059_v11 = vshrl.u32 %v9839_v35, %v1047_v36  ;;  %v1061_v52 = vshll.u32 %v9839_v35, %v1046_v7  ;;  %v1062_v48 = vshrl.u32 %v9827_v3, %v1047_v36  ;;  %vm9716_vm2 = vcmp.lt.s32.totalorder %v7177_v19, 0 }
 0x13a   :  { %v7575_v25 = vsub.s32 %v1195_v1, %v1198_v8  ;;  %v1051_v32 = vor.u32 %v1050_v22, %v1049_v41  ;;  %v1054_v57 = vor.u32 %v1053_v40, %v1052_v21  ;;  %v1057_v53 = vor.u32 %v1056_v60, %v1055_v42 }
 0x13b   :  { %v901_v50 = vor.u32 %v900_v6, %v899_v39  ;;  %v1060_v43 = vor.u32 %v1059_v11, %v1058_v63  ;;  %v1351_v55 = vadd.s32 1, %v6140_v38  ;;  %v905_v1 = vor.u32 4788187, %v904_v46 }
 0x13c   :  { %v1201_v12 = vsub.s32 0, %v7575_v25  ;;  %v1063_v8 = vor.u32 %v1062_v48, %v1061_v52  ;;  %vm1064_vm5 = vcmp.lt.s32.totalorder %v1045_v56, 1  ;;  %vm1067_vm7 = vcmp.lt.s32.totalorder %v1045_v56, 4 }
 0x13d   :  { %v1048_v7 = vshrl.u32 %v9834_v2, %v1047_v36  ;;  %v1069_v41 = vsel %vm1067_vm7, %v1057_v53, 2102212464  ;;  %v1072_v21 = vsel %vm1064_vm5, %v1051_v32, %v1054_v57  ;;  %vm1066_vm9 = vcmp.lt.s32.totalorder %v1045_v56, 3 }
 0x13e   :  { %v6133_v15 = vmin.u32 %v1201_v12, %v7575_v25  ;;  %v1073_v22 = vsel %vm1067_vm7, %v1060_v43, 920167782  ;;  %v1076_v40 = vsel %vm1064_vm5, %v1054_v57, %v1057_v53  ;;  %v1077_v42 = vsel %vm1067_vm7, %v1063_v8, 1326507024 }
 0x13f   :  { %vm1065_vm11 = vcmp.lt.s32.totalorder %v1045_v56, 2  ;;  %v1074_v39 = vsel %vm1066_vm9, %v1057_v53, %v1073_v22  ;;  %v1349_v6 = vor.u32 8388608, %v7566_v26  ;;  %v1068_v46 = vsel %vm1064_vm5, %v1048_v7, %v1051_v32  ;;  %v105_v22 = vpop.permute.xlu0 %104 }
 0x140   :  { %v1203_v60 = vclz %v6133_v15  ;;  %v7586_v38 = vpop.eup %6664  ;;  %v1070_v63 = vsel %vm1066_vm9, %v1054_v57, %v1069_v41  ;;  %v1075_v11 = vsel %vm1065_vm11, %v1072_v21, %v1074_v39  ;;  %v1078_v12 = vsel %vm1066_vm9, %v1060_v43, %v1077_v42 }
 0x141   :  { %9847 = vst [vmem:[#allocation21_spill] sm:$0xff] %v7586_v38  ;;  %v906_v52 = vand.u32 2147483647, %v905_v1  ;;  %v1079_v48 = vsel %vm1065_vm11, %v1076_v40, %v1078_v12  ;;  %vm1352_vm12 = vcmp.gt.s32.totalorder %v1351_v55, 0  ;;  %v908_v45 = vcvt.s32.f32 %v901_v50 }
 0x142   :  { %v6134_v36 = vadd.s32 4294967294, %v1203_v60  ;;  %v7591_v8 = vmul.u32.u64.low %v7562_v44, %v1079_v48  ;;  %v7592_v15 = vmul.u32.u64.high %v7562_v44, %v1079_v48, %v7591_v8  ;;  %v1353_v53 = vsel %vm1352_vm12, %v1351_v55, 0 }
 0x143   :  { %v1071_v26 = vsel %vm1065_vm11, %v1068_v46, %v1070_v63  ;;  %v7596_v32 = vmul.u32.u64.low %v7562_v44, %v1075_v11  ;;  %v7597_v57 = vmul.u32.u64.high %v7562_v44, %v1075_v11, %v7596_v32  ;;  %v9848_v43 = vxor.u32 2147483648, %v7546_v28 }
 0x144   :  { %vm6135_vm13 = vcmp.lt.s32.totalorder %v6134_v36, 0  ;;  %v1355_v55 = vand.u32 31, %v1353_v53  ;;  %v7608_v41 = vmul.f32 %v908_v45, %v906_v52  ;;  %v1191_v56 = vadd.s32 %v7524_v9, %v7530_v13 }
 0x145   :  { %v7605_v50 = vsel %vm9716_vm2, %v9848_v43, %v7546_v28  ;;  %v1206_v7 = vsel %vm6135_vm13, 0, %v6134_v36  ;;  %v7613_v40 = vmul.f32 %v7381_v14, %v105_v22  ;;  %v1087_v60 = vmul.u32 %v7562_v44, %v1071_v26 }
 0x146   :  { %v1211_v21 = vsub.s32 4294967266, %v1206_v7  ;;  %v1207_v42 = vsub.s32 32, %v1206_v7  ;;  %vm1089_vm15 = vc.u32 %v7592_v15, %v7596_v32  ;;  %v1356_v28 = vsub.s32 32, %v1355_v55 }
 0x147   :  { %9849 = vst [vmem:[#allocation22_spill] sm:$0xff] %v7613_v40  ;;  %v1090_v46 = vadd.s32 1, %v7597_v57  ;;  %v1354_v63 = vshrl.u32 %v1353_v53, 5  ;;  %v7619_v45 = vshll.u32 %v1349_v6, 8  ;;  %v1358_v11 = vshll.u32 %v9834_v2, %v1355_v55 }
 0x148   :  { %v1212_v39 = vadd.s32 127, %v1211_v21  ;;  %v1359_v9 = vshrl.u32 %v9835_v61, %v1356_v28  ;;  %v1361_v13 = vshll.u32 %v9835_v61, %v1355_v55  ;;  %v1362_v12 = vshrl.u32 %v9836_v34, %v1356_v28 }
 0x149   :  { %v1091_v44 = vsel %vm1089_vm15, %v1090_v46, %v7597_v57  ;;  %v1364_v36 = vshll.u32 %v9836_v34, %v1355_v55  ;;  %v1365_v48 = vshrl.u32 %v9837_v24, %v1356_v28  ;;  %v9850_v8 = vand.u32 2147483647, %v7177_v19 }
 0x14a   :  { %v1213_v52 = vshll.u32 %v1212_v39, 23  ;;  %v9851_v6 = vmov 0  ;;  %v1208_v53 = vshll.u32 %v7575_v25, %v1206_v7  ;;  %v1209_v22 = vshrl.u32 %v1191_v56, %v1207_v42 }
 0x14b   :  { %vm7630_vm1 = vcmp.le.f32.partialorder %v9850_v8, 0.7853982  ;;  %v1092_v26 = vadd.s32 %v1091_v44, %v1087_v60  ;;  %v1360_v43 = vor.u32 %v1359_v9, %v1358_v11  ;;  %v1363_v21 = vor.u32 %v1362_v12, %v1361_v13 }
 0x14c   :  { %v9852_v6 = vsel %vm7630_vm1, 4294967295, %v9851_v6  ;;  %v1366_v1 = vor.u32 %v1365_v48, %v1364_v36  ;;  %v1367_v39 = vshll.u32 %v9837_v24, %v1355_v55  ;;  %v1368_v57 = vshrl.u32 %v9839_v35, %v1356_v28 }
 0x14d   :  { %9853 = vst [vmem:[#allocation23_spill] sm:$0xff] %v9852_v6  ;;  %vm9685_vm5 = vcmp.lt.s32.totalorder %v7212_v18, 0  ;;  %v1214_v46 = vor.u32 4788187, %v1213_v52  ;;  %v1093_v38 = vadd.s32 536870912, %v1092_v26  ;;  %v1370_v8 = vshll.u32 %v9839_v35, %v1355_v55 }
 0x14e   :  { %v1371_v59 = vshrl.u32 %v9827_v3, %v1356_v28  ;;  %v1357_v54 = vshrl.u32 %v9834_v2, %v1356_v28  ;;  %v1369_v25 = vor.u32 %v1368_v57, %v1367_v39  ;;  %vm1373_vm7 = vcmp.lt.s32.totalorder %v1354_v63, 1 }
 0x14f   :  { %vm1376_vm9 = vcmp.lt.s32.totalorder %v1354_v63, 4  ;;  %v1210_v7 = vor.u32 %v1209_v22, %v1208_v53  ;;  %v7641_v56 = vshrl.u32 %v1093_v38, 30  ;;  %v9855_v11 = vand.u32 2147483647, %v7212_v18 }
 0x150   :  { %v1372_v42 = vor.u32 %v1371_v59, %v1370_v8  ;;  %v1378_v60 = vsel %vm1376_vm9, %v1366_v1, 2102212464  ;;  %v9856_v9 = vmov 0  ;;  %vm1374_vm12 = vcmp.lt.s32.totalorder %v1354_v63, 2 }
 0x151   :  { %9854 = vst [vmem:[#allocation24_spill] sm:$0xff] %v7641_v56  ;;  %vm7646_vm11 = vcmp.le.f32.partialorder %v9855_v11, 0.7853982  ;;  %vm1375_vm13 = vcmp.lt.s32.totalorder %v1354_v63, 3  ;;  %v1381_v55 = vsel %vm1373_vm7, %v1360_v43, %v1363_v21  ;;  %v1382_v28 = vsel %vm1376_vm9, %v1369_v25, 920167782 }
 0x152   :  { %v9857_v9 = vsel %vm7646_vm11, 4294967295, %v9856_v9  ;;  %vm9698_vm15 = vcmp.lt.s32.totalorder %v7304_v10, 0  ;;  %v1215_v13 = vand.u32 2147483647, %v1214_v46  ;;  %v1095_v38 = vshll.u32 %v7641_v56, 30 }
 0x153   :  { %9858 = vst [vmem:[#allocation25_spill] sm:$0xff] %v9857_v9  ;;  %v1383_v59 = vsel %vm1375_vm13, %v1366_v1, %v1382_v28  ;;  %v1385_v12 = vsel %vm1373_vm7, %v1363_v21, %v1366_v1  ;;  %v1377_v52 = vsel %vm1373_vm7, %v1357_v54, %v1360_v43  ;;  %v1379_v44 = vsel %vm1375_vm13, %v1363_v21, %v1378_v60 }
 0x154   :  { %v1384_v36 = vsel %vm1374_vm12, %v1381_v55, %v1383_v59  ;;  %v1386_v48 = vsel %vm1376_vm9, %v1372_v42, 1326507024  ;;  %v7658_v53 = vsub.s32 %v1092_v26, %v1095_v38  ;;  %6666 = vsinq.f32 %v7543_v5 }
 0x155   :  { %v1387_v22 = vsel %vm1375_vm13, %v1369_v25, %v1386_v48  ;;  %v7661_v39 = vmul.u32.u64.low %v7619_v45, %v1384_v36  ;;  %v7662_v57 = vmul.u32.u64.high %v7619_v45, %v1384_v36, %v7661_v39  ;;  %v708_v54 = vsel %vm7630_vm1, %v7177_v19, %v7605_v50  ;;  %v120_v25 = vpop.permute.xlu1 %119 }
 0x156   :  { %v1388_v1 = vsel %vm1374_vm12, %v1385_v12, %v1387_v22  ;;  %v1241_v43 = vand.u32 2139095040, %v7613_v40  ;;  %v1217_v21 = vcvt.s32.f32 %v1210_v7  ;;  %v1098_v26 = vsub.s32 0, %v7658_v53 }
 0x157   :  { %v7674_v46 = vmul.u32.u64.low %v7619_v45, %v1388_v1  ;;  %v7675_v8 = vmul.u32.u64.high %v7619_v45, %v1388_v1, %v7674_v46  ;;  %v9859_v5 = vxor.u32 2147483648, %v7555_v31  ;;  %v910_v50 = vxor.u32 2147483648, %v7608_v41 }
 0x158   :  { %v1380_v60 = vsel %vm1374_vm12, %v1377_v52, %v1379_v44  ;;  %v1242_v11 = vshrl.u32 %v1241_v43, 23  ;;  %v1218_v55 = vmul.f32 %v1217_v21, %v1215_v13  ;;  %v6129_v7 = vmin.u32 %v1098_v26, %v7658_v53 }
 0x159   :  { %v1014_v42 = vsel %vm9685_vm5, %v9859_v5, %v7555_v31  ;;  %v1399_v28 = vadd.s32 1, %v7662_v57  ;;  %v9686_v38 = vand.u32 2147483647, %v7613_v40  ;;  %6668 = vcosq.f32 %v708_v54 }
 0x15a   :  { %v9860_v59 = vand.u32 2147483647, %v7304_v10  ;;  %v9861_v12 = vmov 0  ;;  %v6136_v31 = vadd.s32 4294967169, %v1242_v11  ;;  %v7694_v36 = vmul.f32 %v7381_v14, %v120_v25 }
 0x15b   :  { %v1017_v63 = vsel %vm7646_vm11, %v7212_v18, %v1014_v42  ;;  %v1100_v13 = vclz %v6129_v7  ;;  %v1396_v52 = vmul.u32 %v7619_v45, %v1380_v60  ;;  %vm1398_vm9 = vc.u32 %v7675_v8, %v7661_v39 }
 0x15c   :  { %vm7689_vm7 = vcmp.le.f32.partialorder %v9860_v59, 0.7853982  ;;  %9864 = vst [vmem:[#allocation27_spill] sm:$0xff] %v7694_v36  ;;  %6670 = vsinq.f32 %v708_v54  ;;  %v911_v44 = vsel %vm9698_vm15, %v910_v50, %v7608_v41  ;;  %v1400_v48 = vsel %vm1398_vm9, %v1399_v28, %v7662_v57 }
 0x15d   :  { %v9862_v12 = vsel %vm7689_vm7, 4294967295, %v9861_v12  ;;  %v1248_v22 = vadd.s32 1, %v6136_v31  ;;  %v1219_v1 = vxor.u32 2147483648, %v1218_v55  ;;  %v6130_v43 = vadd.s32 4294967294, %v1100_v13 }
 0x15e   :  { %9863 = vst [vmem:[#allocation26_spill] sm:$0xff] %v9862_v12  ;;  %v1401_v21 = vadd.s32 %v1400_v48, %v1396_v52  ;;  %v1245_v26 = vand.u32 8388607, %v9686_v38  ;;  %6672 = vcosq.f32 %v1017_v63  ;;  %vm9697_vm12 = vcmp.lt.s32.totalorder %v7384_v0, 0 }
 0x15f   :  { %vm1249_vm13 = vcmp.gt.s32.totalorder %v1248_v22, 0  ;;  %v1550_v45 = vand.u32 2139095040, %v7694_v36  ;;  %6674 = vsinq.f32 %v1017_v63  ;;  %vm6131_vm5 = vcmp.lt.s32.totalorder %v6130_v43, 0 }
 0x160   :  { %v1402_v54 = vadd.s32 536870912, %v1401_v21  ;;  %v1250_v46 = vsel %vm1249_vm13, %v1248_v22, 0  ;;  %v7713_v41 = vsel %vm7689_vm7, %v7304_v10, %v911_v44  ;;  %v1088_v57 = vadd.s32 %v7596_v32, %v7592_v15 }
 0x161   :  { %v7717_v25 = vsel %vm6131_vm5, 0, %v6130_v43  ;;  %v1252_v5 = vand.u32 31, %v1250_v46  ;;  %v7721_v42 = vsel %vm9697_vm12, %v1219_v1, %v1218_v55  ;;  %v1246_v11 = vor.u32 8388608, %v1245_v26  ;;  %v7728_v63 = vpop.eup %6666 }
 0x162   :  { %v1108_v50 = vsub.s32 4294967266, %v7717_v25  ;;  %v7724_v60 = vshrl.u32 %v1402_v54, 30  ;;  %v1104_v7 = vsub.s32 32, %v7717_v25  ;;  %v1551_v31 = vshrl.u32 %v1550_v45, 23  ;;  %9866 = vst [vmem:[#allocation29_spill] sm:$0xff] %v7728_v63 }
 0x163   :  { %v1253_v28 = vsub.s32 32, %v1252_v5  ;;  %v1255_v32 = vshll.u32 %v9834_v2, %v1252_v5  ;;  %v1258_v55 = vshll.u32 %v9835_v61, %v1252_v5  ;;  %v1261_v13 = vshll.u32 %v9836_v34, %v1252_v5 }
 0x164   :  { %9865 = vst [vmem:[#allocation28_spill] sm:$0xff] %v7724_v60  ;;  %v1404_v15 = vshll.u32 %v7724_v60, 30  ;;  %v1109_v52 = vadd.s32 127, %v1108_v50  ;;  %v1251_v43 = vshrl.u32 %v1250_v46, 5  ;;  %v1264_v26 = vshll.u32 %v9837_v24, %v1252_v5 }
 0x165   :  { %v1256_v44 = vshrl.u32 %v9835_v61, %v1253_v28  ;;  %v1259_v48 = vshrl.u32 %v9836_v34, %v1253_v28  ;;  %v1262_v22 = vshrl.u32 %v9837_v24, %v1253_v28  ;;  %v1265_v45 = vshrl.u32 %v9839_v35, %v1253_v28 }
 0x166   :  { %v7737_v1 = vsub.s32 %v1401_v21, %v1404_v15  ;;  %v7741_v60 = vshll.u32 %v1246_v11, 8  ;;  %v7743_v56 = vpop.eup %6668  ;;  %v1105_v50 = vshll.u32 %v7658_v53, %v7717_v25  ;;  %v6148_v21 = vadd.s32 4294967169, %v1551_v31 }
 0x167   :  { %v1257_v54 = vor.u32 %v1256_v44, %v1255_v32  ;;  %v1260_v38 = vor.u32 %v1259_v48, %v1258_v55  ;;  %v1263_v59 = vor.u32 %v1262_v22, %v1261_v13  ;;  %9867 = vst [vmem:[#allocation30_spill] sm:$0xff] %v7743_v56  ;;  %v1266_v18 = vor.u32 %v1265_v45, %v1264_v26 }
 0x168   :  { %v1407_v9 = vsub.s32 0, %v7737_v1  ;;  %v1106_v15 = vshrl.u32 %v1088_v57, %v1104_v7  ;;  %v1110_v46 = vshll.u32 %v1109_v52, 23  ;;  %v1267_v12 = vshll.u32 %v9839_v35, %v1252_v5 }
 0x169   :  { %v1268_v10 = vshrl.u32 %v9827_v3, %v1253_v28  ;;  %v7750_v32 = vpop.eup %6670  ;;  %v9869_v11 = vand.u32 2147483647, %v7384_v0  ;;  %v9870_v55 = vmov 0  ;;  %vm1270_vm9 = vcmp.lt.s32.totalorder %v1251_v43, 1 }
 0x16a   :  { %9868 = vst [vmem:[#allocation31_spill] sm:$0xff] %v7750_v32  ;;  %v6141_v53 = vmin.u32 %v1407_v9, %v7737_v1  ;;  %vm1272_vm13 = vcmp.lt.s32.totalorder %v1251_v43, 3  ;;  %vm1273_vm12 = vcmp.lt.s32.totalorder %v1251_v43, 4  ;;  %v1278_v7 = vsel %vm1270_vm9, %v1257_v54, %v1260_v38 }
 0x16b   :  { %vm7754_vm5 = vcmp.le.f32.partialorder %v9869_v11, 0.7853982  ;;  %v1269_v25 = vor.u32 %v1268_v10, %v1267_v12  ;;  %v1275_v57 = vsel %vm1273_vm12, %v1263_v59, 2102212464  ;;  %v1279_v5 = vsel %vm1273_vm12, %v1266_v18, 920167782  ;;  %v7760_v31 = vpop.eup %6672 }
 0x16c   :  { %v9871_v55 = vsel %vm7754_vm5, 4294967295, %v9870_v55  ;;  %9873 = vst [vmem:[#allocation33_spill] sm:$0xff] %v7760_v31  ;;  %v1409_v13 = vclz %v6141_v53  ;;  %v1254_v52 = vshrl.u32 %v9834_v2, %v1253_v28  ;;  %vm1271_vm15 = vcmp.lt.s32.totalorder %v1251_v43, 2  ;;  %v7764_v48 = vpop.eup %6674  ;;  %v115_v31 = vpop.permute.xlu0 %114 }
 0x16d   :  { %9872 = vst [vmem:[#allocation32_spill] sm:$0xff] %v9871_v55  ;;  %v1280_v44 = vsel %vm1272_vm13, %v1263_v59, %v1279_v5  ;;  %9874 = vst [vmem:[#allocation34_spill] sm:$0xff] %v7764_v48  ;;  %v1111_v22 = vor.u32 4788187, %v1110_v46  ;;  %v1282_v26 = vsel %vm1270_vm9, %v1260_v38, %v1263_v59  ;;  %v1283_v10 = vsel %vm1273_vm12, %v1269_v25, 1326507024 }
 0x16e   :  { %v1281_v9 = vsel %vm1271_vm15, %v1278_v7, %v1280_v44  ;;  %v6142_v12 = vadd.s32 4294967294, %v1409_v13  ;;  %v1274_v45 = vsel %vm1270_vm9, %v1254_v52, %v1257_v54  ;;  %v1276_v11 = vsel %vm1272_vm13, %v1260_v38, %v1275_v57 }
 0x16f   :  { %v1284_v53 = vsel %vm1272_vm13, %v1266_v18, %v1283_v10  ;;  %v7773_v5 = vmul.u32.u64.low %v7741_v60, %v1281_v9  ;;  %v7774_v63 = vmul.u32.u64.high %v7741_v60, %v1281_v9, %v7773_v5  ;;  %v1557_v46 = vadd.s32 1, %v6148_v21 }
 0x170   :  { %v1285_v28 = vsel %vm1271_vm15, %v1282_v26, %v1284_v53  ;;  %v1107_v7 = vor.u32 %v1106_v15, %v1105_v50  ;;  %vm6143_vm10 = vcmp.lt.s32.totalorder %v6142_v12, 0  ;;  %v1277_v38 = vsel %vm1271_vm15, %v1274_v45, %v1276_v11 }
 0x171   :  { %v7778_v59 = vmul.u32.u64.low %v7741_v60, %v1285_v28  ;;  %v7779_v25 = vmul.u32.u64.high %v7741_v60, %v1285_v28, %v7778_v59  ;;  %v1412_v54 = vsel %vm6143_vm10, 0, %v6142_v12  ;;  %vm1558_vm12 = vcmp.gt.s32.totalorder %v1557_v46, 0 }
 0x172   :  { %v7783_v18 = vmul.f32 %v7381_v14, %v115_v31  ;;  %6676 = vcosq.f32 %v7713_v41  ;;  %v1112_v57 = vand.u32 2147483647, %v1111_v22  ;;  %v1417_v13 = vsub.s32 4294967266, %v1412_v54 }
 0x173   :  { %v9876_v52 = vand.u32 2147483647, %v7694_v36  ;;  %v7792_v50 = vsel %vm7754_vm5, %v7384_v0, %v7721_v42  ;;  %v1413_v15 = vsub.s32 32, %v1412_v54  ;;  %v1296_v43 = vadd.s32 1, %v7774_v63 }
 0x174   :  { %9875 = vst [vmem:[#allocation35_spill] sm:$0xff] %v7783_v18  ;;  %v1559_v44 = vsel %vm1558_vm12, %v1557_v46, 0  ;;  %v1114_v9 = vcvt.s32.f32 %v1107_v7  ;;  %v1418_v14 = vadd.s32 127, %v1417_v13  ;;  %v1293_v31 = vmul.u32 %v7741_v60, %v1277_v38 }
 0x175   :  { %v1554_v21 = vand.u32 8388607, %v9876_v52  ;;  %vm1295_vm10 = vc.u32 %v7779_v25, %v7773_v5  ;;  %v1397_v22 = vadd.s32 %v7661_v39, %v7675_v8  ;;  %v1561_v10 = vand.u32 31, %v1559_v44 }
 0x176   :  { %v1297_v26 = vsel %vm1295_vm10, %v1296_v43, %v7774_v63  ;;  %v1115_v12 = vmul.f32 %v1114_v9, %v1112_v57  ;;  %v1447_v53 = vand.u32 2139095040, %v7783_v18  ;;  %v1414_v28 = vshll.u32 %v7737_v1, %v1412_v54 }
 0x177   :  { %v1298_v45 = vadd.s32 %v1297_v26, %v1293_v31  ;;  %v1555_v11 = vor.u32 8388608, %v1554_v21  ;;  %v1415_v46 = vshrl.u32 %v1397_v22, %v1413_v15  ;;  %v1560_v60 = vshrl.u32 %v1559_v44, 5 }
 0x178   :  { %v1562_v7 = vsub.s32 32, %v1561_v10  ;;  %v1419_v59 = vshll.u32 %v1418_v14, 23  ;;  %v1564_v13 = vshll.u32 %v9834_v2, %v1561_v10  ;;  %v1567_v39 = vshll.u32 %v9835_v61, %v1561_v10 }
 0x179   :  { %v1299_v38 = vadd.s32 536870912, %v1298_v45  ;;  %v1570_v57 = vshll.u32 %v9836_v34, %v1561_v10  ;;  %v1573_v1 = vshll.u32 %v9837_v24, %v1561_v10  ;;  %v1576_v15 = vshll.u32 %v9839_v35, %v1561_v10 }
 0x17a   :  { %v1565_v8 = vshrl.u32 %v9835_v61, %v1562_v7  ;;  %v1568_v63 = vshrl.u32 %v9836_v34, %v1562_v7  ;;  %v1571_v52 = vshrl.u32 %v9837_v24, %v1562_v7  ;;  %v1574_v54 = vshrl.u32 %v9839_v35, %v1562_v7 }
 0x17b   :  { %v7810_v21 = vshrl.u32 %v1299_v38, 30  ;;  %vm9715_vm15 = vcmp.lt.s32.totalorder %v7450_v16, 0  ;;  %v1577_v14 = vshrl.u32 %v9827_v3, %v1562_v7  ;;  %v1116_v31 = vxor.u32 2147483648, %v1115_v12 }
 0x17c   :  { %v1566_v43 = vor.u32 %v1565_v8, %v1564_v13  ;;  %v1569_v44 = vor.u32 %v1568_v63, %v1567_v39  ;;  %v1572_v9 = vor.u32 %v1571_v52, %v1570_v57  ;;  %v1575_v26 = vor.u32 %v1574_v54, %v1573_v1 }
 0x17d   :  { %9877 = vst [vmem:[#allocation36_spill] sm:$0xff] %v7810_v21  ;;  %v1301_v22 = vshll.u32 %v7810_v21, 30  ;;  %v1595_v42 = vshll.u32 %v1555_v11, 8  ;;  %v1416_v38 = vor.u32 %v1415_v46, %v1414_v28  ;;  %v1420_v55 = vor.u32 4788187, %v1419_v59 }
 0x17e   :  { %v1578_v0 = vor.u32 %v1577_v14, %v1576_v15  ;;  %v1448_v48 = vshrl.u32 %v1447_v53, 23  ;;  %v1563_v10 = vshrl.u32 %v9834_v2, %v1562_v7  ;;  %vm1579_vm9 = vcmp.lt.s32.totalorder %v1560_v60, 1 }
 0x17f   :  { %v7818_v56 = vsub.s32 %v1298_v45, %v1301_v22  ;;  %vm1582_vm13 = vcmp.lt.s32.totalorder %v1560_v60, 4  ;;  %v7821_v13 = vpop.eup %6676  ;;  %vm1581_vm12 = vcmp.lt.s32.totalorder %v1560_v60, 3  ;;  %v1587_v8 = vsel %vm1579_vm9, %v1566_v43, %v1569_v44 }
 0x180   :  { %9878 = vst [vmem:[#allocation37_spill] sm:$0xff] %v7821_v13  ;;  %v1584_v39 = vsel %vm1582_vm13, %v1572_v9, 2102212464  ;;  %v1588_v63 = vsel %vm1582_vm13, %v1575_v26, 920167782  ;;  %vm1580_vm10 = vcmp.lt.s32.totalorder %v1560_v60, 2  ;;  %v1591_v28 = vsel %vm1579_vm9, %v1569_v44, %v1572_v9 }
 0x181   :  { %v1304_v57 = vsub.s32 0, %v7818_v56  ;;  %v1589_v11 = vsel %vm1581_vm12, %v1572_v9, %v1588_v63  ;;  %v1421_v46 = vand.u32 2147483647, %v1420_v55  ;;  %v1583_v59 = vsel %vm1579_vm9, %v1563_v10, %v1566_v43 }
 0x182   :  { %v1590_v45 = vsel %vm1580_vm10, %v1587_v8, %v1589_v11  ;;  %v1592_v53 = vsel %vm1582_vm13, %v1578_v0, 1326507024  ;;  %v1585_v52 = vsel %vm1581_vm12, %v1569_v44, %v1584_v39  ;;  %v6144_v54 = vadd.s32 4294967169, %v1448_v48  ;;  %v130_v11 = vpop.permute.xlu1 %129 }
 0x183   :  { %v6137_v7 = vmin.u32 %v1304_v57, %v7818_v56  ;;  %v1593_v1 = vsel %vm1581_vm12, %v1575_v26, %v1592_v53  ;;  %v1423_v15 = vcvt.s32.f32 %v1416_v38  ;;  %v1117_v9 = vsel %vm9715_vm15, %v1116_v31, %v1115_v12 }
 0x184   :  { %v1594_v14 = vsel %vm1580_vm10, %v1591_v28, %v1593_v1  ;;  %v7827_v22 = vmul.u32.u64.low %v1595_v42, %v1590_v45  ;;  %v7828_v21 = vmul.u32.u64.high %v1595_v42, %v1590_v45, %v7827_v22  ;;  %6678 = vsinq.f32 %v7713_v41 }
 0x185   :  { %v1306_v55 = vclz %v6137_v7  ;;  %v7833_v43 = vmul.u32.u64.low %v1595_v42, %v1594_v14  ;;  %v7834_v10 = vmul.u32.u64.high %v1595_v42, %v1594_v14, %v7833_v43  ;;  %v7837_v0 = vmul.f32 %v1423_v15, %v1421_v46 }
 0x186   :  { %v1586_v48 = vsel %vm1580_vm10, %v1583_v59, %v1585_v52  ;;  %v1454_v44 = vadd.s32 1, %v6144_v54  ;;  %6680 = vcosq.f32 %v7792_v50  ;;  %v9879_v26 = vand.u32 2147483647, %v7450_v16 }
 0x187   :  { %v9880_v38 = vmov 0  ;;  %v6138_v12 = vadd.s32 4294967294, %v1306_v55  ;;  %v9883_v31 = vand.u32 2147483647, %v7783_v18  ;;  %v1294_v60 = vadd.s32 %v7773_v5, %v7779_v25 }
 0x188   :  { %vm7843_vm9 = vcmp.le.f32.partialorder %v9879_v26, 0.7853982  ;;  %v1605_v8 = vadd.s32 1, %v7828_v21  ;;  %vm1455_vm13 = vcmp.gt.s32.totalorder %v1454_v44, 0  ;;  %v1602_v63 = vmul.u32 %v1595_v42, %v1586_v48  ;;  %v7865_v42 = vld [vmem:[%s9641_s1] ss:$0 sm:$0xff] }
 0x189   :  { %v9881_v38 = vsel %vm7843_vm9, 4294967295, %v9880_v38  ;;  %v1451_v39 = vand.u32 8388607, %v9883_v31  ;;  %v7852_v41 = vsel %vm7843_vm9, %v7450_v16, %v1117_v9  ;;  %vm6139_vm12 = vcmp.lt.s32.totalorder %v6138_v12, 0 }
 0x18a   :  { %9882 = vst [vmem:[#allocation38_spill] sm:$0xff] %v9881_v38  ;;  %vm1604_vm10 = vc.u32 %v7834_v10, %v7827_v22  ;;  %v1456_v57 = vsel %vm1455_vm13, %v1454_v44, 0  ;;  %v1425_v28 = vxor.u32 2147483648, %v7837_v0  ;;  %v1309_v46 = vsel %vm6139_vm12, 0, %v6138_v12 }
 0x18b   :  { %v1606_v59 = vsel %vm1604_vm10, %v1605_v8, %v7828_v21  ;;  %v1458_v45 = vand.u32 31, %v1456_v57  ;;  %v1310_v53 = vsub.s32 32, %v1309_v46  ;;  %v1314_v7 = vsub.s32 4294967266, %v1309_v46 }
 0x18c   :  { %v1607_v52 = vadd.s32 %v1606_v59, %v1602_v63  ;;  %v1452_v5 = vor.u32 8388608, %v1451_v39  ;;  %v1457_v25 = vshrl.u32 %v1456_v57, 5  ;;  %v7868_v15 = vmul.f32 %v7865_v42, %v130_v11 }
 0x18d   :  { %v1459_v1 = vsub.s32 32, %v1458_v45  ;;  %v1461_v54 = vshll.u32 %v9834_v2, %v1458_v45  ;;  %v1315_v14 = vadd.s32 127, %v1314_v7  ;;  %v1464_v21 = vshll.u32 %v9835_v61, %v1458_v45 }
 0x18e   :  { %9884 = vst [vmem:[#allocation39_spill] sm:$0xff] %v7868_v15  ;;  %v1608_v9 = vadd.s32 536870912, %v1607_v52  ;;  %v1467_v55 = vshll.u32 %v9836_v34, %v1458_v45  ;;  %v1312_v43 = vshrl.u32 %v1294_v60, %v1310_v53  ;;  %vm9729_vm13 = vcmp.lt.s32.totalorder %v7501_v4, 0 }
 0x18f   :  { %v1462_v48 = vshrl.u32 %v9835_v61, %v1459_v1  ;;  %v1465_v44 = vshrl.u32 %v9836_v34, %v1459_v1  ;;  %v1468_v26 = vshrl.u32 %v9837_v24, %v1459_v1  ;;  %v1316_v12 = vshll.u32 %v1315_v14, 23 }
 0x190   :  { %v7876_v31 = vshrl.u32 %v1608_v9, 30  ;;  %v1470_v39 = vshll.u32 %v9837_v24, %v1458_v45  ;;  %v1471_v8 = vshrl.u32 %v9839_v35, %v1459_v1  ;;  %v1311_v63 = vshll.u32 %v7818_v56, %v1309_v46 }
 0x191   :  { %v1463_v57 = vor.u32 %v1462_v48, %v1461_v54  ;;  %v1466_v11 = vor.u32 %v1465_v44, %v1464_v21  ;;  %v1469_v60 = vor.u32 %v1468_v26, %v1467_v55  ;;  %v1317_v59 = vor.u32 4788187, %v1316_v12  ;;  %v7885_v32 = vpop.eup %6678 }
 0x192   :  { %9885 = vst [vmem:[#allocation40_spill] sm:$0xff] %v7876_v31  ;;  %v1610_v53 = vshll.u32 %v7876_v31, 30  ;;  %v1472_v7 = vor.u32 %v1471_v8, %v1470_v39  ;;  %v1492_v38 = vshll.u32 %v1452_v5, 8  ;;  %v1313_v16 = vor.u32 %v1312_v43, %v1311_v63  ;;  %v125_v63 = vpop.permute.xlu0 %124 }
 0x193   :  { %v1460_v13 = vshrl.u32 %v9834_v2, %v1459_v1  ;;  %v1473_v14 = vshll.u32 %v9839_v35, %v1458_v45  ;;  %v1474_v9 = vshrl.u32 %v9827_v3, %v1459_v1  ;;  %vm1476_vm12 = vcmp.lt.s32.totalorder %v1457_v25, 1  ;;  %v7889_v56 = vpop.eup %6680 }
 0x194   :  { %v7887_v6 = vsub.s32 %v1607_v52, %v1610_v53  ;;  %vm1478_vm10 = vcmp.lt.s32.totalorder %v1457_v25, 3  ;;  %vm1479_vm15 = vcmp.lt.s32.totalorder %v1457_v25, 4  ;;  %9886 = vst [vmem:[#allocation41_spill] sm:$0xff] %v7889_v56  ;;  %v1484_v5 = vsel %vm1476_vm12, %v1463_v57, %v1466_v11 }
 0x195   :  { %v1475_v46 = vor.u32 %v1474_v9, %v1473_v14  ;;  %v1481_v54 = vsel %vm1479_vm15, %v1469_v60, 2102212464  ;;  %v1485_v21 = vsel %vm1479_vm15, %v1472_v7, 920167782  ;;  %v1318_v55 = vand.u32 2147483647, %v1317_v59 }
 0x196   :  { %v1613_v43 = vsub.s32 0, %v7887_v6  ;;  %vm1477_vm2 = vcmp.lt.s32.totalorder %v1457_v25, 2  ;;  %v1486_v45 = vsel %vm1478_vm10, %v1469_v60, %v1485_v21  ;;  %v1320_v1 = vcvt.s32.f32 %v1313_v16 }
 0x197   :  { %v1487_v52 = vsel %vm1477_vm2, %v1484_v5, %v1486_v45  ;;  %v1488_v48 = vsel %vm1476_vm12, %v1466_v11, %v1469_v60  ;;  %v1489_v44 = vsel %vm1479_vm15, %v1475_v46, 1326507024  ;;  %v1480_v12 = vsel %vm1476_vm12, %v1460_v13, %v1463_v57 }
 0x198   :  { %v6149_v26 = vmin.u32 %v1613_v43, %v7887_v6  ;;  %v1482_v39 = vsel %vm1478_vm10, %v1466_v11, %v1481_v54  ;;  %v1490_v8 = vsel %vm1478_vm10, %v1472_v7, %v1489_v44  ;;  %v1426_v59 = vsel %vm9729_vm13, %v1425_v28, %v7837_v0 }
 0x199   :  { %v1491_v16 = vsel %vm1477_vm2, %v1488_v48, %v1490_v8  ;;  %v7904_v53 = vmul.u32.u64.low %v1492_v38, %v1487_v52  ;;  %v7905_v14 = vmul.u32.u64.high %v1492_v38, %v1487_v52, %v7904_v53  ;;  %v1321_v60 = vmul.f32 %v1320_v1, %v1318_v55 }
 0x19a   :  { %v1615_v9 = vclz %v6149_v26  ;;  %v7908_v46 = vmul.u32.u64.low %v1492_v38, %v1491_v16  ;;  %v7909_v5 = vmul.u32.u64.high %v1492_v38, %v1491_v16, %v7908_v46  ;;  %6682 = vsinq.f32 %v7792_v50 }
 0x19b   :  { %v1483_v13 = vsel %vm1477_vm2, %v1480_v12, %v1482_v39  ;;  %v1756_v57 = vand.u32 2139095040, %v7868_v15  ;;  %v7915_v11 = vmul.f32 %v7865_v42, %v125_v63  ;;  %v391_v0 = vand.u32 2147483647, %v7462_v27 }
 0x19c   :  { %6684 = vcosq.f32 %v7852_v41  ;;  %v9888_v28 = vand.u32 2147483647, %v7501_v4  ;;  %v9889_v7 = vmov 0  ;;  %v6150_v54 = vadd.s32 4294967294, %v1615_v9  ;;  %v135_v9 = vpop.permute.xlu0 %134 }
 0x19d   :  { %9887 = vst [vmem:[#allocation42_spill] sm:$0xff] %v7915_v11  ;;  %v1502_v25 = vadd.s32 1, %v7905_v14  ;;  %v9718_v21 = vand.u32 2147483647, %v7868_v15  ;;  %v1757_v55 = vshrl.u32 %v1756_v57, 23  ;;  %v1322_v43 = vxor.u32 2147483648, %v1321_v60 }
 0x19e   :  { %vm7921_vm15 = vcmp.le.f32.partialorder %v9888_v28, 0.7853982  ;;  %vm6151_vm2 = vcmp.lt.s32.totalorder %v6150_v54, 0  ;;  %v1499_v27 = vmul.u32 %v1492_v38, %v1483_v13  ;;  %vm1501_vm12 = vc.u32 %v7909_v5, %v7904_v53 }
 0x19f   :  { %v9890_v7 = vsel %vm7921_vm15, 4294967295, %v9889_v7  ;;  %v1429_v50 = vsel %vm7921_vm15, %v7501_v4, %v1426_v59  ;;  %v1618_v45 = vsel %vm6151_vm2, 0, %v6150_v54  ;;  %v1503_v1 = vsel %vm1501_vm12, %v1502_v25, %v7905_v14  ;;  %v140_v59 = vpop.permute.xlu1 %139 }
 0x1a0   :  { %9891 = vst [vmem:[#allocation43_spill] sm:$0xff] %v9890_v7  ;;  %v6156_v52 = vadd.s32 4294967169, %v1757_v55  ;;  %v1653_v48 = vand.u32 2139095040, %v7915_v11  ;;  %v9892_v44 = vcvt.s32.f32 %v7455_v49  ;;  %6686 = vsinq.f32 %v7852_v41 }
 0x1a1   :  { %v1623_v12 = vsub.s32 4294967266, %v1618_v45  ;;  %v1504_v39 = vadd.s32 %v1503_v1, %v1499_v27  ;;  %6688 = vcosq.f32 %v1429_v50  ;;  %v9893_v38 = vand.u32 2147483647, %v7613_v40 }
 0x1a2   :  { %v7936_v26 = vmul.f32 %v9892_v44, %v391_v0  ;;  %v9894_v8 = vmov 0  ;;  %vm9732_vm2 = vcmp.lt.s32.totalorder %v7613_v40, 0  ;;  %v1763_v63 = vadd.s32 1, %v6156_v52 }
 0x1a3   :  { %vm7941_vm10 = vcmp.le.f32.partialorder %v9893_v38, 0.7853982  ;;  %v1323_v49 = vsel %vm9732_vm2, %v1322_v43, %v1321_v60  ;;  %v1505_v16 = vadd.s32 536870912, %v1504_v39  ;;  %v1760_v41 = vand.u32 8388607, %v9718_v21 }
 0x1a4   :  { %v9895_v8 = vsel %vm7941_vm10, 4294967295, %v9894_v8  ;;  %v9717_v14 = vand.u32 2147483647, %v7915_v11  ;;  %v1619_v46 = vsub.s32 32, %v1618_v45  ;;  %v1624_v13 = vadd.s32 127, %v1623_v12 }
 0x1a5   :  { %9896 = vst [vmem:[#allocation44_spill] sm:$0xff] %v9895_v8  ;;  %vm1764_vm12 = vcmp.gt.s32.totalorder %v1763_v63, 0  ;;  %v1654_v57 = vshrl.u32 %v1653_v48, 23  ;;  %6690 = vsinq.f32 %v1429_v50  ;;  %v7951_v0 = vshrl.u32 %v1505_v16, 30 }
 0x1a6   :  { %v1765_v28 = vsel %vm1764_vm12, %v1763_v63, 0  ;;  %v7954_v54 = vmul.f32 %v7865_v42, %v140_v59  ;;  %v7959_v60 = vsel %vm7941_vm10, %v7613_v40, %v1323_v49  ;;  %v1603_v25 = vadd.s32 %v7827_v22, %v7834_v10 }
 0x1a7   :  { %9897 = vst [vmem:[#allocation45_spill] sm:$0xff] %v7951_v0  ;;  %v1767_v55 = vand.u32 31, %v1765_v28  ;;  %v7964_v43 = vmul.f32 %v7865_v42, %v135_v9  ;;  %v1620_v50 = vshll.u32 %v7887_v6, %v1618_v45  ;;  %v1507_v27 = vshll.u32 %v7951_v0, 30  ;;  %v7972_v63 = vpop.eup %6682 }
 0x1a8   :  { %9898 = vst [vmem:[#allocation46_spill] sm:$0xff] %v7954_v54  ;;  %v1761_v1 = vor.u32 8388608, %v1760_v41  ;;  %v7970_v52 = vand.u32 8388607, %v9717_v14  ;;  %v1621_v48 = vshrl.u32 %v1603_v25, %v1619_v46  ;;  %v1625_v44 = vshll.u32 %v1624_v13, 23  ;;  %9900 = vst [vmem:[#allocation48_spill] sm:$0xff] %v7972_v63 }
 0x1a9   :  { %9899 = vst [vmem:[#allocation47_spill] sm:$0xff] %v7964_v43  ;;  %v1768_v12 = vsub.s32 32, %v1767_v55  ;;  %v6152_v38 = vadd.s32 4294967169, %v1654_v57  ;;  %v7974_v22 = vsub.s32 %v1504_v39, %v1507_v27  ;;  %v1766_v10 = vshrl.u32 %v1765_v28, 5  ;;  %v7978_v45 = vpop.eup %6684 }
 0x1aa   :  { %v1770_v59 = vshll.u32 %v9834_v2, %v1767_v55  ;;  %v1773_v6 = vshll.u32 %v9835_v61, %v1767_v55  ;;  %9901 = vst [vmem:[#allocation49_spill] sm:$0xff] %v7978_v45  ;;  %v1776_v41 = vshll.u32 %v9836_v34, %v1767_v55  ;;  %v1779_v39 = vshll.u32 %v9837_v24, %v1767_v55 }
 0x1ab   :  { %v1771_v49 = vshrl.u32 %v9835_v61, %v1768_v12  ;;  %v1774_v16 = vshrl.u32 %v9836_v34, %v1768_v12  ;;  %v1777_v9 = vshrl.u32 %v9837_v24, %v1768_v12  ;;  %v1510_v46 = vsub.s32 0, %v7974_v22 }
 0x1ac   :  { %v1780_v13 = vshrl.u32 %v9839_v35, %v1768_v12  ;;  %v1783_v57 = vshrl.u32 %v9827_v3, %v1768_v12  ;;  %v1782_v14 = vshll.u32 %v9839_v35, %v1767_v55  ;;  %v1801_v7 = vshll.u32 %v1761_v1, 8 }
 0x1ad   :  { %v1772_v28 = vor.u32 %v1771_v49, %v1770_v59  ;;  %v1775_v25 = vor.u32 %v1774_v16, %v1773_v6  ;;  %v1778_v27 = vor.u32 %v1777_v9, %v1776_v41  ;;  %v6145_v21 = vmin.u32 %v1510_v46, %v7974_v22  ;;  %v7991_v4 = vpop.eup %6686 }
 0x1ae   :  { %v1781_v31 = vor.u32 %v1780_v13, %v1779_v39  ;;  %v1658_v0 = vor.u32 8388608, %v7970_v52  ;;  %v1622_v8 = vor.u32 %v1621_v48, %v1620_v50  ;;  %v1784_v40 = vor.u32 %v1783_v57, %v1782_v14  ;;  %v7993_v56 = vpop.eup %6688 }
 0x1af   :  { %vm1785_vm12 = vcmp.lt.s32.totalorder %v1766_v10, 1  ;;  %vm1788_vm13 = vcmp.lt.s32.totalorder %v1766_v10, 4  ;;  %9902 = vst [vmem:[#allocation50_spill] sm:$0xff] %v7993_v56  ;;  %v1512_v63 = vclz %v6145_v21  ;;  %v1660_v55 = vadd.s32 1, %v6152_v38 }
 0x1b0   :  { %v1790_v59 = vsel %vm1788_vm13, %v1778_v27, 2102212464  ;;  %v1793_v6 = vsel %vm1785_vm12, %v1772_v28, %v1775_v25  ;;  %v1626_v49 = vor.u32 4788187, %v1625_v44  ;;  %v1769_v16 = vshrl.u32 %v9834_v2, %v1768_v12 }
 0x1b1   :  { %vm1787_vm2 = vcmp.lt.s32.totalorder %v1766_v10, 3  ;;  %v1794_v1 = vsel %vm1788_vm13, %v1781_v31, 920167782  ;;  %v6146_v52 = vadd.s32 4294967294, %v1512_v63  ;;  %vm1786_vm4 = vcmp.lt.s32.totalorder %v1766_v10, 2 }
 0x1b2   :  { %v1795_v50 = vsel %vm1787_vm2, %v1778_v27, %v1794_v1  ;;  %v1797_v14 = vsel %vm1785_vm12, %v1775_v25, %v1778_v27  ;;  %v8000_v48 = vpop.eup %6690  ;;  %v1789_v21 = vsel %vm1785_vm12, %v1769_v16, %v1772_v28  ;;  %v1791_v41 = vsel %vm1787_vm2, %v1775_v25, %v1790_v59 }
 0x1b3   :  { %9903 = vst [vmem:[#allocation51_spill] sm:$0xff] %v8000_v48  ;;  %v1796_v9 = vsel %vm1786_vm4, %v1793_v6, %v1795_v50  ;;  %v1798_v38 = vsel %vm1788_vm13, %v1784_v40, 1326507024  ;;  %vm6147_vm0 = vcmp.lt.s32.totalorder %v6146_v52, 0  ;;  %v1627_v63 = vand.u32 2147483647, %v1626_v49 }
 0x1b4   :  { %v1799_v44 = vsel %vm1787_vm2, %v1781_v31, %v1798_v38  ;;  %v8005_v12 = vmul.u32.u64.low %v1801_v7, %v1796_v9  ;;  %v8006_v46 = vmul.u32.u64.high %v1801_v7, %v1796_v9, %v8005_v12  ;;  %v8009_v39 = vsel %vm6147_vm0, 0, %v6146_v52 }
 0x1b5   :  { %v1800_v13 = vsel %vm1786_vm4, %v1797_v14, %v1799_v44  ;;  %vm1661_vm14 = vcmp.gt.s32.totalorder %v1660_v55, 0  ;;  %v1520_v57 = vsub.s32 4294967266, %v8009_v39  ;;  %v1792_v28 = vsel %vm1786_vm4, %v1789_v21, %v1791_v41 }
 0x1b6   :  { %v1662_v25 = vsel %vm1661_vm14, %v1660_v55, 0  ;;  %v1962_v27 = vand.u32 2139095040, %v7954_v54  ;;  %v1629_v40 = vcvt.s32.f32 %v1622_v8  ;;  %v1500_v49 = vadd.s32 %v7904_v53, %v7909_v5 }
 0x1b7   :  { %v8015_v59 = vmul.u32.u64.low %v1801_v7, %v1800_v13  ;;  %v8016_v31 = vmul.u32.u64.high %v1801_v7, %v1800_v13, %v8015_v59  ;;  %v1664_v6 = vand.u32 31, %v1662_v25  ;;  %v1521_v16 = vadd.s32 127, %v1520_v57 }
 0x1b8   :  { %v1811_v1 = vadd.s32 1, %v8006_v46  ;;  %v8022_v50 = vmul.f32 %v1629_v40, %v1627_v63  ;;  %v1808_v10 = vmul.u32 %v1801_v7, %v1792_v28  ;;  %v8024_v55 = vshll.u32 %v1658_v0, 8 }
 0x1b9   :  { %v1665_v14 = vsub.s32 32, %v1664_v6  ;;  %v1516_v8 = vsub.s32 32, %v8009_v39  ;;  %v1663_v21 = vshrl.u32 %v1662_v25, 5  ;;  %v1667_v41 = vshll.u32 %v9834_v2, %v1664_v6 }
 0x1ba   :  { %v1963_v9 = vshrl.u32 %v1962_v27, 23  ;;  %vm1810_vm0 = vc.u32 %v8016_v31, %v8005_v12  ;;  %v1670_v5 = vshll.u32 %v9835_v61, %v1664_v6  ;;  %v1673_v38 = vshll.u32 %v9836_v34, %v1664_v6 }
 0x1bb   :  { %v1668_v53 = vshrl.u32 %v9835_v61, %v1665_v14  ;;  %v1522_v44 = vshll.u32 %v1521_v16, 23  ;;  %v1812_v7 = vsel %vm1810_vm0, %v1811_v1, %v8006_v46  ;;  %v1671_v0 = vshrl.u32 %v9836_v34, %v1665_v14 }
 0x1bc   :  { %v1676_v63 = vshll.u32 %v9837_v24, %v1664_v6  ;;  %v1813_v13 = vadd.s32 %v1812_v7, %v1808_v10  ;;  %v1674_v28 = vshrl.u32 %v9837_v24, %v1665_v14  ;;  %v1677_v25 = vshrl.u32 %v9839_v35, %v1665_v14 }
 0x1bd   :  { %v1669_v57 = vor.u32 %v1668_v53, %v1667_v41  ;;  %v1517_v27 = vshll.u32 %v7974_v22, %v8009_v39  ;;  %v1672_v40 = vor.u32 %v1671_v0, %v1670_v5  ;;  %v1679_v59 = vshll.u32 %v9839_v35, %v1664_v6 }
 0x1be   :  { %v1680_v16 = vshrl.u32 %v9827_v3, %v1665_v14  ;;  %v1518_v52 = vshrl.u32 %v1500_v49, %v1516_v8  ;;  %v1814_v46 = vadd.s32 536870912, %v1813_v13  ;;  %v1675_v1 = vor.u32 %v1674_v28, %v1673_v38 }
 0x1bf   :  { %v1678_v56 = vor.u32 %v1677_v25, %v1676_v63  ;;  %vm9740_vm4 = vcmp.lt.s32.totalorder %v7694_v36, 0  ;;  %v1666_v10 = vshrl.u32 %v9834_v2, %v1665_v14  ;;  %vm1682_vm14 = vcmp.lt.s32.totalorder %v1663_v21, 1 }
 0x1c0   :  { %v1681_v41 = vor.u32 %v1680_v16, %v1679_v59  ;;  %v6164_v53 = vadd.s32 4294967169, %v1963_v9  ;;  %v1523_v7 = vor.u32 4788187, %v1522_v44  ;;  %v8044_v48 = vshrl.u32 %v1814_v46, 30 }
 0x1c1   :  { %vm1685_vm13 = vcmp.lt.s32.totalorder %v1663_v21, 4  ;;  %v1690_v22 = vsel %vm1682_vm14, %v1669_v57, %v1672_v40  ;;  %vm1684_vm2 = vcmp.lt.s32.totalorder %v1663_v21, 3  ;;  %v1694_v49 = vsel %vm1682_vm14, %v1672_v40, %v1675_v1 }
 0x1c2   :  { %9904 = vst [vmem:[#allocation52_spill] sm:$0xff] %v8044_v48  ;;  %v1687_v39 = vsel %vm1685_vm13, %v1675_v1, 2102212464  ;;  %v1691_v6 = vsel %vm1685_vm13, %v1678_v56, 920167782  ;;  %v1816_v8 = vshll.u32 %v8044_v48, 30  ;;  %v1519_v0 = vor.u32 %v1518_v52, %v1517_v27 }
 0x1c3   :  { %vm1683_vm12 = vcmp.lt.s32.totalorder %v1663_v21, 2  ;;  %v1692_v5 = vsel %vm1684_vm2, %v1675_v1, %v1691_v6  ;;  %v1695_v38 = vsel %vm1685_vm13, %v1681_v41, 1326507024  ;;  %v1631_v14 = vxor.u32 2147483648, %v8022_v50 }
 0x1c4   :  { %v1693_v9 = vsel %vm1683_vm12, %v1690_v22, %v1692_v5  ;;  %v1696_v44 = vsel %vm1684_vm2, %v1678_v56, %v1695_v38  ;;  %v8051_v63 = vsub.s32 %v1813_v13, %v1816_v8  ;;  %v1686_v28 = vsel %vm1682_vm14, %v1666_v10, %v1669_v57 }
 0x1c5   :  { %v1688_v25 = vsel %vm1684_vm2, %v1672_v40, %v1687_v39  ;;  %v1697_v59 = vsel %vm1683_vm12, %v1694_v49, %v1696_v44  ;;  %v1524_v16 = vand.u32 2147483647, %v1523_v7  ;;  %v1969_v1 = vadd.s32 1, %v6164_v53 }
 0x1c6   :  { %v8056_v46 = vmul.u32.u64.low %v8024_v55, %v1697_v59  ;;  %v8057_v48 = vmul.u32.u64.high %v8024_v55, %v1697_v59, %v8056_v46  ;;  %v1819_v41 = vsub.s32 0, %v8051_v63  ;;  %v9905_v56 = vand.u32 2147483647, %v7954_v54 }
 0x1c7   :  { %v8061_v52 = vmul.u32.u64.low %v8024_v55, %v1693_v9  ;;  %v8062_v27 = vmul.u32.u64.high %v8024_v55, %v1693_v9, %v8061_v52  ;;  %6692 = vcosq.f32 %v7959_v60  ;;  %v1526_v57 = vcvt.s32.f32 %v1519_v0 }
 0x1c8   :  { %v1966_v13 = vand.u32 8388607, %v9905_v56  ;;  %v1689_v40 = vsel %vm1683_vm12, %v1686_v28, %v1688_v25  ;;  %vm1970_vm0 = vcmp.gt.s32.totalorder %v1969_v1, 0  ;;  %6694 = vsinq.f32 %v7959_v60 }
 0x1c9   :  { %v8073_v10 = vsel %vm9740_vm4, %v1631_v14, %v8022_v50  ;;  %v6157_v53 = vmin.u32 %v1819_v41, %v8051_v63  ;;  %v1971_v7 = vsel %vm1970_vm0, %v1969_v1, 0  ;;  %v8076_v22 = vmul.f32 %v1526_v57, %v1524_v16 }
 0x1ca   :  { %v1809_v39 = vadd.s32 %v8005_v12, %v8016_v31  ;;  %vm1707_vm14 = vc.u32 %v8057_v48, %v8061_v52  ;;  %v1973_v21 = vand.u32 31, %v1971_v7  ;;  %v1705_v60 = vmul.u32 %v8024_v55, %v1689_v40 }
 0x1cb   :  { %v1821_v6 = vclz %v6157_v53  ;;  %v1708_v49 = vadd.s32 1, %v8062_v27  ;;  %v1967_v8 = vor.u32 8388608, %v1966_v13  ;;  %v8084_v50 = vshrl.u32 %v1971_v7, 5 }
 0x1cc   :  { %v1974_v5 = vsub.s32 32, %v1973_v21  ;;  %v1976_v38 = vshll.u32 %v9834_v2, %v1973_v21  ;;  %v9741_v14 = vand.u32 2147483647, %v7964_v43  ;;  %v1979_v31 = vshll.u32 %v9835_v61, %v1973_v21 }
 0x1cd   :  { %v6158_v0 = vadd.s32 4294967294, %v1821_v6  ;;  %v1709_v12 = vsel %vm1707_vm14, %v1708_v49, %v8062_v27  ;;  %v1982_v9 = vshll.u32 %v9836_v34, %v1973_v21  ;;  %v1985_v25 = vshll.u32 %v9837_v24, %v1973_v21 }
 0x1ce   :  { %v1710_v44 = vadd.s32 %v1709_v12, %v1705_v60  ;;  %v1977_v55 = vshrl.u32 %v9835_v61, %v1974_v5  ;;  %v1980_v28 = vshrl.u32 %v9836_v34, %v1974_v5  ;;  %v1983_v59 = vshrl.u32 %v9837_v24, %v1974_v5 }
 0x1cf   :  { %vm6159_vm13 = vcmp.lt.s32.totalorder %v6158_v0, 0  ;;  %v1986_v16 = vshrl.u32 %v9839_v35, %v1974_v5  ;;  %v1989_v46 = vshrl.u32 %v9827_v3, %v1974_v5  ;;  %v9906_v13 = vand.u32 2147483647, %v7694_v36 }
 0x1d0   :  { %v1824_v1 = vsel %vm6159_vm13, 0, %v6158_v0  ;;  %v1711_v41 = vadd.s32 536870912, %v1710_v44  ;;  %v1978_v27 = vor.u32 %v1977_v55, %v1976_v38  ;;  %v1981_v56 = vor.u32 %v1980_v28, %v1979_v31 }
 0x1d1   :  { %vm8099_vm2 = vcmp.le.f32.partialorder %v9906_v13, 0.7853982  ;;  %v9907_v57 = vmov 0  ;;  %v1825_v40 = vsub.s32 32, %v1824_v1  ;;  %v1829_v53 = vsub.s32 4294967266, %v1824_v1 }
 0x1d2   :  { %v9908_v57 = vsel %vm8099_vm2, 4294967295, %v9907_v57  ;;  %v8103_v7 = vshll.u32 %v1967_v8, 8  ;;  %v1859_v6 = vand.u32 2139095040, %v7964_v43  ;;  %v8106_v60 = vshrl.u32 %v1711_v41, 30 }
 0x1d3   :  { %9909 = vst [vmem:[#allocation53_spill] sm:$0xff] %v9908_v57  ;;  %v1984_v49 = vor.u32 %v1983_v59, %v1982_v9  ;;  %v1987_v12 = vor.u32 %v1986_v16, %v1985_v25  ;;  %v1988_v0 = vshll.u32 %v9839_v35, %v1973_v21  ;;  %v1826_v38 = vshll.u32 %v8051_v63, %v1824_v1 }
 0x1d4   :  { %9910 = vst [vmem:[#allocation54_spill] sm:$0xff] %v8106_v60  ;;  %v1830_v31 = vadd.s32 127, %v1829_v53  ;;  %v1975_v55 = vshrl.u32 %v9834_v2, %v1974_v5  ;;  %vm1991_vm12 = vcmp.lt.s32.totalorder %v8084_v50, 1  ;;  %v1713_v28 = vshll.u32 %v8106_v60, 30  ;;  %v8116_v41 = vpop.eup %6692 }
 0x1d5   :  { %v1990_v13 = vor.u32 %v1989_v46, %v1988_v0  ;;  %vm1994_vm0 = vcmp.lt.s32.totalorder %v8084_v50, 4  ;;  %v1999_v8 = vsel %vm1991_vm12, %v1978_v27, %v1981_v56  ;;  %9911 = vst [vmem:[#allocation55_spill] sm:$0xff] %v8116_v41  ;;  %vm9742_vm14 = vcmp.lt.s32.totalorder %v7783_v18, 0  ;;  %v8122_v5 = vpop.eup %6694 }
 0x1d6   :  { %v1827_v21 = vshrl.u32 %v1809_v39, %v1825_v40  ;;  %v1831_v9 = vshll.u32 %v1830_v31, 23  ;;  %vm1993_vm13 = vcmp.lt.s32.totalorder %v8084_v50, 3  ;;  %v2000_v63 = vsel %vm1994_vm0, %v1987_v12, 920167782  ;;  %9912 = vst [vmem:[#allocation56_spill] sm:$0xff] %v8122_v5 }
 0x1d7   :  { %v8124_v25 = vsub.s32 %v1710_v44, %v1713_v28  ;;  %vm1992_vm4 = vcmp.lt.s32.totalorder %v8084_v50, 2  ;;  %v1996_v59 = vsel %vm1994_vm0, %v1984_v49, 2102212464  ;;  %v2001_v16 = vsel %vm1993_vm13, %v1984_v49, %v2000_v63 }
 0x1d8   :  { %v1832_v46 = vor.u32 4788187, %v1831_v9  ;;  %v1995_v39 = vsel %vm1991_vm12, %v1975_v55, %v1978_v27  ;;  %v2002_v1 = vsel %vm1992_vm4, %v1999_v8, %v2001_v16  ;;  %v2003_v40 = vsel %vm1991_vm12, %v1981_v56, %v1984_v49 }
 0x1d9   :  { %v1716_v44 = vsub.s32 0, %v8124_v25  ;;  %v2004_v53 = vsel %vm1994_vm0, %v1990_v13, 1326507024  ;;  %v8141_v0 = vmul.u32.u64.low %v8103_v7, %v2002_v1  ;;  %v8142_v31 = vmul.u32.u64.high %v8103_v7, %v2002_v1, %v8141_v0 }
 0x1da   :  { %v1828_v28 = vor.u32 %v1827_v21, %v1826_v38  ;;  %v1997_v27 = vsel %vm1993_vm13, %v1981_v56, %v1996_v59  ;;  %v2005_v55 = vsel %vm1993_vm13, %v1987_v12, %v2004_v53  ;;  %v1860_v8 = vshrl.u32 %v1859_v6, 23  ;;  %v150_v12 = vpop.permute.xlu1 %149 }
 0x1db   :  { %v1635_v49 = vsel %vm8099_vm2, %v7694_v36, %v8073_v10  ;;  %v1528_v13 = vxor.u32 2147483648, %v8076_v22  ;;  %v6153_v9 = vmin.u32 %v1716_v44, %v8124_v25  ;;  %v2006_v63 = vsel %vm1992_vm4, %v2003_v40, %v2005_v55 }
 0x1dc   :  { %v1833_v38 = vand.u32 2147483647, %v1832_v46  ;;  %v8158_v21 = vmul.u32.u64.low %v8103_v7, %v2006_v63  ;;  %v8159_v56 = vmul.u32.u64.high %v8103_v7, %v2006_v63, %v8158_v21  ;;  %v6160_v59 = vadd.s32 4294967169, %v1860_v8 }
 0x1dd   :  { %v1718_v6 = vclz %v6153_v9  ;;  %v1998_v16 = vsel %vm1992_vm4, %v1995_v39, %v1997_v27  ;;  %v2017_v10 = vadd.s32 1, %v8142_v31  ;;  %v1863_v1 = vand.u32 8388607, %v9741_v14 }
 0x1de   :  { %6696 = vcosq.f32 %v1635_v49  ;;  %v9913_v44 = vand.u32 2147483647, %v7783_v18  ;;  %v9914_v46 = vmov 0  ;;  %v1835_v40 = vcvt.s32.f32 %v1828_v28 }
 0x1df   :  { %v1866_v53 = vadd.s32 1, %v6160_v59  ;;  %6698 = vsinq.f32 %v1635_v49  ;;  %v1529_v50 = vsel %vm9742_vm14, %v1528_v13, %v8076_v22  ;;  %v6154_v39 = vadd.s32 4294967294, %v1718_v6 }
 0x1e0   :  { %vm8168_vm12 = vcmp.le.f32.partialorder %v9913_v44, 0.7853982  ;;  %v8176_v27 = vmul.f32 %v7865_v42, %v150_v12  ;;  %v8178_v55 = vmul.f32 %v1835_v40, %v1833_v38  ;;  %v2014_v8 = vmul.u32 %v8103_v7, %v1998_v16 }
 0x1e1   :  { %v9915_v46 = vsel %vm8168_vm12, 4294967295, %v9914_v46  ;;  %vm2016_vm4 = vc.u32 %v8159_v56, %v8141_v0  ;;  %vm1867_vm0 = vcmp.gt.s32.totalorder %v1866_v53, 0  ;;  %vm6155_vm13 = vcmp.lt.s32.totalorder %v6154_v39, 0 }
 0x1e2   :  { %9916 = vst [vmem:[#allocation57_spill] sm:$0xff] %v9915_v46  ;;  %9917 = vst [vmem:[#allocation58_spill] sm:$0xff] %v8176_v27  ;;  %v2018_v28 = vsel %vm2016_vm4, %v2017_v10, %v8142_v31  ;;  %v1864_v49 = vor.u32 8388608, %v1863_v1  ;;  %v1868_v9 = vsel %vm1867_vm0, %v1866_v53, 0  ;;  %v8187_v22 = vsel %vm8168_vm12, %v7783_v18, %v1529_v50 }
 0x1e3   :  { %v1721_v13 = vsel %vm6155_vm13, 0, %v6154_v39  ;;  %v2019_v63 = vadd.s32 %v2018_v28, %v2014_v8  ;;  %v8189_v38 = vshrl.u32 %v1868_v9, 5  ;;  %v1706_v7 = vadd.s32 %v8061_v52, %v8057_v48 }
 0x1e4   :  { %v1722_v21 = vsub.s32 32, %v1721_v13  ;;  %v1726_v59 = vsub.s32 4294967266, %v1721_v13  ;;  %v1870_v16 = vand.u32 31, %v1868_v9  ;;  %v2168_v10 = vand.u32 2139095040, %v8176_v27 }
 0x1e5   :  { %v2020_v6 = vadd.s32 536870912, %v2019_v63  ;;  %v1723_v1 = vshll.u32 %v8124_v25, %v1721_v13  ;;  %vm1888_vm4 = vcmp.lt.s32.totalorder %v8189_v38, 1  ;;  %v8198_v40 = vshll.u32 %v1864_v49, 8 }
 0x1e6   :  { %v1727_v44 = vadd.s32 127, %v1726_v59  ;;  %v1724_v53 = vshrl.u32 %v1706_v7, %v1722_v21  ;;  %v1871_v48 = vsub.s32 32, %v1870_v16  ;;  %v1873_v39 = vshll.u32 %v9834_v2, %v1870_v16 }
 0x1e7   :  { %v8200_v50 = vshrl.u32 %v2020_v6, 30  ;;  %v1876_v8 = vshll.u32 %v9835_v61, %v1870_v16  ;;  %vm1890_vm13 = vcmp.lt.s32.totalorder %v8189_v38, 3  ;;  %v1879_v9 = vshll.u32 %v9836_v34, %v1870_v16 }
 0x1e8   :  { %v1728_v52 = vshll.u32 %v1727_v44, 23  ;;  %v1874_v28 = vshrl.u32 %v9835_v61, %v1871_v48  ;;  %v1877_v49 = vshrl.u32 %v9836_v34, %v1871_v48  ;;  %v1880_v7 = vshrl.u32 %v9837_v24, %v1871_v48 }
 0x1e9   :  { %9918 = vst [vmem:[#allocation59_spill] sm:$0xff] %v8200_v50  ;;  %v2022_v25 = vshll.u32 %v8200_v50, 30  ;;  %v1882_v21 = vshll.u32 %v9837_v24, %v1870_v16  ;;  %v1883_v59 = vshrl.u32 %v9839_v35, %v1871_v48  ;;  %v1725_v6 = vor.u32 %v1724_v53, %v1723_v1 }
 0x1ea   :  { %v1729_v13 = vor.u32 4788187, %v1728_v52  ;;  %v1875_v14 = vor.u32 %v1874_v28, %v1873_v39  ;;  %v1878_v31 = vor.u32 %v1877_v49, %v1876_v8  ;;  %v1881_v50 = vor.u32 %v1880_v7, %v1879_v9 }
 0x1eb   :  { %v8213_v44 = vsub.s32 %v2019_v63, %v2022_v25  ;;  %v8215_v12 = vpop.eup %6696  ;;  %v1884_v60 = vor.u32 %v1883_v59, %v1882_v21  ;;  %v1885_v57 = vshll.u32 %v9839_v35, %v1870_v16  ;;  %v1886_v52 = vshrl.u32 %v9827_v3, %v1871_v48 }
 0x1ec   :  { %9919 = vst [vmem:[#allocation60_spill] sm:$0xff] %v8215_v12  ;;  %v8220_v36 = vpop.eup %6698  ;;  %v1872_v1 = vshrl.u32 %v9834_v2, %v1871_v48  ;;  %vm1891_vm0 = vcmp.lt.s32.totalorder %v8189_v38, 4  ;;  %v1896_v63 = vsel %vm1888_vm4, %v1875_v14, %v1878_v31  ;;  %v1730_v53 = vand.u32 2147483647, %v1729_v13 }
 0x1ed   :  { %9920 = vst [vmem:[#allocation61_spill] sm:$0xff] %v8220_v36  ;;  %v2025_v46 = vsub.s32 0, %v8213_v44  ;;  %v1887_v39 = vor.u32 %v1886_v52, %v1885_v57  ;;  %v1897_v8 = vsel %vm1891_vm0, %v1884_v60, 920167782  ;;  %v2169_v25 = vshrl.u32 %v2168_v10, 23 }
 0x1ee   :  { %v9921_v28 = vand.u32 2147483647, %v7868_v15  ;;  %v9922_v16 = vmov 0  ;;  %v1893_v9 = vsel %vm1891_vm0, %v1881_v50, 2102212464  ;;  %v1898_v48 = vsel %vm1890_vm13, %v1881_v50, %v1897_v8 }
 0x1ef   :  { %v6165_v49 = vmin.u32 %v2025_v46, %v8213_v44  ;;  %v1900_v7 = vsel %vm1888_vm4, %v1878_v31, %v1881_v50  ;;  %v1732_v21 = vcvt.s32.f32 %v1725_v6  ;;  %v1892_v57 = vsel %vm1888_vm4, %v1872_v1, %v1875_v14 }
 0x1f0   :  { %vm8229_vm14 = vcmp.le.f32.partialorder %v9921_v28, 0.7853982  ;;  %vm9925_vm2 = vcmp.lt.s32.totalorder %v8189_v38, 2  ;;  %v1901_v13 = vsel %vm1891_vm0, %v1887_v39, 1326507024  ;;  %v1894_v50 = vsel %vm1890_vm13, %v1878_v31, %v1893_v9  ;;  %v160_v9 = vpop.permute.xlu1 %159 }
 0x1f1   :  { %v9923_v16 = vsel %vm8229_vm14, 4294967295, %v9922_v16  ;;  %v1899_v10 = vsel %vm9925_vm2, %v1896_v63, %v1898_v48  ;;  %v2027_v59 = vclz %v6165_v49  ;;  %v1902_v52 = vsel %vm1890_vm13, %v1884_v60, %v1901_v13  ;;  %vm9926_vm12 = vmmov %vm9925_vm2  ;;  %v145_v60 = vpop.permute.xlu0 %144 }
 0x1f2   :  { %9924 = vst [vmem:[#allocation62_spill] sm:$0xff] %v9923_v16  ;;  %v8245_v46 = vmul.u32.u64.low %v8198_v40, %v1899_v10  ;;  %v8246_v28 = vmul.u32.u64.high %v8198_v40, %v1899_v10, %v8245_v46  ;;  %v1733_v8 = vmul.f32 %v1732_v21, %v1730_v53  ;;  %v1903_v14 = vsel %vm9926_vm12, %v1900_v7, %v1902_v52 }
 0x1f3   :  { %v6172_v6 = vadd.s32 4294967169, %v2169_v25  ;;  %6700 = vcosq.f32 %v8187_v22  ;;  %v6166_v1 = vadd.s32 4294967294, %v2027_v59  ;;  %vm9758_vm2 = vcmp.lt.s32.totalorder %v7915_v11, 0 }
 0x1f4   :  { %v8255_v63 = vmul.u32.u64.low %v8198_v40, %v1903_v14  ;;  %v8256_v39 = vmul.u32.u64.high %v8198_v40, %v1903_v14, %v8255_v63  ;;  %6702 = vsinq.f32 %v8187_v22  ;;  %v9927_v53 = vand.u32 2147483647, %v8176_v27 }
 0x1f5   :  { %v2175_v31 = vadd.s32 1, %v6172_v6  ;;  %v9928_v25 = vxor.u32 2147483648, %v8178_v55  ;;  %vm9929_vm12 = vcmp.lt.s32.totalorder %v7868_v15, 0  ;;  %vm6167_vm4 = vcmp.lt.s32.totalorder %v6166_v1, 0 }
 0x1f6   :  { %v8262_v49 = vand.u32 8388607, %v9927_v53  ;;  %vm9930_vm0 = vcmp.lt.s32.totalorder %v8189_v38, 2  ;;  %v1914_v22 = vadd.s32 1, %v8246_v28  ;;  %v1734_v21 = vxor.u32 2147483648, %v1733_v8 }
 0x1f7   :  { %v1838_v48 = vsel %vm9929_vm12, %v9928_v25, %v8178_v55  ;;  %v1895_v7 = vsel %vm9930_vm0, %v1892_v57, %v1894_v50  ;;  %v2030_v10 = vsel %vm6167_vm4, 0, %v6166_v1  ;;  %vm2176_vm13 = vcmp.gt.s32.totalorder %v2175_v31, 0 }
 0x1f8   :  { %v8273_v13 = vmul.f32 %v7865_v42, %v145_v60  ;;  %v2015_v59 = vadd.s32 %v8141_v0, %v8159_v56  ;;  %v2031_v52 = vsub.s32 32, %v2030_v10  ;;  %v2035_v14 = vsub.s32 4294967266, %v2030_v10 }
 0x1f9   :  { %v8278_v6 = vmul.f32 %v7865_v42, %v160_v9  ;;  %v8283_v55 = vsel %vm8229_vm14, %v7868_v15, %v1838_v48  ;;  %v1911_v38 = vmul.u32 %v8198_v40, %v1895_v7  ;;  %vm1913_vm12 = vc.u32 %v8256_v39, %v8245_v46 }
 0x1fa   :  { %v2177_v57 = vsel %vm2176_vm13, %v2175_v31, 0  ;;  %v2033_v50 = vshrl.u32 %v2015_v59, %v2031_v52  ;;  %v2036_v1 = vadd.s32 127, %v2035_v14  ;;  %v1915_v0 = vsel %vm1913_vm12, %v1914_v22, %v8246_v28 }
 0x1fb   :  { %v8289_v56 = vshrl.u32 %v2177_v57, 5  ;;  %v8293_v42 = vsel %vm9758_vm2, %v1734_v21, %v1733_v8  ;;  %v2032_v63 = vshll.u32 %v8213_v44, %v2030_v10  ;;  %v1916_v60 = vadd.s32 %v1915_v0, %v1911_v38  ;;  %v6632_v8 = vld [vmem:[%s9642_s2 + $0x78] sm:$0xff]  }
 0x1fc   :  { %v2179_v53 = vand.u32 31, %v2177_v57  ;;  %v2037_v9 = vshll.u32 %v2036_v1, 23  ;;  %v2173_v40 = vor.u32 8388608, %v8262_v49  ;;  %v2065_v31 = vand.u32 2139095040, %v8273_v13  ;;  %v6633_v10 = vld [vmem:[%s9642_s2 + $0x38] sm:$0xff]   ;;  %6335 = vmatprep.subr.bf16.mxu0 %v6632_v8  ;;  %v6634_v8 = vld [vmem:[%s9642_s2 + $0x70] sm:$0xff]  }
 0x1fd   :  { %v2034_v48 = vor.u32 %v2033_v50, %v2032_v63  ;;  %v1917_v7 = vadd.s32 536870912, %v1916_v60  ;;  %vm2197_vm4 = vcmp.lt.s32.totalorder %v8289_v56, 1  ;;  %6336 = vmatpush3.bf16.msra.mxu0 %v6633_v10  ;;  %v9934_v15 = vand.u32 2147483647, %v7915_v11 }
 0x1fe   :  { %v2180_v28 = vsub.s32 32, %v2179_v53  ;;  %v2038_v22 = vor.u32 4788187, %v2037_v9  ;;  %v2182_v44 = vshll.u32 %v9834_v2, %v2179_v53  ;;  %v2185_v21 = vshll.u32 %v9835_v61, %v2179_v53  ;;  %6337 = vmatprep.subr.bf16.mxu0 %v6634_v8 }
 0x1ff   :  { %v2188_v49 = vshll.u32 %v9836_v34, %v2179_v53  ;;  %v8309_v59 = vshrl.u32 %v1917_v7, 30  ;;  %v2191_v38 = vshll.u32 %v9837_v24, %v2179_v53  ;;  %v2194_v0 = vshll.u32 %v9839_v35, %v2179_v53 }
 0x200   :  { %v2183_v52 = vshrl.u32 %v9835_v61, %v2180_v28  ;;  %v2186_v14 = vshrl.u32 %v9836_v34, %v2180_v28  ;;  %v2039_v57 = vand.u32 2147483647, %v2038_v22  ;;  %v2189_v50 = vshrl.u32 %v9837_v24, %v2180_v28  ;;  %v8317_v63 = vpop.eup %6700 }
 0x201   :  { %9931 = vst [vmem:[#allocation63_spill] sm:$0xff] %v8309_v59  ;;  %v2192_v1 = vshrl.u32 %v9839_v35, %v2180_v28  ;;  %9932 = vst [vmem:[#allocation64_spill] sm:$0xff] %v8317_v63  ;;  %v1919_v9 = vshll.u32 %v8309_v59, 30  ;;  %v2195_v16 = vshrl.u32 %v9827_v3, %v2180_v28  ;;  %v8324_v22 = vpop.eup %6702  ;;  %vm8328_vm0 = vcmp.le.f32.partialorder %v9934_v15, 0.7853982 }
 0x202   :  { %v2184_v7 = vor.u32 %v2183_v52, %v2182_v44  ;;  %v2187_v25 = vor.u32 %v2186_v14, %v2185_v21  ;;  %9933 = vst [vmem:[#allocation65_spill] sm:$0xff] %v8324_v22  ;;  %v9935_v12 = vmov 0  ;;  %v2041_v53 = vcvt.s32.f32 %v2034_v48  ;;  %v6635_v44 = vld [vmem:[%s9642_s2 + $0x30] sm:$0xff]  }
 0x203   :  { %v9936_v12 = vsel %vm8328_vm0, 4294967295, %v9935_v12  ;;  %v2190_v10 = vor.u32 %v2189_v50, %v2188_v49  ;;  %v2193_v36 = vor.u32 %v2192_v1, %v2191_v38  ;;  %vm2198_vm13 = vcmp.lt.s32.totalorder %v8289_v56, 2  ;;  %6338 = vmatpush3.bf16.msra.mxu0 %v6635_v44 }
 0x204   :  { %9937 = vst [vmem:[#allocation66_spill] sm:$0xff] %v9936_v12  ;;  %v8336_v21 = vsub.s32 %v1916_v60, %v1919_v9  ;;  %v2181_v52 = vshrl.u32 %v9834_v2, %v2180_v28  ;;  %v2196_v14 = vor.u32 %v2195_v16, %v2194_v0  ;;  %vm2200_vm12 = vcmp.lt.s32.totalorder %v8289_v56, 4  ;;  %v6636_v28 = vld [vmem:[%s9642_s2 + $0x68] sm:$0xff]  }
 0x205   :  { %vm2199_vm2 = vcmp.lt.s32.totalorder %v8289_v56, 3  ;;  %v2202_v15 = vsel %vm2200_vm12, %v2190_v10, 2102212464  ;;  %v2205_v48 = vsel %vm2197_vm4, %v2184_v7, %v2187_v25  ;;  %v2206_v49 = vsel %vm2200_vm12, %v2193_v36, 920167782  ;;  %6339 = vmatprep.subr.bf16.mxu0 %v6636_v28 }
 0x206   :  { %v2042_v38 = vmul.f32 %v2041_v53, %v2039_v57  ;;  %v1922_v50 = vsub.s32 0, %v8336_v21  ;;  %v2207_v60 = vsel %vm2199_vm2, %v2190_v10, %v2206_v49  ;;  %v2209_v16 = vsel %vm2197_vm4, %v2187_v25, %v2190_v10  ;;  %v6637_v57 = vld [vmem:[%s9642_s2 + $0x28] sm:$0xff]  }
 0x207   :  { %v2208_v1 = vsel %vm2198_vm13, %v2205_v48, %v2207_v60  ;;  %v2210_v0 = vsel %vm2200_vm12, %v2196_v14, 1326507024  ;;  %v2213_v9 = vshll.u32 %v2173_v40, 8  ;;  %v2066_v8 = vshrl.u32 %v2065_v31, 23  ;;  %6340 = vmatpush3.bf16.msra.mxu0 %v6637_v57 }
 0x208   :  { %v6161_v53 = vmin.u32 %v1922_v50, %v8336_v21  ;;  %v2201_v44 = vsel %vm2197_vm4, %v2181_v52, %v2184_v7  ;;  %v2203_v10 = vsel %vm2199_vm2, %v2187_v25, %v2202_v15  ;;  %v2211_v49 = vsel %vm2199_vm2, %v2193_v36, %v2210_v0  ;;  %v6638_v36 = vld [vmem:[%s9642_s2 + $0x60] sm:$0xff]  }
 0x209   :  { %v2212_v40 = vsel %vm2198_vm13, %v2209_v16, %v2211_v49  ;;  %v8365_v31 = vmul.u32.u64.low %v2213_v9, %v2208_v1  ;;  %v8366_v14 = vmul.u32.u64.high %v2213_v9, %v2208_v1, %v8365_v31  ;;  %v9938_v48 = vand.u32 2147483647, %v8273_v13  ;;  %v6639_v16 = vld [vmem:[%s9642_s2 + $0x20] sm:$0xff]   ;;  %6341 = vmatprep.subr.bf16.mxu0 %v6638_v36  ;;  %v6641_v49 = vld [vmem:[%s9642_s2 + $0x18] sm:$0xff]  }
 0x20a   :  { %v2043_v60 = vxor.u32 2147483648, %v2042_v38  ;;  %v1924_v7 = vclz %v6161_v53  ;;  %v8371_v52 = vmul.u32.u64.low %v2213_v9, %v2212_v40  ;;  %v8372_v59 = vmul.u32.u64.high %v2213_v9, %v2212_v40, %v8371_v52 }
 0x20b   :  { %v2069_v50 = vand.u32 8388607, %v9938_v48  ;;  %6704 = vcosq.f32 %v8283_v55  ;;  %vm9776_vm2 = vcmp.lt.s32.totalorder %v7954_v54, 0  ;;  %v2204_v25 = vsel %vm2198_vm13, %v2201_v44, %v2203_v10  ;;  %6342 = vmatpush3.bf16.msra.mxu0 %v6639_v16 }
 0x20c   :  { %v6168_v15 = vadd.s32 4294967169, %v2066_v8  ;;  %6706 = vsinq.f32 %v8283_v55  ;;  %v8389_v28 = vsel %vm8328_vm0, %v7915_v11, %v8293_v42  ;;  %v6162_v1 = vadd.s32 4294967294, %v1924_v7  ;;  %v6640_v42 = vld [vmem:[%s9642_s2 + $0x58] sm:$0xff]  }
 0x20d   :  { %v2374_v0 = vand.u32 2139095040, %v8278_v6  ;;  %v1912_v56 = vadd.s32 %v8245_v46, %v8256_v39  ;;  %v2223_v8 = vadd.s32 1, %v8366_v14  ;;  %v2070_v57 = vor.u32 8388608, %v2069_v50  ;;  %v155_v50 = vpop.permute.xlu0 %154  ;;  %6343 = vmatprep.subr.bf16.mxu0 %v6640_v42 }
 0x20e   :  { %v2072_v53 = vadd.s32 1, %v6168_v15  ;;  %v2044_v55 = vsel %vm9776_vm2, %v2043_v60, %v2042_v38  ;;  %vm6163_vm4 = vcmp.lt.s32.totalorder %v6162_v1, 0  ;;  %v2220_v44 = vmul.u32 %v2213_v9, %v2204_v25 }
 0x20f   :  { %vm2222_vm13 = vc.u32 %v8372_v59, %v8365_v31  ;;  %v1927_v10 = vsel %vm6163_vm4, 0, %v6162_v1  ;;  %v9761_v39 = vand.u32 2147483647, %v8278_v6  ;;  %v2375_v48 = vshrl.u32 %v2374_v0, 23  ;;  %6344 = vmatpush3.bf16.msra.mxu0 %v6641_v49  ;;  %v6642_v1 = vld [vmem:[%s9642_s2 + $0x50] sm:$0xff]  }
 0x210   :  { %v2224_v46 = vsel %vm2222_vm13, %v2223_v8, %v8366_v14  ;;  %vm2073_vm12 = vcmp.gt.s32.totalorder %v2072_v53, 0  ;;  %v1928_v38 = vsub.s32 32, %v1927_v10  ;;  %v1932_v40 = vsub.s32 4294967266, %v1927_v10  ;;  %6345 = vmatprep.subr.bf16.mxu0 %v6642_v1 }
 0x211   :  { %v2225_v9 = vadd.s32 %v2224_v46, %v2220_v44  ;;  %6708 = vcosq.f32 %v8389_v28  ;;  %v9939_v7 = vand.u32 2147483647, %v7954_v54  ;;  %v9940_v14 = vmov 0 }
 0x212   :  { %v2074_v52 = vsel %vm2073_vm12, %v2072_v53, 0  ;;  %v1930_v25 = vshrl.u32 %v1912_v56, %v1928_v38  ;;  %v1933_v15 = vadd.s32 127, %v1932_v40  ;;  %v1929_v0 = vshll.u32 %v8336_v21, %v1927_v10  ;;  %v8429_v53 = vld [vmem:[%s9641_s1] ss:$0 sm:$0xff]  ;;  %v6643_v56 = vld [vmem:[%s9642_s2 + $0x10] sm:$0xff]  }
 0x213   :  { %vm8411_vm4 = vcmp.le.f32.partialorder %v9939_v7, 0.7853982  ;;  %v2226_v16 = vadd.s32 536870912, %v2225_v9  ;;  %v2076_v8 = vand.u32 31, %v2074_v52  ;;  %v8424_v44 = vshll.u32 %v2070_v57, 8  ;;  %6346 = vmatpush3.bf16.msra.mxu0 %v6643_v56  ;;  %v6645_v56 = vld [vmem:[%s9642_s2 + $0x8] sm:$0xff]  }
 0x214   :  { %v9941_v14 = vsel %vm8411_vm4, 4294967295, %v9940_v14  ;;  %v8418_v36 = vsel %vm8411_vm4, %v7954_v54, %v2044_v55  ;;  %v8432_v55 = vmul.f32 %v8429_v53, %v155_v50  ;;  %v1934_v42 = vshll.u32 %v1933_v15, 23 }
 0x215   :  { %9942 = vst [vmem:[#allocation67_spill] sm:$0xff] %v9941_v14  ;;  %v8437_v46 = vshrl.u32 %v2226_v16, 30  ;;  %v6180_v49 = vadd.s32 4294967169, %v2375_v48  ;;  %v8441_v21 = vand.u32 8388607, %v9761_v39  ;;  %v1931_v57 = vor.u32 %v1930_v25, %v1929_v0  ;;  %v6644_v48 = vld [vmem:[%s9642_s2 + $0x48] sm:$0xff]  }
 0x216   :  { %v8443_v10 = vshrl.u32 %v2074_v52, 5  ;;  %v2077_v38 = vsub.s32 32, %v2076_v8  ;;  %v2079_v40 = vshll.u32 %v9834_v2, %v2076_v8  ;;  %v1935_v50 = vor.u32 4788187, %v1934_v42  ;;  %6347 = vmatprep.subr.bf16.mxu0 %v6644_v48 }
 0x217   :  { %9943 = vst [vmem:[#allocation68_spill] sm:$0xff] %v8437_v46  ;;  %v2228_v7 = vshll.u32 %v8437_v46, 30  ;;  %v2082_v15 = vshll.u32 %v9835_v61, %v2076_v8  ;;  %v2085_v16 = vshll.u32 %v9836_v34, %v2076_v8  ;;  %v2088_v0 = vshll.u32 %v9837_v24, %v2076_v8  ;;  %6348 = vmatpush3.bf16.msra.mxu0 %v6645_v56 }
 0x218   :  { %v2080_v1 = vshrl.u32 %v9835_v61, %v2077_v38  ;;  %v2083_v52 = vshrl.u32 %v9836_v34, %v2077_v38  ;;  %v2086_v25 = vshrl.u32 %v9837_v24, %v2077_v38  ;;  %v8459_v42 = vpop.eup %6704  ;;  %v1936_v39 = vand.u32 2147483647, %v1935_v50 }
 0x219   :  { %9944 = vst [vmem:[#allocation69_spill] sm:$0xff] %v8459_v42  ;;  %v8461_v60 = vsub.s32 %v2225_v9, %v2228_v7  ;;  %v2089_v46 = vshrl.u32 %v9839_v35, %v2077_v38  ;;  %v2091_v14 = vshll.u32 %v9839_v35, %v2076_v8  ;;  %v8465_v54 = vpop.eup %6706  ;;  %v2092_v22 = vshrl.u32 %v9827_v3, %v2077_v38  ;;  %v6646_v9 = vld [vmem:[%s9642_s2 + $0x40] sm:$0xff]  }
 0x21a   :  { %9945 = vst [vmem:[#allocation70_spill] sm:$0xff] %v8465_v54  ;;  %v2081_v12 = vor.u32 %v2080_v1, %v2079_v40  ;;  %v2084_v11 = vor.u32 %v2083_v52, %v2082_v15  ;;  %v2087_v63 = vor.u32 %v2086_v25, %v2085_v16  ;;  %v1938_v18 = vcvt.s32.f32 %v1931_v57  ;;  %v6647_v57 = vld [vmem:[%s9642_s2] sm:$0xff]   ;;  %6349 = vmatprep.subr.bf16.mxu0 %v6646_v9 }
 0x21b   :  { %v2231_v41 = vsub.s32 0, %v8461_v60  ;;  %v2090_v42 = vor.u32 %v2089_v46, %v2088_v0  ;;  %v2381_v50 = vadd.s32 1, %v6180_v49  ;;  %v2078_v8 = vshrl.u32 %v9834_v2, %v2077_v38  ;;  %6350 = vmatpush3.bf16.msra.mxu0 %v6647_v57 }
 0x21c   :  { %v2093_v7 = vor.u32 %v2092_v22, %v2091_v14  ;;  %vm2094_vm12 = vcmp.lt.s32.totalorder %v8443_v10, 1  ;;  %vm2097_vm2 = vcmp.lt.s32.totalorder %v8443_v10, 4  ;;  %v1939_v40 = vmul.f32 %v1938_v18, %v1936_v39  ;;  %v170_v39 = vpop.permute.xlu1 %169 }
 0x21d   :  { %v6173_v46 = vmin.u32 %v2231_v41, %v8461_v60  ;;  %v2099_v49 = vsel %vm2097_vm2, %v2087_v63, 2102212464  ;;  %v2102_v15 = vsel %vm2094_vm12, %v2081_v12, %v2084_v11  ;;  %vm2096_vm13 = vcmp.lt.s32.totalorder %v8443_v10, 3 }
 0x21e   :  { %v2103_v38 = vsel %vm2097_vm2, %v2090_v42, 920167782  ;;  %v2106_v22 = vsel %vm2094_vm12, %v2084_v11, %v2087_v63  ;;  %v2107_v14 = vsel %vm2097_vm2, %v2093_v7, 1326507024  ;;  %v8485_v16 = vpop.eup %6708  ;;  %vm2095_vm4 = vcmp.lt.s32.totalorder %v8443_v10, 2 }
 0x21f   :  { %9946 = vst [vmem:[#allocation71_spill] sm:$0xff] %v8485_v16  ;;  %v2233_v48 = vclz %v6173_v46  ;;  %v2104_v18 = vsel %vm2096_vm13, %v2087_v63, %v2103_v38  ;;  %v2379_v41 = vor.u32 8388608, %v8441_v21  ;;  %v2098_v1 = vsel %vm2094_vm12, %v2078_v8, %v2081_v12 }
 0x220   :  { %v2100_v52 = vsel %vm2096_vm13, %v2084_v11, %v2099_v49  ;;  %v2105_v25 = vsel %vm2095_vm4, %v2102_v15, %v2104_v18  ;;  %v2108_v0 = vsel %vm2096_vm13, %v2090_v42, %v2107_v14  ;;  %v1940_v56 = vxor.u32 2147483648, %v1939_v40 }
 0x221   :  { %v6174_v9 = vadd.s32 4294967294, %v2233_v48  ;;  %v2109_v7 = vsel %vm2095_vm4, %v2106_v22, %v2108_v0  ;;  %vm2382_vm2 = vcmp.gt.s32.totalorder %v2381_v50, 0  ;;  %v8500_v46 = vmul.f32 %v8429_v53, %v170_v39 }
 0x222   :  { %v8496_v57 = vmul.u32.u64.low %v8424_v44, %v2109_v7  ;;  %v8497_v63 = vmul.u32.u64.high %v8424_v44, %v2109_v7, %v8496_v57  ;;  %v2383_v21 = vsel %vm2382_vm2, %v2381_v50, 0  ;;  %v2101_v11 = vsel %vm2095_vm4, %v2098_v1, %v2100_v52 }
 0x223   :  { %vm6175_vm12 = vcmp.lt.s32.totalorder %v6174_v9, 0  ;;  %v8505_v12 = vmul.u32.u64.low %v8424_v44, %v2105_v25  ;;  %v8506_v42 = vmul.u32.u64.high %v8424_v44, %v2105_v25, %v8505_v12  ;;  %v2221_v8 = vadd.s32 %v8365_v31, %v8372_v59 }
 0x224   :  { %v2236_v49 = vsel %vm6175_vm12, 0, %v6174_v9  ;;  %v2385_v15 = vand.u32 31, %v2383_v21  ;;  %v8511_v38 = vshll.u32 %v2379_v41, 8  ;;  %vm9947_vm13 = vcmp.lt.s32.totalorder %v7964_v43, 0 }
 0x225   :  { %v8515_v50 = vsel %vm9947_vm13, %v1940_v56, %v1939_v40  ;;  %v2237_v22 = vsub.s32 32, %v2236_v49  ;;  %v2241_v14 = vsub.s32 4294967266, %v2236_v49  ;;  %v2117_v48 = vmul.u32 %v8424_v44, %v2101_v11 }
 0x226   :  { %vm2119_vm4 = vc.u32 %v8497_v63, %v8505_v12  ;;  %v2384_v18 = vshrl.u32 %v2383_v21, 5  ;;  %v2386_v39 = vsub.s32 32, %v2385_v15  ;;  %v2238_v59 = vshll.u32 %v8461_v60, %v2236_v49 }
 0x227   :  { %v2239_v31 = vshrl.u32 %v2221_v8, %v2237_v22  ;;  %v2242_v41 = vadd.s32 127, %v2241_v14  ;;  %v2120_v1 = vadd.s32 1, %v8506_v42  ;;  %v2388_v40 = vshll.u32 %v9834_v2, %v2385_v15 }
 0x228   :  { %v2389_v52 = vshrl.u32 %v9835_v61, %v2386_v39  ;;  %v2391_v25 = vshll.u32 %v9835_v61, %v2385_v15  ;;  %v2392_v0 = vshrl.u32 %v9836_v34, %v2386_v39  ;;  %v2394_v9 = vshll.u32 %v9836_v34, %v2385_v15 }
 0x229   :  { %v2243_v44 = vshll.u32 %v2242_v41, 23  ;;  %v2121_v56 = vsel %vm2119_vm4, %v2120_v1, %v8506_v42  ;;  %v2395_v7 = vshrl.u32 %v9837_v24, %v2386_v39  ;;  %v2240_v60 = vor.u32 %v2239_v31, %v2238_v59 }
 0x22a   :  { %v2122_v57 = vadd.s32 %v2121_v56, %v2117_v48  ;;  %v2390_v21 = vor.u32 %v2389_v52, %v2388_v40  ;;  %v2393_v11 = vor.u32 %v2392_v0, %v2391_v25  ;;  %v2397_v22 = vshll.u32 %v9837_v24, %v2385_v15 }
 0x22b   :  { %v2244_v8 = vor.u32 4788187, %v2243_v44  ;;  %v2396_v49 = vor.u32 %v2395_v7, %v2394_v9  ;;  %v2398_v14 = vshrl.u32 %v9839_v35, %v2386_v39  ;;  %v2400_v41 = vshll.u32 %v9839_v35, %v2385_v15 }
 0x22c   :  { %v2123_v10 = vadd.s32 536870912, %v2122_v57  ;;  %v2401_v42 = vshrl.u32 %v9827_v3, %v2386_v39  ;;  %v2271_v1 = vand.u32 2139095040, %v8432_v55  ;;  %v2387_v59 = vshrl.u32 %v9834_v2, %v2386_v39 }
 0x22d   :  { %v2399_v48 = vor.u32 %v2398_v14, %v2397_v22  ;;  %vm2403_vm12 = vcmp.lt.s32.totalorder %v2384_v18, 1  ;;  %vm2406_vm13 = vcmp.lt.s32.totalorder %v2384_v18, 4  ;;  %v2247_v31 = vcvt.s32.f32 %v2240_v60 }
 0x22e   :  { %v8537_v40 = vshrl.u32 %v2123_v10, 30  ;;  %v2402_v52 = vor.u32 %v2401_v42, %v2400_v41  ;;  %v2408_v25 = vsel %vm2406_vm13, %v2396_v49, 2102212464  ;;  %v2245_v0 = vand.u32 2147483647, %v2244_v8 }
 0x22f   :  { %vm2405_vm4 = vcmp.lt.s32.totalorder %v2384_v18, 3  ;;  %v2411_v44 = vsel %vm2403_vm12, %v2390_v21, %v2393_v11  ;;  %v2412_v15 = vsel %vm2406_vm13, %v2399_v48, 920167782  ;;  %vm2404_vm2 = vcmp.lt.s32.totalorder %v2384_v18, 2 }
 0x230   :  { %9948 = vst [vmem:[#allocation72_spill] sm:$0xff] %v8537_v40  ;;  %v2125_v56 = vshll.u32 %v8537_v40, 30  ;;  %v2413_v9 = vsel %vm2405_vm4, %v2396_v49, %v2412_v15  ;;  %v2415_v7 = vsel %vm2403_vm12, %v2393_v11, %v2396_v49  ;;  %v2407_v39 = vsel %vm2403_vm12, %v2387_v59, %v2390_v21 }
 0x231   :  { %v2409_v22 = vsel %vm2405_vm4, %v2393_v11, %v2408_v25  ;;  %v2414_v14 = vsel %vm2404_vm2, %v2411_v44, %v2413_v9  ;;  %v2416_v60 = vsel %vm2406_vm13, %v2402_v52, 1326507024  ;;  %v2248_v54 = vmul.f32 %v2247_v31, %v2245_v0 }
 0x232   :  { %v8543_v10 = vsub.s32 %v2122_v57, %v2125_v56  ;;  %v2417_v41 = vsel %vm2405_vm4, %v2399_v48, %v2416_v60  ;;  %v8546_v42 = vmul.u32.u64.low %v8511_v38, %v2414_v14  ;;  %v8547_v8 = vmul.u32.u64.high %v8511_v38, %v2414_v14, %v8546_v42 }
 0x233   :  { %v2418_v16 = vsel %vm2404_vm2, %v2415_v7, %v2417_v41  ;;  %v2272_v5 = vshrl.u32 %v2271_v1, 23  ;;  %v9949_v40 = vand.u32 2147483647, %v8432_v55  ;;  %v2410_v11 = vsel %vm2404_vm2, %v2407_v39, %v2409_v22 }
 0x234   :  { %v2128_v21 = vsub.s32 0, %v8543_v10  ;;  %v8554_v18 = vmul.u32.u64.low %v8511_v38, %v2418_v16  ;;  %v8555_v49 = vmul.u32.u64.high %v8511_v38, %v2418_v16, %v8554_v18  ;;  %v9950_v57 = vxor.u32 2147483648, %v7936_v26 }
 0x235   :  { %v2275_v15 = vand.u32 8388607, %v9949_v40  ;;  %vm9951_vm12 = vcmp.lt.s32.totalorder %v6980_v51, 0  ;;  %6710 = vsinq.f32 %v8389_v28  ;;  %v9952_v1 = vand.u32 2147483647, %v7964_v43 }
 0x236   :  { %v8562_v59 = vsel %vm9951_vm12, %v9950_v57, %v7936_v26  ;;  %v9953_v48 = vmov 0  ;;  %v6176_v31 = vadd.s32 4294967169, %v2272_v5  ;;  %6712 = vcosq.f32 %v8418_v36 }
 0x237   :  { %vm8567_vm13 = vcmp.le.f32.partialorder %v9952_v1, 0.7853982  ;;  %vm9792_vm2 = vcmp.lt.s32.totalorder %v8176_v27, 0  ;;  %v6169_v16 = vmin.u32 %v2128_v21, %v8543_v10  ;;  %v2429_v40 = vadd.s32 1, %v8547_v8 }
 0x238   :  { %v9954_v48 = vsel %vm8567_vm13, 4294967295, %v9953_v48  ;;  %v1944_v26 = vsel %vm8567_vm13, %v7964_v43, %v8515_v50  ;;  %v2249_v28 = vxor.u32 2147483648, %v2248_v54  ;;  %v2426_v52 = vmul.u32 %v8511_v38, %v2410_v11  ;;  %v165_v38 = vpop.permute.xlu0 %164 }
 0x239   :  { %9955 = vst [vmem:[#allocation73_spill] sm:$0xff] %v9954_v48  ;;  %v2278_v25 = vadd.s32 1, %v6176_v31  ;;  %v2130_v0 = vclz %v6169_v16  ;;  %vm2428_vm4 = vc.u32 %v8555_v49, %v8546_v42  ;;  %v2276_v5 = vor.u32 8388608, %v2275_v15 }
 0x23a   :  { %v9784_v44 = vand.u32 2147483647, %v8500_v46  ;;  %6714 = vsinq.f32 %v8418_v36  ;;  %v2430_v56 = vsel %vm2428_vm4, %v2429_v40, %v8547_v8  ;;  %v2580_v9 = vand.u32 2139095040, %v8500_v46 }
 0x23b   :  { %vm2279_vm12 = vcmp.gt.s32.totalorder %v2278_v25, 0  ;;  %6716 = vcosq.f32 %v1944_v26  ;;  %v6170_v50 = vadd.s32 4294967294, %v2130_v0  ;;  %v2431_v7 = vadd.s32 %v2430_v56, %v2426_v52 }
 0x23c   :  { %v2280_v39 = vsel %vm2279_vm12, %v2278_v25, 0  ;;  %6718 = vsinq.f32 %v1944_v26  ;;  %v8588_v22 = vsel %vm9792_vm2, %v2249_v28, %v2248_v54  ;;  %v2118_v14 = vadd.s32 %v8505_v12, %v8497_v63 }
 0x23d   :  { %v2282_v60 = vand.u32 31, %v2280_v39  ;;  %vm6171_vm13 = vcmp.lt.s32.totalorder %v6170_v50, 0  ;;  %v2432_v36 = vadd.s32 536870912, %v2431_v7  ;;  %v8592_v41 = vshll.u32 %v2276_v5, 8 }
 0x23e   :  { %v8596_v8 = vand.u32 8388607, %v9784_v44  ;;  %v2133_v15 = vsel %vm6171_vm13, 0, %v6170_v50  ;;  %v2581_v11 = vshrl.u32 %v2580_v9, 23  ;;  %v8599_v18 = vmul.f32 %v8429_v53, %v165_v38 }
 0x23f   :  { %v2283_v21 = vsub.s32 32, %v2282_v60  ;;  %v2134_v54 = vsub.s32 32, %v2133_v15  ;;  %v2138_v57 = vsub.s32 4294967266, %v2133_v15  ;;  %v8601_v1 = vshrl.u32 %v2432_v36, 30 }
 0x240   :  { %v2281_v63 = vshrl.u32 %v2280_v39, 5  ;;  %v2285_v12 = vshll.u32 %v9834_v2, %v2282_v60  ;;  %v2288_v16 = vshll.u32 %v9835_v61, %v2282_v60  ;;  %v2291_v52 = vshll.u32 %v9836_v34, %v2282_v60 }
 0x241   :  { %9956 = vst [vmem:[#allocation74_spill] sm:$0xff] %v8601_v1  ;;  %v2286_v31 = vshrl.u32 %v9835_v61, %v2283_v21  ;;  %v2289_v40 = vshrl.u32 %v9836_v34, %v2283_v21  ;;  %v2139_v26 = vadd.s32 127, %v2138_v57  ;;  %v2434_v28 = vshll.u32 %v8601_v1, 30 }
 0x242   :  { %v2292_v25 = vshrl.u32 %v9837_v24, %v2283_v21  ;;  %v9957_v0 = vand.u32 2147483647, %v8176_v27  ;;  %v9958_v5 = vmov 0  ;;  %v2136_v56 = vshrl.u32 %v2118_v14, %v2134_v54  ;;  %v8618_v38 = vpop.eup %6710 }
 0x243   :  { %v2287_v9 = vor.u32 %v2286_v31, %v2285_v12  ;;  %v2294_v50 = vshll.u32 %v9837_v24, %v2282_v60  ;;  %v2295_v39 = vshrl.u32 %v9839_v35, %v2283_v21  ;;  %9961 = vst [vmem:[#allocation76_spill] sm:$0xff] %v8618_v38  ;;  %v2140_v36 = vshll.u32 %v2139_v26, 23  ;;  %v8622_v48 = vpop.eup %6712 }
 0x244   :  { %vm8612_vm13 = vcmp.le.f32.partialorder %v9957_v0, 0.7853982  ;;  %v8620_v57 = vsub.s32 %v2431_v7, %v2434_v28  ;;  %v2290_v44 = vor.u32 %v2289_v40, %v2288_v16  ;;  %v2293_v1 = vor.u32 %v2292_v25, %v2291_v52  ;;  %9962 = vst [vmem:[#allocation77_spill] sm:$0xff] %v8622_v48 }
 0x245   :  { %v9959_v5 = vsel %vm8612_vm13, 4294967295, %v9958_v5  ;;  %v2135_v0 = vshll.u32 %v8543_v10, %v2133_v15  ;;  %v2296_v43 = vor.u32 %v2295_v39, %v2294_v50  ;;  %v2297_v45 = vshll.u32 %v9839_v35, %v2282_v60 }
 0x246   :  { %9960 = vst [vmem:[#allocation75_spill] sm:$0xff] %v9959_v5  ;;  %v2298_v14 = vshrl.u32 %v9827_v3, %v2283_v21  ;;  %v2141_v54 = vor.u32 4788187, %v2140_v36  ;;  %v2437_v12 = vsub.s32 0, %v8620_v57  ;;  %v2284_v31 = vshrl.u32 %v9834_v2, %v2283_v21 }
 0x247   :  { %v6188_v38 = vadd.s32 4294967169, %v2581_v11  ;;  %v2137_v26 = vor.u32 %v2136_v56, %v2135_v0  ;;  %vm2300_vm4 = vcmp.lt.s32.totalorder %v2281_v63, 1  ;;  %vm2303_vm12 = vcmp.lt.s32.totalorder %v2281_v63, 4  ;;  %v8629_v16 = vpop.eup %6714 }
 0x248   :  { %v2299_v7 = vor.u32 %v2298_v14, %v2297_v45  ;;  %9963 = vst [vmem:[#allocation78_spill] sm:$0xff] %v8629_v16  ;;  %v6181_v40 = vmin.u32 %v2437_v12, %v8620_v57  ;;  %vm2301_vm2 = vcmp.lt.s32.totalorder %v2281_v63, 2  ;;  %v2305_v10 = vsel %vm2303_vm12, %v2293_v1, 2102212464  ;;  %v8632_v60 = vpop.eup %6716 }
 0x249   :  { %v2308_v15 = vsel %vm2300_vm4, %v2287_v9, %v2290_v44  ;;  %9964 = vst [vmem:[#allocation79_spill] sm:$0xff] %v8632_v60  ;;  %vm2302_vm14 = vcmp.lt.s32.totalorder %v2281_v63, 3  ;;  %v2309_v28 = vsel %vm2303_vm12, %v2296_v43, 920167782  ;;  %v2312_v52 = vsel %vm2300_vm4, %v2290_v44, %v2293_v1  ;;  %v8634_v50 = vpop.eup %6718 }
 0x24a   :  { %v2313_v25 = vsel %vm2303_vm12, %v2299_v7, 1326507024  ;;  %v2142_v21 = vand.u32 2147483647, %v2141_v54  ;;  %v2439_v11 = vclz %v6181_v40  ;;  %v2304_v45 = vsel %vm2300_vm4, %v2284_v31, %v2287_v9 }
 0x24b   :  { %v2310_v56 = vsel %vm2302_vm14, %v2293_v1, %v2309_v28  ;;  %v2306_v39 = vsel %vm2302_vm14, %v2290_v44, %v2305_v10  ;;  %v2314_v0 = vsel %vm2302_vm14, %v2296_v43, %v2313_v25  ;;  %v2587_v14 = vadd.s32 1, %v6188_v38 }
 0x24c   :  { %v2311_v36 = vsel %vm2301_vm2, %v2308_v15, %v2310_v56  ;;  %v8641_v12 = vsel %vm8612_vm13, %v8176_v27, %v8588_v22  ;;  %v2144_v48 = vcvt.s32.f32 %v2137_v26  ;;  %v6182_v16 = vadd.s32 4294967294, %v2439_v11 }
 0x24d   :  { %v2315_v7 = vsel %vm2301_vm2, %v2312_v52, %v2314_v0  ;;  %v8649_v44 = vmul.u32.u64.low %v8592_v41, %v2311_v36  ;;  %v8650_v1 = vmul.u32.u64.high %v8592_v41, %v2311_v36, %v8649_v44  ;;  %v2307_v43 = vsel %vm2301_vm2, %v2304_v45, %v2306_v39 }
 0x24e   :  { %v8645_v54 = vmul.u32.u64.low %v8592_v41, %v2315_v7  ;;  %v8646_v40 = vmul.u32.u64.high %v8592_v41, %v2315_v7, %v8645_v54  ;;  %vm6183_vm14 = vcmp.lt.s32.totalorder %v6182_v16, 0  ;;  %v2585_v9 = vor.u32 8388608, %v8596_v8 }
 0x24f   :  { %vm2588_vm4 = vcmp.gt.s32.totalorder %v2587_v14, 0  ;;  %v8655_v22 = vmul.f32 %v2144_v48, %v2142_v21  ;;  %v2442_v38 = vsel %vm6183_vm14, 0, %v6182_v16  ;;  %v2477_v26 = vand.u32 2139095040, %v8599_v18 }
 0x250   :  { %v2589_v31 = vsel %vm2588_vm4, %v2587_v14, 0  ;;  %6720 = vcosq.f32 %v8641_v12  ;;  %v2427_v10 = vadd.s32 %v8546_v42, %v8555_v49  ;;  %v2443_v15 = vsub.s32 32, %v2442_v38 }
 0x251   :  { %v2447_v28 = vsub.s32 4294967266, %v2442_v38  ;;  %v2323_v52 = vmul.u32 %v8592_v41, %v2307_v43  ;;  %vm2325_vm2 = vc.u32 %v8646_v40, %v8649_v44  ;;  %v2326_v8 = vadd.s32 1, %v8650_v1 }
 0x252   :  { %v2444_v63 = vshll.u32 %v8620_v57, %v2442_v38  ;;  %v2445_v16 = vshrl.u32 %v2427_v10, %v2443_v15  ;;  %v2591_v21 = vand.u32 31, %v2589_v31  ;;  %v2146_v11 = vxor.u32 2147483648, %v8655_v22 }
 0x253   :  { %v2448_v25 = vadd.s32 127, %v2447_v28  ;;  %v2327_v42 = vsel %vm2325_vm2, %v2326_v8, %v8650_v1  ;;  %v8669_v49 = vshll.u32 %v2585_v9, 8  ;;  %v2478_v45 = vshrl.u32 %v2477_v26, 23 }
 0x254   :  { %v2446_v41 = vor.u32 %v2445_v16, %v2444_v63  ;;  %v2328_v39 = vadd.s32 %v2327_v42, %v2323_v52  ;;  %v2592_v36 = vsub.s32 32, %v2591_v21  ;;  %v2590_v0 = vshrl.u32 %v2589_v31, 5 }
 0x255   :  { %v2449_v56 = vshll.u32 %v2448_v25, 23  ;;  %v2594_v14 = vshll.u32 %v9834_v2, %v2591_v21  ;;  %v2597_v7 = vshll.u32 %v9835_v61, %v2591_v21  ;;  %v2600_v57 = vshll.u32 %v9836_v34, %v2591_v21 }
 0x256   :  { %v2453_v43 = vcvt.s32.f32 %v2446_v41  ;;  %v2329_v38 = vadd.s32 536870912, %v2328_v39  ;;  %v2603_v1 = vshll.u32 %v9837_v24, %v2591_v21  ;;  %v2595_v9 = vshrl.u32 %v9835_v61, %v2592_v36 }
 0x257   :  { %v2450_v54 = vor.u32 4788187, %v2449_v56  ;;  %v2598_v26 = vshrl.u32 %v9836_v34, %v2592_v36  ;;  %v2601_v10 = vshrl.u32 %v9837_v24, %v2592_v36  ;;  %v2604_v31 = vshrl.u32 %v9839_v35, %v2592_v36 }
 0x258   :  { %v8680_v28 = vshrl.u32 %v2329_v38, 30  ;;  %v2606_v52 = vshll.u32 %v9839_v35, %v2591_v21  ;;  %v2607_v8 = vshrl.u32 %v9827_v3, %v2592_v36  ;;  %v2596_v63 = vor.u32 %v2595_v9, %v2594_v14 }
 0x259   :  { %v2451_v15 = vand.u32 2147483647, %v2450_v54  ;;  %v2599_v16 = vor.u32 %v2598_v26, %v2597_v7  ;;  %v2602_v25 = vor.u32 %v2601_v10, %v2600_v57  ;;  %v2605_v42 = vor.u32 %v2604_v31, %v2603_v1 }
 0x25a   :  { %9965 = vst [vmem:[#allocation80_spill] sm:$0xff] %v8680_v28  ;;  %v9966_v41 = vand.u32 2147483647, %v8273_v13  ;;  %v9967_v56 = vmov 0  ;;  %v2331_v48 = vshll.u32 %v8680_v28, 30  ;;  %v2608_v5 = vor.u32 %v2607_v8, %v2606_v52 }
 0x25b   :  { %v6184_v54 = vadd.s32 4294967169, %v2478_v45  ;;  %v9969_v38 = vand.u32 2147483647, %v8599_v18  ;;  %v2454_v21 = vmul.f32 %v2453_v43, %v2451_v15  ;;  %v2593_v14 = vshrl.u32 %v9834_v2, %v2592_v36  ;;  %v175_v15 = vpop.permute.xlu0 %174 }
 0x25c   :  { %vm8686_vm14 = vcmp.le.f32.partialorder %v9966_v41, 0.7853982  ;;  %vm2609_vm2 = vcmp.lt.s32.totalorder %v2590_v0, 1  ;;  %vm2612_vm12 = vcmp.lt.s32.totalorder %v2590_v0, 4  ;;  %v8695_v7 = vsub.s32 %v2328_v39, %v2331_v48 }
 0x25d   :  { %v9968_v56 = vsel %vm8686_vm14, 4294967295, %v9967_v56  ;;  %v2481_v27 = vand.u32 8388607, %v9969_v38  ;;  %vm2610_vm13 = vcmp.lt.s32.totalorder %v2590_v0, 2  ;;  %v2614_v57 = vsel %vm2612_vm12, %v2602_v25, 2102212464  ;;  %v8697_v9 = vpop.eup %6720 }
 0x25e   :  { %v2617_v1 = vsel %vm2609_vm2, %v2596_v63, %v2599_v16  ;;  %9970 = vst [vmem:[#allocation81_spill] sm:$0xff] %v8697_v9  ;;  %vm2611_vm0 = vcmp.lt.s32.totalorder %v2590_v0, 3  ;;  %v2618_v26 = vsel %vm2612_vm12, %v2605_v42, 920167782  ;;  %v2621_v45 = vsel %vm2609_vm2, %v2599_v16, %v2602_v25 }
 0x25f   :  { %v2622_v10 = vsel %vm2612_vm12, %v2608_v5, 1326507024  ;;  %v2334_v31 = vsub.s32 0, %v8695_v7  ;;  %v2613_v52 = vsel %vm2609_vm2, %v2593_v14, %v2596_v63  ;;  %v2615_v8 = vsel %vm2611_vm0, %v2599_v16, %v2614_v57 }
 0x260   :  { %v2619_v43 = vsel %vm2611_vm0, %v2602_v25, %v2618_v26  ;;  %vm9971_vm4 = vcmp.lt.s32.totalorder %v8273_v13, 0  ;;  %v2623_v36 = vsel %vm2611_vm0, %v2605_v42, %v2622_v10  ;;  %v2482_v41 = vor.u32 8388608, %v2481_v27 }
 0x261   :  { %v2147_v48 = vsel %vm9971_vm4, %v2146_v11, %v8655_v22  ;;  %v2620_v39 = vsel %vm2610_vm13, %v2617_v1, %v2619_v43  ;;  %v2455_v38 = vxor.u32 2147483648, %v2454_v21  ;;  %v6177_v28 = vmin.u32 %v2334_v31, %v8695_v7 }
 0x262   :  { %v2624_v9 = vsel %vm2610_vm13, %v2621_v45, %v2623_v36  ;;  %v2484_v5 = vadd.s32 1, %v6184_v54  ;;  %v2616_v60 = vsel %vm2610_vm13, %v2613_v52, %v2615_v8  ;;  %v8712_v25 = vmul.f32 %v8429_v53, %v175_v15 }
 0x263   :  { %v8708_v63 = vmul.u32.u64.low %v8669_v49, %v2624_v9  ;;  %v8709_v16 = vmul.u32.u64.high %v8669_v49, %v2624_v9, %v8708_v63  ;;  %v2336_v22 = vclz %v6177_v28  ;;  %6722 = vsinq.f32 %v8641_v12 }
 0x264   :  { %v8715_v11 = vmul.u32.u64.low %v8669_v49, %v2620_v39  ;;  %v8716_v42 = vmul.u32.u64.high %v8669_v49, %v2620_v39, %v8715_v11  ;;  %vm2485_vm0 = vcmp.gt.s32.totalorder %v2484_v5, 0  ;;  %v8723_v27 = vsel %vm8686_vm14, %v8273_v13, %v2147_v48 }
 0x265   :  { %v2324_v0 = vadd.s32 %v8649_v44, %v8646_v40  ;;  %v2486_v54 = vsel %vm2485_vm0, %v2484_v5, 0  ;;  %vm9972_vm13 = vcmp.lt.s32.totalorder %v8278_v6, 0  ;;  %v6178_v28 = vadd.s32 4294967294, %v2336_v22 }
 0x266   :  { %v8729_v53 = vsel %vm9972_vm13, %v2455_v38, %v2454_v21  ;;  %v2632_v14 = vmul.u32 %v8669_v49, %v2616_v60  ;;  %v2488_v57 = vand.u32 31, %v2486_v54  ;;  %vm2634_vm12 = vc.u32 %v8709_v16, %v8715_v11 }
 0x267   :  { %v8734_v12 = vshll.u32 %v2482_v41, 8  ;;  %v2683_v9 = vand.u32 2139095040, %v8712_v25  ;;  %vm6179_vm4 = vcmp.lt.s32.totalorder %v6178_v28, 0  ;;  %v2635_v40 = vadd.s32 1, %v8716_v42 }
 0x268   :  { %v8739_v44 = vshrl.u32 %v2486_v54, 5  ;;  %v2489_v21 = vsub.s32 32, %v2488_v57  ;;  %v2339_v26 = vsel %vm6179_vm4, 0, %v6178_v28  ;;  %v2491_v45 = vshll.u32 %v9834_v2, %v2488_v57 }
 0x269   :  { %v2494_v60 = vshll.u32 %v9835_v61, %v2488_v57  ;;  %v2497_v49 = vshll.u32 %v9836_v34, %v2488_v57  ;;  %v2340_v10 = vsub.s32 32, %v2339_v26  ;;  %v2344_v31 = vsub.s32 4294967266, %v2339_v26 }
 0x26a   :  { %v2636_v52 = vsel %vm2634_vm12, %v2635_v40, %v8716_v42  ;;  %v2500_v8 = vshll.u32 %v9837_v24, %v2488_v57  ;;  %v2341_v43 = vshll.u32 %v8695_v7, %v2339_v26  ;;  %v2492_v48 = vshrl.u32 %v9835_v61, %v2489_v21 }
 0x26b   :  { %v2637_v15 = vadd.s32 %v2636_v52, %v2632_v14  ;;  %v2495_v39 = vshrl.u32 %v9836_v34, %v2489_v21  ;;  %v2342_v36 = vshrl.u32 %v2324_v0, %v2340_v10  ;;  %v2345_v41 = vadd.s32 127, %v2344_v31 }
 0x26c   :  { %v2498_v38 = vshrl.u32 %v9837_v24, %v2489_v21  ;;  %v2501_v5 = vshrl.u32 %v9839_v35, %v2489_v21  ;;  %v9973_v63 = vand.u32 2147483647, %v8278_v6  ;;  %v9974_v22 = vmov 0 }
 0x26d   :  { %v2638_v42 = vadd.s32 536870912, %v2637_v15  ;;  %v2493_v54 = vor.u32 %v2492_v48, %v2491_v45  ;;  %v2496_v7 = vor.u32 %v2495_v39, %v2494_v60  ;;  %v2684_v28 = vshrl.u32 %v2683_v9, 23 }
 0x26e   :  { %vm8753_vm2 = vcmp.le.f32.partialorder %v9973_v63, 0.7853982  ;;  %v2343_v14 = vor.u32 %v2342_v36, %v2341_v43  ;;  %v2346_v40 = vshll.u32 %v2345_v41, 23  ;;  %v2499_v26 = vor.u32 %v2498_v38, %v2497_v49 }
 0x26f   :  { %v9975_v22 = vsel %vm8753_vm2, 4294967295, %v9974_v22  ;;  %v2502_v52 = vor.u32 %v2501_v5, %v2500_v8  ;;  %v8757_v0 = vshrl.u32 %v2638_v42, 30  ;;  %v2490_v10 = vshrl.u32 %v9834_v2, %v2489_v21 }
 0x270   :  { %v2503_v31 = vshll.u32 %v9839_v35, %v2488_v57  ;;  %v2504_v1 = vshrl.u32 %v9827_v3, %v2489_v21  ;;  %v2347_v63 = vor.u32 4788187, %v2346_v40  ;;  %vm2506_vm0 = vcmp.lt.s32.totalorder %v8739_v44, 1  ;;  %v8768_v8 = vpop.eup %6722 }
 0x271   :  { %vm2509_vm12 = vcmp.lt.s32.totalorder %v8739_v44, 4  ;;  %v2350_v9 = vcvt.s32.f32 %v2343_v14  ;;  %v2640_v45 = vshll.u32 %v8757_v0, 30  ;;  %vm2508_vm4 = vcmp.lt.s32.totalorder %v8739_v44, 3 }
 0x272   :  { %v2505_v60 = vor.u32 %v2504_v1, %v2503_v31  ;;  %v2511_v49 = vsel %vm2509_vm12, %v2499_v26, 2102212464  ;;  %v2348_v43 = vand.u32 2147483647, %v2347_v63  ;;  %v2514_v57 = vsel %vm2506_vm0, %v2493_v54, %v2496_v7 }
 0x273   :  { %v2515_v21 = vsel %vm2509_vm12, %v2502_v52, 920167782  ;;  %vm9807_vm13 = vcmp.lt.s32.totalorder %v8432_v55, 0  ;;  %v8776_v48 = vsub.s32 %v2637_v15, %v2640_v45  ;;  %v2510_v1 = vsel %vm2506_vm0, %v2490_v10, %v2493_v54 }
 0x274   :  { %v2516_v39 = vsel %vm2508_vm4, %v2499_v26, %v2515_v21  ;;  %v2518_v36 = vsel %vm2506_vm0, %v2496_v7, %v2499_v26  ;;  %v2351_v41 = vmul.f32 %v2350_v9, %v2348_v43  ;;  %v2512_v38 = vsel %vm2508_vm4, %v2496_v7, %v2511_v49 }
 0x275   :  { %vm9976_vm14 = vcmp.lt.s32.totalorder %v8739_v44, 2  ;;  %v2519_v42 = vsel %vm2509_vm12, %v2505_v60, 1326507024  ;;  %v2643_v14 = vsub.s32 0, %v8776_v48  ;;  %v2459_v54 = vsel %vm8753_vm2, %v8278_v6, %v8729_v53 }
 0x276   :  { %v2517_v5 = vsel %vm9976_vm14, %v2514_v57, %v2516_v39  ;;  %v2520_v40 = vsel %vm2508_vm4, %v2502_v52, %v2519_v42  ;;  %vm9977_vm0 = vmmov %vm9976_vm14  ;;  %v6192_v26 = vadd.s32 4294967169, %v2684_v28  ;;  %v9978_v10 = vand.u32 2147483647, %v8712_v25 }
 0x277   :  { %v8788_v15 = vmul.u32.u64.low %v8734_v12, %v2517_v5  ;;  %v8789_v31 = vmul.u32.u64.high %v8734_v12, %v2517_v5, %v8788_v15  ;;  %v2521_v7 = vsel %vm9977_vm0, %v2518_v36, %v2520_v40  ;;  %6724 = vcosq.f32 %v8723_v27  ;;  %vm9979_vm14 = vmmov %vm9977_vm0 }
 0x278   :  { %v2687_v63 = vand.u32 8388607, %v9978_v10  ;;  %v6189_v52 = vmin.u32 %v2643_v14, %v8776_v48  ;;  %v8803_v9 = vmul.u32.u64.low %v8734_v12, %v2521_v7  ;;  %v8804_v45 = vmul.u32.u64.high %v8734_v12, %v2521_v7, %v8803_v9 }
 0x279   :  { %6726 = vsinq.f32 %v8723_v27  ;;  %v2352_v60 = vxor.u32 2147483648, %v2351_v41  ;;  %v2513_v53 = vsel %vm9979_vm14, %v2510_v1, %v2512_v38  ;;  %v2690_v49 = vadd.s32 1, %v6192_v26 }
 0x27a   :  { %6728 = vcosq.f32 %v2459_v54  ;;  %v2645_v28 = vclz %v6189_v52  ;;  %v2532_v43 = vadd.s32 1, %v8789_v31  ;;  %v9980_v57 = vand.u32 2147483647, %v6964_v30 }
 0x27b   :  { %v2688_v39 = vor.u32 8388608, %v2687_v63  ;;  %vm2691_vm4 = vcmp.gt.s32.totalorder %v2690_v49, 0  ;;  %v294_v36 = vsub.s32 4, %v7091_v58  ;;  %6730 = vsinq.f32 %v2459_v54 }
 0x27c   :  { %vm8812_vm12 = vcmp.le.f32.partialorder %v9980_v57, 0.7853982  ;;  %v6190_v44 = vadd.s32 4294967294, %v2645_v28  ;;  %v2529_v1 = vmul.u32 %v8734_v12, %v2513_v53  ;;  %vm2531_vm0 = vc.u32 %v8804_v45, %v8788_v15 }
 0x27d   :  { %v296_v27 = vsel %vm8812_vm12, %v6964_v30, %v7372_v33  ;;  %v8826_v38 = vsel %vm9807_vm13, %v2352_v60, %v2351_v41  ;;  %v2633_v5 = vadd.s32 %v8715_v11, %v8709_v16  ;;  %v2533_v42 = vsel %vm2531_vm0, %v2532_v43, %v8789_v31 }
 0x27e   :  { %v2692_v14 = vsel %vm2691_vm4, %v2690_v49, 0  ;;  %vm6191_vm14 = vcmp.lt.s32.totalorder %v6190_v44, 0  ;;  %v2534_v40 = vadd.s32 %v2533_v42, %v2529_v1  ;;  %6732 = vcosq.f32 %v296_v27 }
 0x27f   :  { %v2694_v33 = vand.u32 31, %v2692_v14  ;;  %v2648_v54 = vsel %vm6191_vm14, 0, %v6190_v44  ;;  %v8831_v7 = vshll.u32 %v2688_v39, 8  ;;  %vm9983_vm2 = vcmp.lt.s32.totalorder %v6964_v30, 0 }
 0x280   :  { %v295_v12 = vsel %vm9983_vm2, %v294_v36, %v7091_v58  ;;  %6734 = vsinq.f32 %v296_v27  ;;  %v2649_v41 = vsub.s32 32, %v2648_v54  ;;  %v2653_v26 = vsub.s32 4294967266, %v2648_v54 }
 0x281   :  { %v2535_v10 = vadd.s32 536870912, %v2534_v40  ;;  %v2693_v63 = vshrl.u32 %v2692_v14, 5  ;;  %v2650_v16 = vshll.u32 %v8776_v48, %v2648_v54  ;;  %v2695_v11 = vsub.s32 32, %v2694_v33 }
 0x282   :  { %v2697_v31 = vshll.u32 %v9834_v2, %v2694_v33  ;;  %v2700_v52 = vshll.u32 %v9835_v61, %v2694_v33  ;;  %v2651_v9 = vshrl.u32 %v2633_v5, %v2649_v41  ;;  %v2654_v60 = vadd.s32 127, %v2653_v26 }
 0x283   :  { %v8839_v53 = vshrl.u32 %v2535_v10, 30  ;;  %v2703_v49 = vshll.u32 %v9836_v34, %v2694_v33  ;;  %v9984_v58 = vand.u32 2147483647, %v8432_v55  ;;  %v9985_v28 = vmov 0 }
 0x284   :  { %v2698_v43 = vshrl.u32 %v9835_v61, %v2695_v11  ;;  %v2701_v48 = vshrl.u32 %v9836_v34, %v2695_v11  ;;  %v2704_v57 = vshrl.u32 %v9837_v24, %v2695_v11  ;;  %v2706_v39 = vshll.u32 %v9837_v24, %v2694_v33  ;;  %v8854_v5 = vpop.eup %6724 }
 0x285   :  { %vm8844_vm2 = vcmp.le.f32.partialorder %v9984_v58, 0.7853982  ;;  %v2652_v36 = vor.u32 %v2651_v9, %v2650_v16  ;;  %v2655_v27 = vshll.u32 %v2654_v60, 23  ;;  %v2537_v44 = vshll.u32 %v8839_v53, 30 }
 0x286   :  { %v9986_v28 = vsel %vm8844_vm2, 4294967295, %v9985_v28  ;;  %v2707_v1 = vshrl.u32 %v9839_v35, %v2695_v11  ;;  %v2699_v42 = vor.u32 %v2698_v43, %v2697_v31  ;;  %v2702_v14 = vor.u32 %v2701_v48, %v2700_v52  ;;  %v8860_v34 = vpop.eup %6726 }
 0x287   :  { %v2705_v54 = vor.u32 %v2704_v57, %v2703_v49  ;;  %v8858_v61 = vsel %vm8812_vm12, 0, %v295_v12  ;;  %v2656_v41 = vor.u32 4788187, %v2655_v27  ;;  %v8862_v26 = vsub.s32 %v2534_v40, %v2537_v44  ;;  %v8865_v16 = vpop.eup %6728 }
 0x288   :  { %v2696_v24 = vshrl.u32 %v9834_v2, %v2695_v11  ;;  %v2708_v10 = vor.u32 %v2707_v1, %v2706_v39  ;;  %v2659_v9 = vcvt.s32.f32 %v2652_v36  ;;  %v2709_v60 = vshll.u32 %v9839_v35, %v2694_v33  ;;  %v8870_v12 = vpop.eup %6730 }
 0x289   :  { %v2710_v31 = vshrl.u32 %v9827_v3, %v2695_v11  ;;  %vm2712_vm4 = vcmp.lt.s32.totalorder %v2693_v63, 1  ;;  %v2657_v52 = vand.u32 2147483647, %v2656_v41  ;;  %v2540_v21 = vsub.s32 0, %v8862_v26 }
 0x28a   :  { %vm2714_vm12 = vcmp.lt.s32.totalorder %v2693_v63, 3  ;;  %vm2715_vm0 = vcmp.lt.s32.totalorder %v2693_v63, 4  ;;  %v2720_v2 = vsel %vm2712_vm4, %v2699_v42, %v2702_v14  ;;  %vm2713_vm14 = vcmp.lt.s32.totalorder %v2693_v63, 2 }
 0x28b   :  { %v2711_v40 = vor.u32 %v2710_v31, %v2709_v60  ;;  %v2717_v49 = vsel %vm2715_vm0, %v2705_v54, 2102212464  ;;  %v2721_v58 = vsel %vm2715_vm0, %v2708_v10, 920167782  ;;  %v6185_v43 = vmin.u32 %v2540_v21, %v8862_v26  ;;  %v8876_v33 = vpop.eup %6732 }
 0x28c   :  { %v2716_v35 = vsel %vm2712_vm4, %v2696_v24, %v2699_v42  ;;  %v2722_v3 = vsel %vm2714_vm12, %v2705_v54, %v2721_v58  ;;  %v2718_v11 = vsel %vm2714_vm12, %v2702_v14, %v2717_v49  ;;  %v2724_v57 = vsel %vm2712_vm4, %v2702_v14, %v2705_v54 }
 0x28d   :  { %v2723_v48 = vsel %vm2713_vm14, %v2720_v2, %v2722_v3  ;;  %v2725_v39 = vsel %vm2715_vm0, %v2711_v40, 1326507024  ;;  %v8881_v36 = vpop.eup %6734  ;;  %v2356_v27 = vsel %vm8844_vm2, %v8432_v55, %v8826_v38  ;;  %v2660_v44 = vmul.f32 %v2659_v9, %v2657_v52 }
 0x28e   :  { %v2542_v1 = vclz %v6185_v43  ;;  %v2726_v42 = vsel %vm2714_vm12, %v2708_v10, %v2725_v39  ;;  %v8890_v24 = vmul.u32.u64.low %v8831_v7, %v2723_v48  ;;  %v8891_v60 = vmul.u32.u64.high %v8831_v7, %v2723_v48, %v8890_v24 }
 0x28f   :  { %v2727_v41 = vsel %vm2713_vm14, %v2724_v57, %v2726_v42  ;;  %v301_v14 = vand.u32 3, %v8858_v61  ;;  %v2719_v31 = vsel %vm2713_vm14, %v2716_v35, %v2718_v11  ;;  %6736 = vcosq.f32 %v2356_v27 }
 0x290   :  { %v6186_v54 = vadd.s32 4294967294, %v2542_v1  ;;  %v8896_v21 = vmul.u32.u64.low %v8831_v7, %v2727_v41  ;;  %v8897_v40 = vmul.u32.u64.high %v8831_v7, %v2727_v41, %v8896_v21  ;;  %v2530_v38 = vadd.s32 %v8788_v15, %v8804_v45 }
 0x291   :  { %v304_v10 = vxor.u32 2147483648, %v8881_v36  ;;  %v9987_v9 = vand.u32 2147483647, %v8500_v46  ;;  %v9988_v52 = vmov 0  ;;  %v2661_v63 = vxor.u32 2147483648, %v2660_v44 }
 0x292   :  { %vm6187_vm0 = vcmp.lt.s32.totalorder %v6186_v54, 0  ;;  %v9990_v49 = vand.u32 2147483647, %v6980_v51  ;;  %v397_v58 = vsub.s32 4, %v7179_v20  ;;  %v2735_v15 = vmul.u32 %v8831_v7, %v2719_v31 }
 0x293   :  { %vm8905_vm12 = vcmp.le.f32.partialorder %v9987_v9, 0.7853982  ;;  %v2545_v43 = vsel %vm6187_vm0, 0, %v6186_v54  ;;  %v2738_v45 = vadd.s32 1, %v8891_v60  ;;  %v307_v35 = vxor.u32 2147483648, %v8876_v33 }
 0x294   :  { %v9989_v52 = vsel %vm8905_vm12, 4294967295, %v9988_v52  ;;  %vm8911_vm14 = vcmp.le.f32.partialorder %v9990_v49, 0.7853982  ;;  %v2546_v3 = vsub.s32 32, %v2545_v43  ;;  %v2550_v11 = vsub.s32 4294967266, %v2545_v43 }
 0x295   :  { %vm303_vm13 = vcmp.eq.s32.totalorder %v301_v14, 0  ;;  %vm306_vm4 = vcmp.eq.s32.totalorder %v301_v14, 2  ;;  %vm2737_vm2 = vc.u32 %v8897_v40, %v8890_v24  ;;  %vm9993_vm15 = vcmp.lt.s32.totalorder %v6980_v51, 0 }
 0x296   :  { %v305_v48 = vsel %vm303_vm13, %v8876_v33, %v304_v10  ;;  %v398_v57 = vsel %vm9993_vm15, %v397_v58, %v7179_v20  ;;  %v399_v7 = vsel %vm8911_vm14, %v6980_v51, %v8562_v59  ;;  %v2547_v39 = vshll.u32 %v8862_v26, %v2545_v43 }
 0x297   :  { %v2548_v1 = vshrl.u32 %v2530_v38, %v2546_v3  ;;  %v2551_v42 = vadd.s32 127, %v2550_v11  ;;  %v2739_v41 = vsel %vm2737_vm2, %v2738_v45, %v8891_v60  ;;  %v308_v31 = vsel %vm306_vm4, %v307_v35, %v8881_v36 }
 0x298   :  { %v2740_v54 = vadd.s32 %v2739_v41, %v2735_v15  ;;  %v400_v21 = vsel %vm8911_vm14, 0, %v398_v57  ;;  %6738 = vcosq.f32 %v399_v7  ;;  %vm9994_vm15 = vcmp.lt.s32.totalorder %v8500_v46, 0 }
 0x299   :  { %v2662_v20 = vsel %vm9994_vm15, %v2661_v63, %v2660_v44  ;;  %v2549_v9 = vor.u32 %v2548_v1, %v2547_v39  ;;  %v2552_v49 = vshll.u32 %v2551_v42, 23  ;;  %6740 = vsinq.f32 %v399_v7 }
 0x29a   :  { %v2741_v59 = vadd.s32 536870912, %v2740_v54  ;;  %vm302_vm13 = vcmp.lt.s32.totalorder %v301_v14, 2  ;;  %v2889_v26 = vadd.s32 3, %v8858_v61  ;;  %v2993_v38 = vadd.s32 3, %v400_v21 }
 0x29b   :  { %6742 = vsinq.f32 %v2356_v27  ;;  %v2553_v60 = vor.u32 4788187, %v2552_v49  ;;  %v309_v58 = vsel %vm302_vm13, %v305_v48, %v308_v31  ;;  %v500_v43 = vsub.s32 4, %v7063_v37  ;;  %v9997_v31 = vld [vmem:[#allocation5_spill] sm:$0xff] }
 0x29c   :  { %v8940_v2 = vsel %vm8905_vm12, %v8500_v46, %v2662_v20  ;;  %v8943_v44 = vshrl.u32 %v2741_v59, 30  ;;  %vm9810_vm4 = vweird.f32 %v6964_v30  ;;  %v8946_v14 = vand.u32 3, %v400_v21  ;;  %v8959_v57 = vpop.eup %6736 }
 0x29d   :  { %v2554_v61 = vand.u32 2147483647, %v2553_v60  ;;  %v2556_v63 = vcvt.s32.f32 %v2549_v9  ;;  %v2890_v27 = vand.u32 3, %v2889_v26  ;;  %vm9995_vm0 = vcmp.lt.s32.totalorder %v6961_v29, 0  ;;  %v10001_v26 = vld [vmem:[#allocation15_spill] sm:$0xff] }
 0x29e   :  { %v501_v15 = vsel %vm9995_vm0, %v500_v43, %v7063_v37  ;;  %v8952_v45 = vadd.s32 %v8890_v24, %v8897_v40  ;;  %v2743_v3 = vshll.u32 %v8943_v44, 30  ;;  %v8957_v11 = vsel %vm9810_vm4, nan, %v309_v58 }
 0x29f   :  { %v2994_v48 = vand.u32 3, %v2993_v38  ;;  %v2557_v7 = vmul.f32 %v2556_v63, %v2554_v61  ;;  %vm2892_vm14 = vcmp.eq.s32.totalorder %v2890_v27, 0  ;;  %vm2895_vm15 = vcmp.eq.s32.totalorder %v2890_v27, 2  ;;  %v10002_v61 = vld [vmem:[#allocation14_spill] sm:$0xff] }
 0x2a0   :  { %v503_v39 = vsel %vm7244_vm3, 0, %v501_v15  ;;  %v8963_v1 = vsub.s32 %v2740_v54, %v2743_v3  ;;  %vm2891_vm13 = vcmp.lt.s32.totalorder %v2890_v27, 2  ;;  %v2894_v37 = vsel %vm2892_vm14, %v8876_v33, %v304_v10 }
 0x2a1   :  { %v2897_v24 = vsel %vm2895_vm15, %v307_v35, %v8881_v36  ;;  %v2558_v40 = vxor.u32 2147483648, %v2557_v7  ;;  %vm406_vm2 = vcmp.eq.s32.totalorder %v8946_v14, 0  ;;  %vm409_vm12 = vcmp.eq.s32.totalorder %v8946_v14, 2 }
 0x2a2   :  { %v2898_v42 = vsel %vm2891_vm13, %v2894_v37, %v2897_v24  ;;  %v2746_v41 = vsub.s32 0, %v8963_v1  ;;  %v9813_v62 = vxor.u32 2147483648, %v7348_v23  ;;  %v603_v54 = vsub.s32 4, %v7122_v17 }
 0x2a3   :  { %vm2996_vm14 = vcmp.eq.s32.totalorder %v2994_v48, 0  ;;  %v9812_v33 = vxor.u32 2147483648, %v7342_v47  ;;  %v3097_v36 = vadd.s32 3, %v503_v39  ;;  %vm9996_vm15 = vweird.f32 %v6964_v30 }
 0x2a4   :  { %v6193_v10 = vmin.u32 %v2746_v41, %v8963_v1  ;;  %v2899_v35 = vsel %vm9996_vm15, nan, %v2898_v42  ;;  %vm2999_vm13 = vcmp.eq.s32.totalorder %v2994_v48, 2  ;;  %vm9998_vm4 = vcmp.lt.s32.totalorder %v9997_v31, 0 }
 0x2a5   :  { %v604_v21 = vsel %vm9998_vm4, %v603_v54, %v7122_v17  ;;  %v6739_v20 = vpop.eup %6738  ;;  %vm9999_vm0 = vcmp.lt.s32.totalorder %v8599_v18, 0  ;;  %v613_v38 = vxor.u32 2147483648, %v10001_v26  ;;  %v3098_v60 = vand.u32 3, %v3097_v36 }
 0x2a6   :  { %v8983_v9 = vsel %vm9999_vm0, %v2558_v40, %v2557_v7  ;;  %v606_v59 = vsel %vm7278_vm8, 0, %v604_v21  ;;  %v6741_v58 = vpop.eup %6740  ;;  %v2748_v43 = vclz %v6193_v10  ;;  %v410_v30 = vxor.u32 2147483648, %v6739_v20 }
 0x2a7   :  { %v3201_v27 = vadd.s32 3, %v606_v59  ;;  %v407_v17 = vxor.u32 2147483648, %v6741_v58  ;;  %vm3100_vm3 = vcmp.eq.s32.totalorder %v3098_v60, 0  ;;  %vm3103_vm0 = vcmp.eq.s32.totalorder %v3098_v60, 2 }
 0x2a8   :  { %v507_v15 = vand.u32 3, %v503_v39  ;;  %v8991_v3 = vpop.eup %6742  ;;  %v6194_v7 = vadd.s32 4294967294, %v2748_v43  ;;  %v411_v37 = vsel %vm409_vm12, %v410_v30, %v6741_v58  ;;  %v3001_v24 = vsel %vm2999_vm13, %v410_v30, %v6741_v58  ;;  %v10008_v58 = vld [vmem:[#allocation11_spill] sm:$0xff] }
 0x2a9   :  { %v3102_v40 = vsel %vm3100_vm3, %v7342_v47, %v9813_v62  ;;  %v408_v42 = vsel %vm406_vm2, %v6739_v20, %v407_v17  ;;  %v2998_v41 = vsel %vm2996_vm14, %v6739_v20, %v407_v17  ;;  %v3105_v39 = vsel %vm3103_vm0, %v9812_v33, %v7348_v23 }
 0x2aa   :  { %v3202_v54 = vand.u32 3, %v3201_v27  ;;  %v10003_v36 = vand.u32 2147483647, %v8599_v18  ;;  %vm6195_vm12 = vcmp.lt.s32.totalorder %v6194_v7, 0  ;;  %vm10006_vm13 = vcmp.lt.s32.totalorder %v8946_v14, 2 }
 0x2ab   :  { %v412_v21 = vsel %vm10006_vm13, %v408_v42, %v411_v37  ;;  %vm10007_vm3 = vcmp.lt.s32.totalorder %v2994_v48, 2  ;;  %v706_v43 = vsub.s32 4, %v10008_v58  ;;  %v2751_v20 = vsel %vm6195_vm12, 0, %v6194_v7 }
 0x2ac   :  { %vm9007_vm8 = vcmp.le.f32.partialorder %v10003_v36, 0.7853982  ;;  %v3002_v49 = vsel %vm10007_vm3, %v2998_v41, %v3001_v24  ;;  %vm10009_vm2 = vweird.f32 %v6980_v51  ;;  %vm3099_vm0 = vcmp.lt.s32.totalorder %v3098_v60, 2 }
 0x2ad   :  { %v413_v30 = vsel %vm10009_vm2, nan, %v412_v21  ;;  %vm10010_vm14 = vmmov %vm10009_vm2  ;;  %v2752_v17 = vsub.s32 32, %v2751_v20  ;;  %v2756_v36 = vsub.s32 4294967266, %v2751_v20  ;;  %v3106_v62 = vsel %vm3099_vm0, %v3102_v40, %v3105_v39 }
 0x2ae   :  { %v3003_v27 = vsel %vm10010_vm14, nan, %v3002_v49  ;;  %v2783_v63 = vpack.c.bf16 %v413_v30, %v8957_v11  ;;  %vm3203_vm4 = vcmp.lt.s32.totalorder %v3202_v54, 2  ;;  %vm3204_vm13 = vcmp.eq.s32.totalorder %v3202_v54, 0 }
 0x2af   :  { %v5396_v33 = vpack.c.bf16 %v3003_v27, %v2899_v35  ;;  %vm3207_vm15 = vcmp.eq.s32.totalorder %v3202_v54, 2  ;;  %v2754_v14 = vshrl.u32 %v8952_v45, %v2752_v17  ;;  %v2757_v48 = vadd.s32 127, %v2756_v36 }
 0x2b0   :  { %v3206_v7 = vsel %vm3204_vm13, %v10002_v61, %v613_v38  ;;  %v10011_v51 = vxor.u32 2147483648, %v10002_v61  ;;  %v2753_v35 = vshll.u32 %v8963_v1, %v2751_v20  ;;  %vm10012_vm12 = vweird.f32 %v6961_v29  ;;  %v10019_v20 = vld [vmem:[#allocation8_spill] sm:$0xff] }
 0x2b1   :  { %5576 = vmatprep.mubr.bf16.mxu0 %v5396_v33  ;;  %v3107_v11 = vsel %vm10012_vm12, nan, %v3106_v62  ;;  %vm509_vm3 = vcmp.eq.s32.totalorder %v507_v15, 0  ;;  %v2758_v24 = vshll.u32 %v2757_v48, 23  ;;  %vm10013_vm2 = vweird.f32 %v9997_v31 }
 0x2b2   :  { %v3209_v60 = vsel %vm3207_vm15, %v10011_v51, %v10001_v26  ;;  %5577 = vmatmul.mubr.bf16.vlgmr.msra.gmra.mxu0 %v2783_v63  ;;  %v10014_v33 = vxor.u32 2147483648, %v7348_v23  ;;  %vm512_vm14 = vcmp.eq.s32.totalorder %v507_v15, 2  ;;  %v10015_v41 = vxor.u32 2147483648, %v7342_v47 }
 0x2b3   :  { %v3210_v37 = vsel %vm3203_vm4, %v3206_v7, %v3209_v60  ;;  %v610_v63 = vand.u32 3, %v606_v59  ;;  %vm10016_vm15 = vcmp.lt.s32.totalorder %v7177_v19, 0  ;;  %6744 = vcosq.f32 %v8940_v2  ;;  %v10024_v7 = vld [vmem:[#allocation30_spill] sm:$0xff] }
 0x2b4   :  { %v3211_v45 = vsel %vm10013_vm2, nan, %v3210_v37  ;;  %v511_v40 = vsel %vm509_vm3, %v7342_v47, %v10014_v33  ;;  %v514_v1 = vsel %vm512_vm14, %v10015_v41, %v7348_v23  ;;  %v707_v62 = vsel %vm10016_vm15, %v706_v43, %v10008_v58  ;;  %v10027_v33 = vld [vmem:[#allocation21_spill] sm:$0xff] }
 0x2b5   :  { %v5397_v42 = vpack.c.bf16 %v3211_v45, %v3107_v11  ;;  %v2755_v39 = vor.u32 %v2754_v14, %v2753_v35  ;;  %v2759_v54 = vor.u32 4788187, %v2758_v24  ;;  %vm508_vm4 = vcmp.lt.s32.totalorder %v507_v15, 2  ;;  %v10023_v14 = vld [vmem:[#allocation31_spill] sm:$0xff]  ;;  %v10026_v24 = vld [vmem:[#allocation29_spill] sm:$0xff] }
 0x2b6   :  { %v9046_v21 = vsel %vm9007_vm8, %v8599_v18, %v8983_v9  ;;  %v515_v49 = vsel %vm508_vm4, %v511_v40, %v514_v1  ;;  %vm612_vm0 = vcmp.eq.s32.totalorder %v610_v63, 0  ;;  %vm615_vm13 = vcmp.eq.s32.totalorder %v610_v63, 2  ;;  %v10028_v41 = vld [vmem:[#allocation17_spill] sm:$0xff] }
 0x2b7   :  { %5584 = vmatprep.mubr.bf16.mxu0 %v5397_v42  ;;  %vm611_vm12 = vcmp.lt.s32.totalorder %v610_v63, 2  ;;  %v614_v47 = vsel %vm612_vm0, %v10002_v61, %v613_v38  ;;  %v10017_v23 = vmov %v10011_v51  ;;  %v709_v58 = vsel %vm7630_vm1, 0, %v707_v62 }
 0x2b8   :  { %v617_v59 = vsel %vm615_vm13, %v10017_v23, %v10001_v26  ;;  %6746 = vsinq.f32 %v8940_v2  ;;  %v2760_v9 = vand.u32 2147483647, %v2759_v54  ;;  %v809_v30 = vsub.s32 4, %v10019_v20  ;;  %v10021_v26 = vld [vmem:[#allocation6_spill] sm:$0xff] }
 0x2b9   :  { %v618_v43 = vsel %vm611_vm12, %v614_v47, %v617_v59  ;;  %6748 = vcosq.f32 %v9046_v21  ;;  %v2762_v27 = vcvt.s32.f32 %v2755_v39  ;;  %vm10020_vm3 = vweird.f32 %v6961_v29 }
 0x2ba   :  { %v516_v17 = vsel %vm10020_vm3, nan, %v515_v49  ;;  %v619_v38 = vsel %vm10013_vm2, nan, %v618_v43  ;;  %vm712_vm14 = vweird.f32 %v7177_v19  ;;  %vm10022_vm1 = vcmp.lt.s32.totalorder %v10021_v26, 0 }
 0x2bb   :  { %v2784_v61 = vpack.c.bf16 %v619_v38, %v516_v17  ;;  %v810_v2 = vsel %vm10022_vm1, %v809_v30, %v10019_v20  ;;  %v3305_v36 = vadd.s32 3, %v709_v58  ;;  %v716_v48 = vxor.u32 2147483648, %v10023_v14  ;;  %v10030_v38 = vld [vmem:[#allocation10_spill] sm:$0xff] }
 0x2bc   :  { %v719_v51 = vxor.u32 2147483648, %v10024_v7  ;;  %v812_v35 = vsel %vm7507_vm6, 0, %v810_v2  ;;  %v713_v29 = vand.u32 3, %v709_v58  ;;  %v9071_v11 = vmul.f32 %v2762_v27, %v2760_v9 }
 0x2bd   :  { %5585 = vmatmul.mubr.bf16.gmra.mxu0 %v2784_v61  ;;  %v3306_v31 = vand.u32 3, %v3305_v36  ;;  %v3409_v37 = vadd.s32 3, %v812_v35  ;;  %v819_v45 = vxor.u32 2147483648, %v10026_v24  ;;  %v822_v40 = vxor.u32 2147483648, %v10027_v33 }
 0x2be   :  { %v816_v42 = vand.u32 3, %v812_v35  ;;  %v912_v1 = vsub.s32 4, %v10028_v41  ;;  %vm715_vm13 = vcmp.eq.s32.totalorder %v713_v29, 0  ;;  %vm718_vm12 = vcmp.eq.s32.totalorder %v713_v29, 2  ;;  %v10034_v35 = vld [vmem:[#allocation13_spill] sm:$0xff] }
 0x2bf   :  { %vm3308_vm4 = vcmp.eq.s32.totalorder %v3306_v31, 0  ;;  %vm3311_vm0 = vcmp.eq.s32.totalorder %v3306_v31, 2  ;;  %vm3307_vm6 = vcmp.lt.s32.totalorder %v3306_v31, 2  ;;  %v3410_v39 = vand.u32 3, %v3409_v37  ;;  %v10035_v37 = vld [vmem:[#allocation37_spill] sm:$0xff] }
 0x2c0   :  { %v3310_v63 = vsel %vm3308_vm4, %v10024_v7, %v716_v48  ;;  %v3313_v62 = vsel %vm3311_vm0, %v719_v51, %v10023_v14  ;;  %vm714_vm3 = vcmp.lt.s32.totalorder %v713_v29, 2  ;;  %v717_v49 = vsel %vm715_vm13, %v10024_v7, %v716_v48  ;;  %v9083_v59 = vpop.eup %6744 }
 0x2c1   :  { %v3314_v54 = vsel %vm3307_vm6, %v3310_v63, %v3313_v62  ;;  %v720_v47 = vsel %vm718_vm12, %v719_v51, %v10023_v14  ;;  %vm3411_vm2 = vcmp.lt.s32.totalorder %v3410_v39, 2  ;;  %vm3412_vm1 = vcmp.eq.s32.totalorder %v3410_v39, 0  ;;  %v10040_v62 = vld [vmem:[#allocation33_spill] sm:$0xff] }
 0x2c2   :  { %v3315_v23 = vsel %vm712_vm14, nan, %v3314_v54  ;;  %vm3415_vm15 = vcmp.eq.s32.totalorder %v3410_v39, 2  ;;  %v3414_v15 = vsel %vm3412_vm1, %v10027_v33, %v819_v45  ;;  %v721_v9 = vsel %vm714_vm3, %v717_v49, %v720_v47  ;;  %v10041_v49 = vld [vmem:[#allocation24_spill] sm:$0xff] }
 0x2c3   :  { %v3417_v58 = vsel %vm3415_vm15, %v822_v40, %v10026_v24  ;;  %vm817_vm4 = vcmp.lt.s32.totalorder %v816_v42, 2  ;;  %v722_v20 = vsel %vm712_vm14, nan, %v721_v9  ;;  %vm818_vm0 = vcmp.eq.s32.totalorder %v816_v42, 0 }
 0x2c4   :  { %v3418_v43 = vsel %vm3411_vm2, %v3414_v15, %v3417_v58  ;;  %vm821_vm13 = vcmp.eq.s32.totalorder %v816_v42, 2  ;;  %vm10029_vm12 = vweird.f32 %v10021_v26  ;;  %v820_v27 = vsel %vm818_vm0, %v10027_v33, %v819_v45  ;;  %v10036_v33 = vld [vmem:[#allocation7_spill] sm:$0xff]  ;;  %v10038_v42 = vld [vmem:[#allocation34_spill] sm:$0xff] }
 0x2c5   :  { %v3419_v30 = vsel %vm10029_vm12, nan, %v3418_v43  ;;  %v823_v17 = vsel %vm821_vm13, %v822_v40, %v10026_v24  ;;  %vm10031_vm6 = vcmp.lt.s32.totalorder %v10030_v38, 0  ;;  %v9096_v2 = vpop.eup %6746  ;;  %6750 = vsinq.f32 %v9046_v21  ;;  %vm10033_vm14 = vmmov %vm10029_vm12 }
 0x2c6   :  { %v913_v61 = vsel %vm10031_vm6, %v912_v1, %v10028_v41  ;;  %v5398_v36 = vpack.c.bf16 %v3419_v30, %v3315_v23  ;;  %v824_v19 = vsel %vm817_vm4, %v820_v27, %v823_v17  ;;  %v9101_v7 = vpop.eup %6748  ;;  %v2764_v51 = vxor.u32 2147483648, %v9071_v11 }
 0x2c7   :  { %v915_v48 = vsel %vm7689_vm7, 0, %v913_v61  ;;  %v825_v60 = vsel %vm10033_vm14, nan, %v824_v19  ;;  %vm918_vm15 = vweird.f32 %v10030_v38  ;;  %v1015_v29 = vsub.s32 4, %v10034_v35  ;;  %v10042_v61 = vld [vmem:[#allocation16_spill] sm:$0xff] }
 0x2c8   :  { %5592 = vmatprep.mubr.bf16.mxu0 %v5398_v36  ;;  %v2785_v31 = vpack.c.bf16 %v825_v60, %v722_v20  ;;  %v922_v21 = vxor.u32 2147483648, %v7885_v32  ;;  %v925_v24 = vxor.u32 2147483648, %v10035_v37  ;;  %v3513_v45 = vadd.s32 3, %v915_v48 }
 0x2c9   :  { %vm10037_vm7 = vcmp.lt.s32.totalorder %v10036_v33, 0  ;;  %vm1021_vm3 = vweird.f32 %v10036_v33  ;;  %v1025_v26 = vxor.u32 2147483648, %v10038_v42  ;;  %v919_v41 = vand.u32 3, %v915_v48 }
 0x2ca   :  { %v1016_v40 = vsel %vm10037_vm7, %v1015_v29, %v10034_v35  ;;  %5593 = vmatmul.mubr.bf16.gmra.mxu0 %v2785_v31  ;;  %v1028_v39 = vxor.u32 2147483648, %v10040_v62  ;;  %v3514_v54 = vand.u32 3, %v3513_v45  ;;  %v1118_v47 = vsub.s32 4, %v10041_v49 }
 0x2cb   :  { %v1018_v63 = vsel %vm7646_vm11, 0, %v1016_v40  ;;  %vm920_vm2 = vcmp.lt.s32.totalorder %v919_v41, 2  ;;  %vm921_vm1 = vcmp.eq.s32.totalorder %v919_v41, 0  ;;  %vm924_vm4 = vcmp.eq.s32.totalorder %v919_v41, 2 }
 0x2cc   :  { %v3617_v23 = vadd.s32 3, %v1018_v63  ;;  %vm3515_vm0 = vcmp.lt.s32.totalorder %v3514_v54, 2  ;;  %vm3516_vm13 = vcmp.eq.s32.totalorder %v3514_v54, 0  ;;  %vm3519_vm12 = vcmp.eq.s32.totalorder %v3514_v54, 2 }
 0x2cd   :  { %v923_v15 = vsel %vm921_vm1, %v10035_v37, %v922_v21  ;;  %v3518_v58 = vsel %vm3516_vm13, %v10035_v37, %v922_v21  ;;  %v3521_v9 = vsel %vm3519_vm12, %v925_v24, %v7885_v32  ;;  %v926_v20 = vsel %vm924_vm4, %v925_v24, %v7885_v32  ;;  %v10045_v24 = vld [vmem:[#allocation20_spill] sm:$0xff] }
 0x2ce   :  { %v3618_v43 = vand.u32 3, %v3617_v23  ;;  %v3522_v30 = vsel %vm3515_vm0, %v3518_v58, %v3521_v9  ;;  %v927_v27 = vsel %vm920_vm2, %v923_v15, %v926_v20  ;;  %v1022_v17 = vand.u32 3, %v1018_v63  ;;  %v10046_v63 = vld [vmem:[#allocation49_spill] sm:$0xff]  ;;  %v10057_v15 = vld [vmem:[#allocation55_spill] sm:$0xff] }
 0x2cf   :  { %vm10043_vm11 = vcmp.lt.s32.totalorder %v10042_v61, 0  ;;  %v3523_v19 = vsel %vm918_vm15, nan, %v3522_v30  ;;  %v928_v32 = vsel %vm918_vm15, nan, %v927_v27  ;;  %vm1124_vm0 = vweird.f32 %v10042_v61  ;;  %v10052_v30 = vld [vmem:[#allocation41_spill] sm:$0xff] }
 0x2d0   :  { %v1119_v36 = vsel %vm10043_vm11, %v1118_v47, %v10041_v49  ;;  %vm3619_vm6 = vcmp.lt.s32.totalorder %v3618_v43, 2  ;;  %vm3620_vm14 = vcmp.eq.s32.totalorder %v3618_v43, 0  ;;  %vm3623_vm7 = vcmp.eq.s32.totalorder %v3618_v43, 2  ;;  %v10051_v43 = vld [vmem:[#allocation36_spill] sm:$0xff] }
 0x2d1   :  { %v3622_v14 = vsel %vm3620_vm14, %v10040_v62, %v1025_v26  ;;  %v3625_v48 = vsel %vm3623_vm7, %v1028_v39, %v10038_v42  ;;  %vm1023_vm1 = vcmp.lt.s32.totalorder %v1022_v17, 2  ;;  %vm1024_vm2 = vcmp.eq.s32.totalorder %v1022_v17, 0 }
 0x2d2   :  { %v3626_v60 = vsel %vm3619_vm6, %v3622_v14, %v3625_v48  ;;  %vm1027_vm4 = vcmp.eq.s32.totalorder %v1022_v17, 2  ;;  %v1121_v29 = vsel %vm7843_vm9, 0, %v1119_v36  ;;  %v1026_v21 = vsel %vm1024_vm2, %v10040_v62, %v1025_v26  ;;  %v9140_v38 = vpop.eup %6750  ;;  %v10047_v26 = vld [vmem:[#allocation12_spill] sm:$0xff] }
 0x2d3   :  { %v3627_v31 = vsel %vm1021_vm3, nan, %v3626_v60  ;;  %v1029_v37 = vsel %vm1027_vm4, %v1028_v39, %v10038_v42  ;;  %v1221_v45 = vsub.s32 4, %v10045_v24  ;;  %vm2682_vm15 = vcmp.lt.s32.totalorder %v8712_v25, 0  ;;  %v10049_v62 = vld [vmem:[#allocation48_spill] sm:$0xff] }
 0x2d4   :  { %v5399_v40 = vpack.c.bf16 %v3627_v31, %v3523_v19  ;;  %v1030_v41 = vsel %vm1023_vm1, %v1026_v21, %v1029_v37  ;;  %v1128_v1 = vxor.u32 2147483648, %v7991_v4  ;;  %v1131_v54 = vxor.u32 2147483648, %v10046_v63  ;;  %v10053_v19 = vld [vmem:[#allocation22_spill] sm:$0xff] }
 0x2d5   :  { %v1031_v49 = vsel %vm1021_vm3, nan, %v1030_v41  ;;  %vm10048_vm9 = vcmp.lt.s32.totalorder %v10047_v26, 0  ;;  %v1231_v39 = vxor.u32 2147483648, %v10049_v62  ;;  %v3721_v47 = vadd.s32 3, %v1121_v29 }
 0x2d6   :  { %v1222_v42 = vsel %vm10048_vm9, %v1221_v45, %v10045_v24  ;;  %5600 = vmatprep.mubr.bf16.mxu0 %v5399_v40  ;;  %v2786_v23 = vpack.c.bf16 %v1031_v49, %v928_v32  ;;  %v1125_v9 = vand.u32 3, %v1121_v29  ;;  %v1324_v20 = vsub.s32 4, %v10051_v43 }
 0x2d7   :  { %v1224_v58 = vsel %vm7754_vm5, 0, %v1222_v42  ;;  %v1234_v27 = vxor.u32 2147483648, %v10052_v30  ;;  %v3722_v17 = vand.u32 3, %v3721_v47  ;;  %vm10054_vm11 = vcmp.lt.s32.totalorder %v10053_v19, 0  ;;  %v10056_v47 = vld [vmem:[#allocation56_spill] sm:$0xff] }
 0x2d8   :  { %v3825_v33 = vadd.s32 3, %v1224_v58  ;;  %v1228_v36 = vand.u32 3, %v1224_v58  ;;  %5601 = vmatmul.mubr.bf16.gmra.mxu0 %v2786_v23  ;;  %vm1126_vm3 = vcmp.lt.s32.totalorder %v1125_v9, 2  ;;  %vm1127_vm13 = vcmp.eq.s32.totalorder %v1125_v9, 0 }
 0x2d9   :  { %vm1130_vm12 = vcmp.eq.s32.totalorder %v1125_v9, 2  ;;  %v1325_v14 = vsel %vm10054_vm11, %v1324_v20, %v10051_v43  ;;  %vm3723_vm6 = vcmp.lt.s32.totalorder %v3722_v17, 2  ;;  %vm3724_vm14 = vcmp.eq.s32.totalorder %v3722_v17, 0  ;;  %v10058_v9 = vld [vmem:[#allocation28_spill] sm:$0xff]  ;;  %v10059_v20 = vld [vmem:[#allocation51_spill] sm:$0xff] }
 0x2da   :  { %vm3727_vm7 = vcmp.eq.s32.totalorder %v3722_v17, 2  ;;  %v3826_v48 = vand.u32 3, %v3825_v33  ;;  %v3726_v32 = vsel %vm3724_vm14, %v10046_v63, %v1128_v1  ;;  %v1129_v35 = vsel %vm1127_vm13, %v10046_v63, %v1128_v1 }
 0x2db   :  { %v3729_v60 = vsel %vm3727_vm7, %v1131_v54, %v7991_v4  ;;  %v1132_v29 = vsel %vm1130_vm12, %v1131_v54, %v7991_v4  ;;  %v2765_v40 = vsel %vm2682_vm15, %v2764_v51, %v9071_v11  ;;  %vm1227_vm4 = vweird.f32 %v10047_v26 }
 0x2dc   :  { %v3730_v31 = vsel %vm3723_vm6, %v3726_v32, %v3729_v60  ;;  %vm3827_vm5 = vcmp.lt.s32.totalorder %v3826_v48, 2  ;;  %vm3828_vm1 = vcmp.eq.s32.totalorder %v3826_v48, 0  ;;  %vm3831_vm2 = vcmp.eq.s32.totalorder %v3826_v48, 2  ;;  %v10065_v48 = vld [vmem:[#allocation50_spill] sm:$0xff]  ;;  %v10066_v60 = vld [vmem:[#allocation45_spill] sm:$0xff] }
 0x2dd   :  { %v3731_v21 = vsel %vm1124_vm0, nan, %v3730_v31  ;;  %v3830_v37 = vsel %vm3828_vm1, %v10052_v30, %v1231_v39  ;;  %v3833_v24 = vsel %vm3831_vm2, %v1234_v27, %v10049_v62  ;;  %v1133_v45 = vsel %vm1126_vm3, %v1129_v35, %v1132_v29  ;;  %v10067_v35 = vld [vmem:[#allocation43_spill] sm:$0xff] }
 0x2de   :  { %v3834_v4 = vsel %vm3827_vm5, %v3830_v37, %v3833_v24  ;;  %vm1230_vm9 = vcmp.eq.s32.totalorder %v1228_v36, 0  ;;  %vm1233_vm13 = vcmp.eq.s32.totalorder %v1228_v36, 2  ;;  %v1327_v54 = vsel %vm7941_vm10, 0, %v1325_v14 }
 0x2df   :  { %v3835_v41 = vsel %vm1227_vm4, nan, %v3834_v4  ;;  %v1232_v1 = vsel %vm1230_vm9, %v10052_v30, %v1231_v39  ;;  %vm1330_vm3 = vweird.f32 %v10053_v19  ;;  %v1134_v42 = vsel %vm1124_vm0, nan, %v1133_v45 }
 0x2e0   :  { %v5400_v49 = vpack.c.bf16 %v3835_v41, %v3731_v21  ;;  %vm1229_vm12 = vcmp.lt.s32.totalorder %v1228_v36, 2  ;;  %v1235_v11 = vsel %vm1233_vm13, %v1234_v27, %v10049_v62  ;;  %v1334_v23 = vxor.u32 2147483648, %v10056_v47  ;;  %v10063_v27 = vld [vmem:[#allocation18_spill] sm:$0xff] }
 0x2e1   :  { %v1236_v51 = vsel %vm1229_vm12, %v1232_v1, %v1235_v11  ;;  %v1337_v58 = vxor.u32 2147483648, %v10057_v15  ;;  %v1427_v39 = vsub.s32 4, %v10058_v9  ;;  %v1437_v30 = vxor.u32 2147483648, %v10059_v20 }
 0x2e2   :  { %5608 = vmatprep.mubr.bf16.mxu0 %v5400_v49  ;;  %v1237_v43 = vsel %vm1227_vm4, nan, %v1236_v51  ;;  %v3929_v17 = vadd.s32 3, %v1327_v54  ;;  %v1331_v33 = vand.u32 3, %v1327_v54  ;;  %v10060_v61 = vand.u32 2147483647, %v8712_v25 }
 0x2e3   :  { %v2787_v62 = vpack.c.bf16 %v1237_v43, %v1134_v42  ;;  %vm10064_vm0 = vcmp.lt.s32.totalorder %v10063_v27, 0  ;;  %v1440_v32 = vxor.u32 2147483648, %v10065_v48  ;;  %v1530_v26 = vsub.s32 4, %v10066_v60 }
 0x2e4   :  { %vm9190_vm10 = vcmp.le.f32.partialorder %v10060_v61, 0.7853982  ;;  %v1428_v14 = vsel %vm10064_vm0, %v1427_v39, %v10058_v9  ;;  %vm10068_vm11 = vnez %v10067_v35  ;;  %v3930_v31 = vand.u32 3, %v3929_v17  ;;  %v10071_v17 = vld [vmem:[#allocation57_spill] sm:$0xff]  ;;  %v10073_v61 = vld [vmem:[#allocation40_spill] sm:$0xff]  ;;  %v10076_v35 = vld [vmem:[#allocation27_spill] sm:$0xff] }
 0x2e5   :  { %v1430_v29 = vsel %vm10068_vm11, 0, %v1428_v14  ;;  %vm1332_vm6 = vcmp.lt.s32.totalorder %v1331_v33, 2  ;;  %vm1333_vm14 = vcmp.eq.s32.totalorder %v1331_v33, 0  ;;  %5609 = vmatmul.mubr.bf16.gmra.mxu0 %v2787_v62  ;;  %vm1336_vm7 = vcmp.eq.s32.totalorder %v1331_v33, 2 }
 0x2e6   :  { %v4033_v21 = vadd.s32 3, %v1430_v29  ;;  %v1335_v37 = vsel %vm1333_vm14, %v10057_v15, %v1334_v23  ;;  %v1434_v24 = vand.u32 3, %v1430_v29  ;;  %vm3931_vm5 = vcmp.lt.s32.totalorder %v3930_v31, 2 }
 0x2e7   :  { %vm3932_vm1 = vcmp.eq.s32.totalorder %v3930_v31, 0  ;;  %vm3935_vm2 = vcmp.eq.s32.totalorder %v3930_v31, 2  ;;  %v1338_v45 = vsel %vm1336_vm7, %v1337_v58, %v10056_v47  ;;  %vm1433_vm4 = vweird.f32 %v10063_v27  ;;  %v10078_v31 = vld [vmem:[#allocation61_spill] sm:$0xff] }
 0x2e8   :  { %v3934_v4 = vsel %vm3932_vm1, %v10057_v15, %v1334_v23  ;;  %v3937_v41 = vsel %vm3935_vm2, %v1337_v58, %v10056_v47  ;;  %v4034_v1 = vand.u32 3, %v4033_v21  ;;  %v1339_v63 = vsel %vm1332_vm6, %v1335_v37, %v1338_v45  ;;  %v10069_v58 = vld [vmem:[#allocation35_spill] sm:$0xff]  ;;  %v10079_v37 = vld [vmem:[#allocation53_spill] sm:$0xff]  ;;  %v10081_v45 = vld [vmem:[#allocation60_spill] sm:$0xff] }
 0x2e9   :  { %v3938_v54 = vsel %vm3931_vm5, %v3934_v4, %v3937_v41  ;;  %v1340_v49 = vsel %vm1330_vm3, nan, %v1339_v63  ;;  %vm1436_vm9 = vcmp.eq.s32.totalorder %v1434_v24, 0  ;;  %vm1439_vm11 = vcmp.eq.s32.totalorder %v1434_v24, 2 }
 0x2ea   :  { %v3939_v42 = vsel %vm1330_vm3, nan, %v3938_v54  ;;  %vm4035_vm13 = vcmp.lt.s32.totalorder %v4034_v1, 2  ;;  %vm4036_vm12 = vcmp.eq.s32.totalorder %v4034_v1, 0  ;;  %vm4039_vm0 = vcmp.eq.s32.totalorder %v4034_v1, 2  ;;  %v10082_v1 = vld [vmem:[#allocation54_spill] sm:$0xff] }
 0x2eb   :  { %v4038_v11 = vsel %vm4036_vm12, %v10065_v48, %v1437_v30  ;;  %v4041_v51 = vsel %vm4039_vm0, %v1440_v32, %v10059_v20  ;;  %v1438_v47 = vsel %vm1436_vm9, %v10065_v48, %v1437_v30  ;;  %vm1435_vm6 = vcmp.lt.s32.totalorder %v1434_v24, 2  ;;  %v10074_v48 = vld [vmem:[#allocation65_spill] sm:$0xff] }
 0x2ec   :  { %v4042_v23 = vsel %vm4035_vm13, %v4038_v11, %v4041_v51  ;;  %v1441_v15 = vsel %vm1439_vm11, %v1440_v32, %v10059_v20  ;;  %vm10070_vm14 = vcmp.lt.s32.totalorder %v10069_v58, 0  ;;  %v9220_v19 = vsel %vm9190_vm10, %v8712_v25, %v2765_v40  ;;  %v10075_v40 = vld [vmem:[#allocation64_spill] sm:$0xff] }
 0x2ed   :  { %v1531_v9 = vsel %vm10070_vm14, %v1530_v26, %v10066_v60  ;;  %v4043_v39 = vsel %vm1433_vm4, nan, %v4042_v23  ;;  %v1442_v43 = vsel %vm1435_vm6, %v1438_v47, %v1441_v15  ;;  %vm10072_vm3 = vnez %v10071_v17 }
 0x2ee   :  { %v1533_v30 = vsel %vm10072_vm3, 0, %v1531_v9  ;;  %v5401_v33 = vpack.c.bf16 %v4043_v39, %v3939_v42  ;;  %v1443_v20 = vsel %vm1433_vm4, nan, %v1442_v43  ;;  %vm1536_vm7 = vweird.f32 %v10069_v58  ;;  %v10083_v39 = vld [vmem:[#allocation42_spill] sm:$0xff] }
 0x2ef   :  { %v1633_v62 = vsub.s32 4, %v10073_v61  ;;  %v2788_v14 = vpack.c.bf16 %v1443_v20, %v1340_v49  ;;  %v1540_v32 = vxor.u32 2147483648, %v10074_v48  ;;  %v1543_v60 = vxor.u32 2147483648, %v10075_v40 }
 0x2f0   :  { %v4137_v26 = vadd.s32 3, %v1533_v30  ;;  %5616 = vmatprep.mubr.bf16.mxu0 %v5401_v33  ;;  %vm10077_vm5 = vcmp.lt.s32.totalorder %v10076_v35, 0  ;;  %vm1639_vm1 = vweird.f32 %v10076_v35  ;;  %v1643_v27 = vxor.u32 2147483648, %v10078_v31 }
 0x2f1   :  { %v1634_v29 = vsel %vm10077_vm5, %v1633_v62, %v10073_v61  ;;  %v1537_v21 = vand.u32 3, %v1533_v30  ;;  %5617 = vmatmul.mubr.bf16.gmra.mxu0 %v2788_v14  ;;  %vm10080_vm2 = vnez %v10079_v37  ;;  %v1646_v4 = vxor.u32 2147483648, %v10081_v45  ;;  %v10085_v62 = vld [vmem:[#allocation66_spill] sm:$0xff] }
 0x2f2   :  { %v1636_v24 = vsel %vm10080_vm2, 0, %v1634_v29  ;;  %v4138_v41 = vand.u32 3, %v4137_v26  ;;  %v1736_v63 = vsub.s32 4, %v10082_v1  ;;  %vm10084_vm6 = vcmp.lt.s32.totalorder %v10083_v39, 0 }
 0x2f3   :  { %v4241_v54 = vadd.s32 3, %v1636_v24  ;;  %vm1538_vm4 = vcmp.lt.s32.totalorder %v1537_v21, 2  ;;  %vm1539_vm9 = vcmp.eq.s32.totalorder %v1537_v21, 0  ;;  %vm1542_vm13 = vcmp.eq.s32.totalorder %v1537_v21, 2  ;;  %v10088_v21 = vld [vmem:[#allocation76_spill] sm:$0xff] }
 0x2f4   :  { %vm4139_vm12 = vcmp.lt.s32.totalorder %v4138_v41, 2  ;;  %vm4140_vm0 = vcmp.eq.s32.totalorder %v4138_v41, 0  ;;  %vm4143_vm11 = vcmp.eq.s32.totalorder %v4138_v41, 2  ;;  %v1541_v49 = vsel %vm1539_vm9, %v10075_v40, %v1540_v32 }
 0x2f5   :  { %v4142_v42 = vsel %vm4140_vm0, %v10075_v40, %v1540_v32  ;;  %v4145_v11 = vsel %vm4143_vm11, %v1543_v60, %v10074_v48  ;;  %v4242_v51 = vand.u32 3, %v4241_v54  ;;  %v1544_v47 = vsel %vm1542_vm13, %v1543_v60, %v10074_v48  ;;  %v10087_v60 = vld [vmem:[#allocation52_spill] sm:$0xff] }
 0x2f6   :  { %v4146_v23 = vsel %vm4139_vm12, %v4142_v42, %v4145_v11  ;;  %v1545_v15 = vsel %vm1538_vm4, %v1541_v49, %v1544_v47  ;;  %v1640_v9 = vand.u32 3, %v1636_v24  ;;  %v1737_v43 = vsel %vm10084_vm6, %v1736_v63, %v10082_v1  ;;  %v10089_v24 = vld [vmem:[#allocation71_spill] sm:$0xff]  ;;  %v10093_v49 = vld [vmem:[#allocation62_spill] sm:$0xff] }
 0x2f7   :  { %v4147_v17 = vsel %vm1536_vm7, nan, %v4146_v23  ;;  %vm4243_vm14 = vcmp.lt.s32.totalorder %v4242_v51, 2  ;;  %vm4244_vm3 = vcmp.eq.s32.totalorder %v4242_v51, 0  ;;  %vm4247_vm5 = vcmp.eq.s32.totalorder %v4242_v51, 2  ;;  %v10090_v63 = vld [vmem:[#allocation39_spill] sm:$0xff]  ;;  %v10096_v23 = vld [vmem:[#allocation69_spill] sm:$0xff] }
 0x2f8   :  { %v4246_v30 = vsel %vm4244_vm3, %v10081_v45, %v1643_v27  ;;  %v4249_v33 = vsel %vm4247_vm5, %v1646_v4, %v10078_v31  ;;  %v1546_v20 = vsel %vm1536_vm7, nan, %v1545_v15  ;;  %vm1641_vm2 = vcmp.lt.s32.totalorder %v1640_v9, 2  ;;  %v10095_v51 = vld [vmem:[#allocation63_spill] sm:$0xff] }
 0x2f9   :  { %v4250_v61 = vsel %vm4243_vm14, %v4246_v30, %v4249_v33  ;;  %vm1642_vm4 = vcmp.eq.s32.totalorder %v1640_v9, 0  ;;  %vm1645_vm9 = vcmp.eq.s32.totalorder %v1640_v9, 2  ;;  %vm10086_vm13 = vnez %v10085_v62 }
 0x2fa   :  { %v1739_v14 = vsel %vm10086_vm13, 0, %v1737_v43  ;;  %v4251_v48 = vsel %vm1639_vm1, nan, %v4250_v61  ;;  %v1644_v32 = vsel %vm1642_vm4, %v10081_v45, %v1643_v27  ;;  %v1647_v40 = vsel %vm1645_vm9, %v1646_v4, %v10078_v31  ;;  %v10092_v27 = vld [vmem:[#allocation70_spill] sm:$0xff] }
 0x2fb   :  { %vm1742_vm12 = vweird.f32 %v10083_v39  ;;  %v1839_v26 = vsub.s32 4, %v10087_v60  ;;  %v5402_v58 = vpack.c.bf16 %v4251_v48, %v4147_v17  ;;  %v1648_v29 = vsel %vm1641_vm2, %v1644_v32, %v1647_v40  ;;  %v10097_v17 = vld [vmem:[#allocation47_spill] sm:$0xff] }
 0x2fc   :  { %v1746_v37 = vxor.u32 2147483648, %v10088_v21  ;;  %v1749_v41 = vxor.u32 2147483648, %v10089_v24  ;;  %v1649_v1 = vsel %vm1639_vm1, nan, %v1648_v29  ;;  %vm10091_vm7 = vcmp.lt.s32.totalorder %v10090_v63, 0 }
 0x2fd   :  { %v1840_v54 = vsel %vm10091_vm7, %v1839_v26, %v10087_v60  ;;  %v1849_v45 = vxor.u32 2147483648, %v10092_v27  ;;  %v4345_v31 = vadd.s32 3, %v1739_v14  ;;  %5624 = vmatprep.mubr.bf16.mxu0 %v5402_v58  ;;  %v2789_v4 = vpack.c.bf16 %v1649_v1, %v1546_v20 }
 0x2fe   :  { %vm10094_vm0 = vnez %v10093_v49  ;;  %v1743_v11 = vand.u32 3, %v1739_v14  ;;  %v1942_v47 = vsub.s32 4, %v10095_v51  ;;  %v1852_v15 = vxor.u32 2147483648, %v10096_v23  ;;  %v10101_v49 = vld [vmem:[#allocation79_spill] sm:$0xff] }
 0x2ff   :  { %v1842_v42 = vsel %vm10094_vm0, 0, %v1840_v54  ;;  %v4346_v9 = vand.u32 3, %v4345_v31  ;;  %5625 = vmatmul.mubr.bf16.gmra.mxu0 %v2789_v4  ;;  %vm10098_vm14 = vcmp.lt.s32.totalorder %v10097_v17, 0  ;;  %6752 = vcosq.f32 %v9220_v19 }
 0x300   :  { %v4449_v35 = vadd.s32 3, %v1842_v42  ;;  %v1846_v43 = vand.u32 3, %v1842_v42  ;;  %vm1744_vm1 = vcmp.lt.s32.totalorder %v1743_v11, 2  ;;  %vm1745_vm11 = vcmp.eq.s32.totalorder %v1743_v11, 0 }
 0x301   :  { %vm1748_vm6 = vcmp.eq.s32.totalorder %v1743_v11, 2  ;;  %v1943_v30 = vsel %vm10098_vm14, %v1942_v47, %v10095_v51  ;;  %vm4347_vm3 = vcmp.lt.s32.totalorder %v4346_v9, 2  ;;  %vm4348_vm5 = vcmp.eq.s32.totalorder %v4346_v9, 0  ;;  %v10102_v11 = vld [vmem:[#allocation59_spill] sm:$0xff]  ;;  %v10103_v47 = vld [vmem:[#allocation78_spill] sm:$0xff] }
 0x302   :  { %vm4351_vm2 = vcmp.eq.s32.totalorder %v4346_v9, 2  ;;  %v4450_v33 = vand.u32 3, %v4449_v35  ;;  %v4350_v20 = vsel %vm4348_vm5, %v10089_v24, %v1746_v37  ;;  %v1747_v62 = vsel %vm1745_vm11, %v10089_v24, %v1746_v37  ;;  %v10099_v37 = vld [vmem:[#allocation73_spill] sm:$0xff] }
 0x303   :  { %v4353_v61 = vsel %vm4351_vm2, %v1749_v41, %v10088_v21  ;;  %v1750_v14 = vsel %vm1748_vm6, %v1749_v41, %v10088_v21  ;;  %vm1845_vm7 = vweird.f32 %v10090_v63  ;;  %vm1848_vm0 = vcmp.eq.s32.totalorder %v1846_v43, 0 }
 0x304   :  { %v4354_v48 = vsel %vm4347_vm3, %v4350_v20, %v4353_v61  ;;  %vm4451_vm4 = vcmp.lt.s32.totalorder %v4450_v33, 2  ;;  %vm4452_vm9 = vcmp.eq.s32.totalorder %v4450_v33, 0  ;;  %vm4455_vm13 = vcmp.eq.s32.totalorder %v4450_v33, 2  ;;  %v10107_v33 = vld [vmem:[#allocation72_spill] sm:$0xff]  ;;  %v10108_v61 = vld [vmem:[#allocation67_spill] sm:$0xff] }
 0x305   :  { %v4355_v32 = vsel %vm1742_vm12, nan, %v4354_v48  ;;  %v4454_v40 = vsel %vm4452_vm9, %v10096_v23, %v1849_v45  ;;  %v4457_v60 = vsel %vm4455_vm13, %v1852_v15, %v10092_v27  ;;  %v1751_v26 = vsel %vm1744_vm1, %v1747_v62, %v1750_v14 }
 0x306   :  { %v4458_v58 = vsel %vm4451_vm4, %v4454_v40, %v4457_v60  ;;  %v1850_v21 = vsel %vm1848_vm0, %v10096_v23, %v1849_v45  ;;  %vm1851_vm11 = vcmp.eq.s32.totalorder %v1846_v43, 2  ;;  %vm10100_vm6 = vnez %v10099_v37 }
 0x307   :  { %v4459_v29 = vsel %vm1845_vm7, nan, %v4458_v58  ;;  %v1945_v24 = vsel %vm10100_vm6, 0, %v1943_v30  ;;  %vm1948_vm14 = vweird.f32 %v10097_v17  ;;  %v1752_v1 = vsel %vm1742_vm12, nan, %v1751_v26 }
 0x308   :  { %v5403_v41 = vpack.c.bf16 %v4459_v29, %v4355_v32  ;;  %vm1847_vm1 = vcmp.lt.s32.totalorder %v1846_v43, 2  ;;  %v1853_v54 = vsel %vm1851_vm11, %v1852_v15, %v10092_v27  ;;  %v1952_v4 = vxor.u32 2147483648, %v8634_v50  ;;  %v10104_v43 = vld [vmem:[#allocation46_spill] sm:$0xff]  ;;  %v10106_v15 = vld [vmem:[#allocation77_spill] sm:$0xff] }
 0x309   :  { %v1854_v31 = vsel %vm1847_vm1, %v1850_v21, %v1853_v54  ;;  %v1955_v42 = vxor.u32 2147483648, %v10101_v49  ;;  %v2045_v45 = vsub.s32 4, %v10102_v11  ;;  %v2055_v23 = vxor.u32 2147483648, %v10103_v47 }
 0x30a   :  { %5632 = vmatprep.mubr.bf16.mxu0 %v5403_v41  ;;  %v1855_v51 = vsel %vm1845_vm7, nan, %v1854_v31  ;;  %v4553_v9 = vadd.s32 3, %v1945_v24  ;;  %v1949_v35 = vand.u32 3, %v1945_v24  ;;  %vm10105_vm12 = vcmp.lt.s32.totalorder %v10104_v43, 0 }
 0x30b   :  { %v2790_v39 = vpack.c.bf16 %v1855_v51, %v1752_v1  ;;  %v2046_v27 = vsel %vm10105_vm12, %v2045_v45, %v10102_v11  ;;  %v2058_v30 = vxor.u32 2147483648, %v10106_v15  ;;  %v2148_v20 = vsub.s32 4, %v10107_v33 }
 0x30c   :  { %vm10109_vm3 = vnez %v10108_v61  ;;  %v4554_v14 = vand.u32 3, %v4553_v9  ;;  %vm1950_vm5 = vcmp.lt.s32.totalorder %v1949_v35, 2  ;;  %vm1951_vm2 = vcmp.eq.s32.totalorder %v1949_v35, 0  ;;  %v9322_v54 = vpop.eup %6752 }
 0x30d   :  { %v2048_v62 = vsel %vm10109_vm3, 0, %v2046_v27  ;;  %5633 = vmatmul.mubr.bf16.gmra.mxu0 %v2790_v39  ;;  %v1953_v48 = vsel %vm1951_vm2, %v10101_v49, %v1952_v4  ;;  %vm1954_vm4 = vcmp.eq.s32.totalorder %v1949_v35, 2  ;;  %vm2051_vm0 = vweird.f32 %v10104_v43  ;;  %v10113_v27 = vld [vmem:[#allocation58_spill] sm:$0xff] }
 0x30e   :  { %v4657_v63 = vadd.s32 3, %v2048_v62  ;;  %v2052_v32 = vand.u32 3, %v2048_v62  ;;  %vm4555_vm9 = vcmp.lt.s32.totalorder %v4554_v14, 2  ;;  %vm4556_vm13 = vcmp.eq.s32.totalorder %v4554_v14, 0 }
 0x30f   :  { %vm4559_vm7 = vcmp.eq.s32.totalorder %v4554_v14, 2  ;;  %v1956_v40 = vsel %vm1954_vm4, %v1955_v42, %v8634_v50  ;;  %v4558_v60 = vsel %vm4556_vm13, %v10101_v49, %v1952_v4  ;;  %vm10110_vm2 = vcmp.lt.s32.totalorder %v8273_v13, 0  ;;  %v10118_v14 = vld [vmem:[#allocation80_spill] sm:$0xff] }
 0x310   :  { %v4561_v26 = vsel %vm4559_vm7, %v1955_v42, %v8634_v50  ;;  %v4658_v58 = vand.u32 3, %v4657_v63  ;;  %v1957_v29 = vsel %vm1950_vm5, %v1953_v48, %v1956_v40  ;;  %vm2054_vm11 = vcmp.eq.s32.totalorder %v2052_v32, 0 }
 0x311   :  { %v4562_v21 = vsel %vm4555_vm9, %v4558_v60, %v4561_v26  ;;  %v1958_v37 = vsel %vm1948_vm14, nan, %v1957_v29  ;;  %v2056_v50 = vsel %vm2054_vm11, %v10106_v15, %v2055_v23  ;;  %vm2057_vm3 = vcmp.eq.s32.totalorder %v2052_v32, 2 }
 0x312   :  { %v4563_v24 = vsel %vm1948_vm14, nan, %v4562_v21  ;;  %vm4659_vm6 = vcmp.lt.s32.totalorder %v4658_v58, 2  ;;  %vm4660_vm1 = vcmp.eq.s32.totalorder %v4658_v58, 0  ;;  %vm4663_vm12 = vcmp.eq.s32.totalorder %v4658_v58, 2 }
 0x313   :  { %v4662_v41 = vsel %vm4660_vm1, %v10106_v15, %v2055_v23  ;;  %v4665_v1 = vsel %vm4663_vm12, %v2058_v30, %v10103_v47  ;;  %vm2053_vm5 = vcmp.lt.s32.totalorder %v2052_v32, 2  ;;  %v2059_v4 = vsel %vm2057_vm3, %v2058_v30, %v10103_v47  ;;  %v10112_v47 = vld [vmem:[#allocation68_spill] sm:$0xff]  ;;  %v10115_v30 = vld [vmem:[#allocation75_spill] sm:$0xff] }
 0x314   :  { %v4666_v31 = vsel %vm4659_vm6, %v4662_v41, %v4665_v1  ;;  %v2149_v17 = vsel %vm10110_vm2, %v2148_v20, %v10107_v33  ;;  %6754 = vsinq.f32 %v9220_v19  ;;  %v2060_v42 = vsel %vm2053_vm5, %v2056_v50, %v2059_v4  ;;  %v10117_v20 = vld [vmem:[#allocation81_spill] sm:$0xff] }
 0x315   :  { %v4667_v49 = vsel %vm2051_vm0, nan, %v4666_v31  ;;  %vm10111_vm14 = vnez %v9968_v56  ;;  %v2061_v51 = vsel %vm2051_vm0, nan, %v2060_v42  ;;  %vm2154_vm4 = vweird.f32 %v8273_v13  ;;  %v10121_v42 = vld [vmem:[#allocation74_spill] sm:$0xff] }
 0x316   :  { %v2151_v11 = vsel %vm10111_vm14, 0, %v2149_v17  ;;  %v5404_v45 = vpack.c.bf16 %v4667_v49, %v4563_v24  ;;  %v2251_v23 = vsub.s32 4, %v10112_v47  ;;  %v2791_v9 = vpack.c.bf16 %v2061_v51, %v1958_v37 }
 0x317   :  { %v2158_v35 = vxor.u32 2147483648, %v8860_v34  ;;  %v2161_v19 = vxor.u32 2147483648, %v8854_v5  ;;  %v4761_v39 = vadd.s32 3, %v2151_v11  ;;  %vm10114_vm9 = vcmp.lt.s32.totalorder %v10113_v27, 0 }
 0x318   :  { %5640 = vmatprep.mubr.bf16.mxu0 %v5404_v45  ;;  %v2252_v56 = vsel %vm10114_vm9, %v2251_v23, %v10112_v47  ;;  %vm2257_vm13 = vweird.f32 %v10113_v27  ;;  %v2261_v43 = vxor.u32 2147483648, %v8768_v8  ;;  %v2155_v15 = vand.u32 3, %v2151_v11 }
 0x319   :  { %5641 = vmatmul.mubr.bf16.gmra.mxu0 %v2791_v9  ;;  %vm10116_vm7 = vnez %v10115_v30  ;;  %v2264_v61 = vxor.u32 2147483648, %v10117_v20  ;;  %v4762_v62 = vand.u32 3, %v4761_v39  ;;  %v2354_v63 = vsub.s32 4, %v10118_v14 }
 0x31a   :  { %v2254_v33 = vsel %vm10116_vm7, 0, %v2252_v56  ;;  %vm2156_vm0 = vcmp.lt.s32.totalorder %v2155_v15, 2  ;;  %vm2157_vm11 = vcmp.eq.s32.totalorder %v2155_v15, 0  ;;  %vm2160_vm6 = vcmp.eq.s32.totalorder %v2155_v15, 2 }
 0x31b   :  { %v4865_v48 = vadd.s32 3, %v2254_v33  ;;  %vm4763_vm1 = vcmp.lt.s32.totalorder %v4762_v62, 2  ;;  %vm4764_vm12 = vcmp.eq.s32.totalorder %v4762_v62, 0  ;;  %vm4767_vm3 = vcmp.eq.s32.totalorder %v4762_v62, 2 }
 0x31c   :  { %v2159_v32 = vsel %vm2157_vm11, %v8854_v5, %v2158_v35  ;;  %v4766_v40 = vsel %vm4764_vm12, %v8854_v5, %v2158_v35  ;;  %v4769_v60 = vsel %vm4767_vm3, %v2161_v19, %v8860_v34  ;;  %v2162_v58 = vsel %vm2160_vm6, %v2161_v19, %v8860_v34 }
 0x31d   :  { %v4866_v26 = vand.u32 3, %v4865_v48  ;;  %v4770_v29 = vsel %vm4763_vm1, %v4766_v40, %v4769_v60  ;;  %v2163_v21 = vsel %vm2156_vm0, %v2159_v32, %v2162_v58  ;;  %v2258_v37 = vand.u32 3, %v2254_v33 }
 0x31e   :  { %vm10119_vm5 = vcmp.lt.s32.totalorder %v8432_v55, 0  ;;  %v4771_v41 = vsel %vm2154_vm4, nan, %v4770_v29  ;;  %v2164_v34 = vsel %vm2154_vm4, nan, %v2163_v21  ;;  %vm10120_vm6 = vnez %v9986_v28 }
 0x31f   :  { %v2355_v24 = vsel %vm10119_vm5, %v2354_v63, %v10118_v14  ;;  %vm4867_vm2 = vcmp.lt.s32.totalorder %v4866_v26, 2  ;;  %vm4868_vm14 = vcmp.eq.s32.totalorder %v4866_v26, 0  ;;  %vm4871_vm9 = vcmp.eq.s32.totalorder %v4866_v26, 2 }
 0x320   :  { %v4870_v5 = vsel %vm4868_vm14, %v10117_v20, %v2261_v43  ;;  %v4873_v1 = vsel %vm4871_vm9, %v2264_v61, %v8768_v8  ;;  %vm2259_vm7 = vcmp.lt.s32.totalorder %v2258_v37, 2  ;;  %vm2260_vm0 = vcmp.eq.s32.totalorder %v2258_v37, 0 }
 0x321   :  { %v4874_v50 = vsel %vm4867_vm2, %v4870_v5, %v4873_v1  ;;  %vm2263_vm11 = vcmp.eq.s32.totalorder %v2258_v37, 2  ;;  %v2357_v31 = vsel %vm10120_vm6, 0, %v2355_v24  ;;  %v2262_v17 = vsel %vm2260_vm0, %v10117_v20, %v2261_v43  ;;  %v9369_v13 = vpop.eup %6754 }
 0x322   :  { %v4875_v4 = vsel %vm2257_vm13, nan, %v4874_v50  ;;  %v2265_v49 = vsel %vm2263_vm11, %v2264_v61, %v8768_v8  ;;  %vm2360_vm1 = vweird.f32 %v8432_v55  ;;  %v2457_v11 = vsub.s32 4, %v10121_v42 }
 0x323   :  { %v5405_v45 = vpack.c.bf16 %v4875_v4, %v4771_v41  ;;  %v2266_v51 = vsel %vm2259_vm7, %v2262_v17, %v2265_v49  ;;  %v2364_v47 = vxor.u32 2147483648, %v8991_v3  ;;  %v2367_v28 = vxor.u32 2147483648, %v8959_v57 }
 0x324   :  { %v2267_v23 = vsel %vm2257_vm13, nan, %v2266_v51  ;;  %vm10122_vm4 = vcmp.lt.s32.totalorder %v8278_v6, 0  ;;  %v2467_v8 = vxor.u32 2147483648, %v8870_v12  ;;  %v4969_v35 = vadd.s32 3, %v2357_v31 }
 0x325   :  { %v2458_v9 = vsel %vm10122_vm4, %v2457_v11, %v10121_v42  ;;  %5648 = vmatprep.mubr.bf16.mxu0 %v5405_v45  ;;  %v2792_v19 = vpack.c.bf16 %v2267_v23, %v2164_v34  ;;  %vm10123_vm12 = vnez %v9975_v22  ;;  %v2361_v56 = vand.u32 3, %v2357_v31 }
 0x326   :  { %v2460_v39 = vsel %vm10123_vm12, 0, %v2458_v9  ;;  %v2560_v43 = vsub.s32 4, %v8839_v53  ;;  %v2470_v15 = vxor.u32 2147483648, %v8865_v16  ;;  %v4970_v30 = vand.u32 3, %v4969_v35 }
 0x327   :  { %v5073_v27 = vadd.s32 3, %v2460_v39  ;;  %v2464_v33 = vand.u32 3, %v2460_v39  ;;  %5649 = vmatmul.mubr.bf16.gmra.mxu0 %v2792_v19  ;;  %vm2362_vm13 = vcmp.lt.s32.totalorder %v2361_v56, 2  ;;  %vm2363_vm3 = vcmp.eq.s32.totalorder %v2361_v56, 0 }
 0x328   :  { %vm2366_vm5 = vcmp.eq.s32.totalorder %v2361_v56, 2  ;;  %vm10124_vm2 = vcmp.lt.s32.totalorder %v8599_v18, 0  ;;  %vm4971_vm14 = vcmp.lt.s32.totalorder %v4970_v30, 2  ;;  %vm4972_vm9 = vcmp.eq.s32.totalorder %v4970_v30, 0 }
 0x329   :  { %v2561_v20 = vsel %vm10124_vm2, %v2560_v43, %v8839_v53  ;;  %vm4975_vm7 = vcmp.eq.s32.totalorder %v4970_v30, 2  ;;  %v5074_v22 = vand.u32 3, %v5073_v27  ;;  %v4974_v61 = vsel %vm4972_vm9, %v8959_v57, %v2364_v47 }
 0x32a   :  { %v4977_v62 = vsel %vm4975_vm7, %v2367_v28, %v8991_v3  ;;  %v2365_v14 = vsel %vm2363_vm3, %v8959_v57, %v2364_v47  ;;  %v2368_v63 = vsel %vm2366_vm5, %v2367_v28, %v8991_v3  ;;  %vm2463_vm4 = vweird.f32 %v8278_v6 }
 0x32b   :  { %v4978_v48 = vsel %vm4971_vm14, %v4974_v61, %v4977_v62  ;;  %vm5075_vm0 = vcmp.lt.s32.totalorder %v5074_v22, 2  ;;  %vm5076_vm11 = vcmp.eq.s32.totalorder %v5074_v22, 0  ;;  %vm5079_vm6 = vcmp.eq.s32.totalorder %v5074_v22, 2 }
 0x32c   :  { %v4979_v32 = vsel %vm2360_vm1, nan, %v4978_v48  ;;  %v5078_v53 = vsel %vm5076_vm11, %v8865_v16, %v2467_v8  ;;  %v5081_v40 = vsel %vm5079_vm6, %v2470_v15, %v8870_v12  ;;  %v2369_v60 = vsel %vm2362_vm13, %v2365_v14, %v2368_v63 }
 0x32d   :  { %v5082_v26 = vsel %vm5075_vm0, %v5078_v53, %v5081_v40  ;;  %vm2466_vm12 = vcmp.eq.s32.totalorder %v2464_v33, 0  ;;  %vm2469_vm3 = vcmp.eq.s32.totalorder %v2464_v33, 2  ;;  %v2563_v58 = vsel %vm9007_vm8, 0, %v2561_v20  ;;  %v6648_v40 = vld [vmem:[%s9644_s4 + $0x38] sm:$0xff]  }
 0x32e   :  { %v5083_v57 = vsel %vm2463_vm4, nan, %v5082_v26  ;;  %v2468_v3 = vsel %vm2466_vm12, %v8865_v16, %v2467_v8  ;;  %vm2566_vm5 = vweird.f32 %v8599_v18  ;;  %v2370_v21 = vsel %vm2360_vm1, nan, %v2369_v60  ;;  %v6652_v26 = vld [vmem:[%s9644_s4 + $0x18] sm:$0xff]  }
 0x32f   :  { %v5406_v29 = vpack.c.bf16 %v5083_v57, %v4979_v32  ;;  %vm2465_vm13 = vcmp.lt.s32.totalorder %v2464_v33, 2  ;;  %v2471_v37 = vsel %vm2469_vm3, %v2470_v15, %v8870_v12  ;;  %v2570_v41 = vxor.u32 2147483648, %v9140_v38  ;;  %v6653_v57 = vld [vmem:[%s9644_s4 + $0x10] sm:$0xff]  }
 0x330   :  { %v2472_v24 = vsel %vm2465_vm13, %v2468_v3, %v2471_v37  ;;  %v2573_v5 = vxor.u32 2147483648, %v9101_v7  ;;  %v2663_v16 = vsub.s32 4, %v8757_v0  ;;  %v2673_v1 = vxor.u32 2147483648, %v9096_v2  ;;  %v6654_v3 = vld [vmem:[%s9644_s4 + $0x8] sm:$0xff]  }
 0x331   :  { %5656 = vmatprep.mubr.bf16.mxu0 %v5406_v29  ;;  %v2473_v10 = vsel %vm2463_vm4, nan, %v2472_v24  ;;  %v5177_v34 = vadd.s32 3, %v2563_v58  ;;  %v2567_v50 = vand.u32 3, %v2563_v58  ;;  %vm10125_vm8 = vcmp.lt.s32.totalorder %v8500_v46, 0  ;;  %v6655_v58 = vld [vmem:[%s9644_s4] sm:$0xff]  }
 0x332   :  { %v2793_v55 = vpack.c.bf16 %v2473_v10, %v2370_v21  ;;  %v2664_v12 = vsel %vm10125_vm8, %v2663_v16, %v8757_v0  ;;  %vm2669_vm1 = vweird.f32 %v8500_v46  ;;  %v2676_v31 = vxor.u32 2147483648, %v9083_v59 }
 0x333   :  { %v2766_v4 = vsub.s32 4, %v8943_v44  ;;  %vm10126_vm2 = vnez %v9989_v52  ;;  %v5178_v6 = vand.u32 3, %v5177_v34  ;;  %vm2568_vm14 = vcmp.lt.s32.totalorder %v2567_v50, 2 }
 0x334   :  { %v2666_v17 = vsel %vm10126_vm2, 0, %v2664_v12  ;;  %vm2569_vm9 = vcmp.eq.s32.totalorder %v2567_v50, 0  ;;  %5657 = vmatmul.mubr.bf16.gmra.mxu0 %v2793_v55  ;;  %vm2572_vm7 = vcmp.eq.s32.totalorder %v2567_v50, 2  ;;  %v2776_v18 = vxor.u32 2147483648, %v9369_v13 }
 0x335   :  { %v5281_v49 = vadd.s32 3, %v2666_v17  ;;  %v2571_v42 = vsel %vm2569_vm9, %v9101_v7, %v2570_v41  ;;  %v2670_v11 = vand.u32 3, %v2666_v17  ;;  %vm5179_vm0 = vcmp.lt.s32.totalorder %v5178_v6, 2 }
 0x336   :  { %vm5180_vm11 = vcmp.eq.s32.totalorder %v5178_v6, 0  ;;  %vm5183_vm6 = vcmp.eq.s32.totalorder %v5178_v6, 2  ;;  %v2574_v0 = vsel %vm2572_vm7, %v2573_v5, %v9140_v38  ;;  %v2767_v39 = vsel %vm2682_vm15, %v2766_v4, %v8943_v44 }
 0x337   :  { %v5182_v45 = vsel %vm5180_vm11, %v9101_v7, %v2570_v41  ;;  %v5185_v51 = vsel %vm5183_vm6, %v2573_v5, %v9140_v38  ;;  %v5282_v52 = vand.u32 3, %v5281_v49  ;;  %v2575_v47 = vsel %vm2568_vm14, %v2571_v42, %v2574_v0  ;;  %v9484_v41 = vld [vmem:[%s9643_s3] ss:$0 sm:$0xff] }
 0x338   :  { %v5186_v28 = vsel %vm5179_vm0, %v5182_v45, %v5185_v51  ;;  %v2576_v23 = vsel %vm2566_vm5, nan, %v2575_v47  ;;  %vm2671_vm4 = vcmp.lt.s32.totalorder %v2670_v11, 2  ;;  %vm2672_vm12 = vcmp.eq.s32.totalorder %v2670_v11, 0 }
 0x339   :  { %v5187_v9 = vsel %vm2566_vm5, nan, %v5186_v28  ;;  %vm5283_vm3 = vcmp.lt.s32.totalorder %v5282_v52, 2  ;;  %vm5284_vm13 = vcmp.eq.s32.totalorder %v5282_v52, 0  ;;  %vm5287_vm8 = vcmp.eq.s32.totalorder %v5282_v52, 2 }
 0x33a   :  { %v5286_v8 = vsel %vm5284_vm13, %v9083_v59, %v2673_v1  ;;  %v5289_v7 = vsel %vm5287_vm8, %v2676_v31, %v9096_v2  ;;  %v2674_v38 = vsel %vm2672_vm12, %v9083_v59, %v2673_v1  ;;  %vm2675_vm2 = vcmp.eq.s32.totalorder %v2670_v11, 2 }
 0x33b   :  { %v5290_v35 = vsel %vm5283_vm3, %v5286_v8, %v5289_v7  ;;  %v2677_v19 = vsel %vm2675_vm2, %v2676_v31, %v9096_v2  ;;  %v2769_v15 = vsel %vm9190_vm10, 0, %v2767_v39  ;;  %v2779_v30 = vxor.u32 2147483648, %v9322_v54 }
 0x33c   :  { %v5291_v56 = vsel %vm2669_vm1, nan, %v5290_v35  ;;  %v2678_v43 = vsel %vm2671_vm4, %v2674_v38, %v2677_v19  ;;  %v5385_v2 = vadd.s32 3, %v2769_v15  ;;  %v2773_v33 = vand.u32 3, %v2769_v15 }
 0x33d   :  { %v5407_v59 = vpack.c.bf16 %v5291_v56, %v5187_v9  ;;  %v2679_v27 = vsel %vm2669_vm1, nan, %v2678_v43  ;;  %vm2772_vm7 = vweird.f32 %v8712_v25  ;;  %v6840_v60 = vmov 0.0   ;;  %v6649_v25 = vld [vmem:[%s9644_s4 + $0x30] sm:$0xff]  }
 0x33e   :  { %v2794_v20 = vpack.c.bf16 %v2679_v27, %v2576_v23  ;;  %v5386_v44 = vand.u32 3, %v5385_v2  ;;  %vm2775_vm15 = vcmp.eq.s32.totalorder %v2773_v33, 0  ;;  %vm2778_vm5 = vcmp.eq.s32.totalorder %v2773_v33, 2  ;;  %6450 = vmatprep.subr.bf16.mxu1 %v6840_v60 }
 0x33f   :  { %5664 = vmatprep.mubr.bf16.mxu0 %v5407_v59  ;;  %vm2774_vm14 = vcmp.lt.s32.totalorder %v2773_v33, 2  ;;  %v2777_v22 = vsel %vm2775_vm15, %v9322_v54, %v2776_v18  ;;  %v2780_v36 = vsel %vm2778_vm5, %v2779_v30, %v9369_v13  ;;  %6451 = vmatpush3.bf16.msra.mxu1 %v6648_v40  ;;  %vm6841_vm1 = vmmov 0  }
 0x340   :  { %5665 = vmatmul.mubr.bf16.gmra.mxu0 %v2794_v20  ;;  %vm5388_vm10 = vcmp.eq.s32.totalorder %v5386_v44, 0  ;;  %vm5391_vm9 = vcmp.eq.s32.totalorder %v5386_v44, 2  ;;  %v2781_v61 = vsel %vm2774_vm14, %v2777_v22, %v2780_v36  ;;  %vm5387_vm0 = vcmp.lt.s32.totalorder %v5386_v44, 2  ;;  %6452 = vmatprep.subr.bf16.mxu1 %v6840_v60 }
 0x341   :  { %v5390_v46 = vsel %vm5388_vm10, %v9322_v54, %v2776_v18  ;;  %v5393_v62 = vsel %vm5391_vm9, %v2779_v30, %v9369_v13  ;;  %v2782_v63 = vsel %vm2772_vm7, nan, %v2781_v61  ;;  %v6650_v54 = vld [vmem:[%s9644_s4 + $0x28] sm:$0xff]   ;;  %v6651_v13 = vld [vmem:[%s9644_s4 + $0x20] sm:$0xff]   ;;  %6466 = vmatprep.mubr.msk.bf16.mxu1 %vm6841_vm1, %v6840_v60 }
 0x342   :  { %v5394_v14 = vsel %vm5387_vm0, %v5390_v46, %v5393_v62  ;;  %v2795_v53 = vpack.c.bf16 %v2782_v63, %v2782_v63 }
 0x343   :  { %v5395_v48 = vsel %vm2772_vm7, nan, %v5394_v14  ;;  %6453 = vmatpush3.bf16.msra.mxu1 %v6649_v25 }
 0x344   :  { %v5408_v32 = vpack.c.bf16 %v5395_v48, %v5395_v48  ;;  %6454 = vmatprep.subr.bf16.mxu1 %v6840_v60 }
 0x346   :  { %5672 = vmatprep.mubr.bf16.mxu0 %v5408_v32 }
 0x347   :  { %6455 = vmatpush3.bf16.msra.mxu1 %v6650_v54 }
 0x348   :  { %5673 = vmatmul.mubr.bf16.gmra.mxu0 %v2795_v53  ;;  %6456 = vmatprep.subr.bf16.mxu1 %v6840_v60 }
 0x34b   :  { %6457 = vmatpush3.bf16.msra.mxu1 %v6651_v13 }
 0x34c   :  { %6458 = vmatprep.subr.bf16.mxu1 %v6840_v60 }
 0x34f   :  { %6459 = vmatpush3.bf16.msra.mxu1 %v6652_v26 }
 0x350   :  { %6460 = vmatprep.subr.bf16.mxu1 %v6840_v60 }
 0x353   :  { %6461 = vmatpush3.bf16.msra.mxu1 %v6653_v57 }
 0x354   :  { %6462 = vmatprep.subr.bf16.mxu1 %v6840_v60 }
 0x357   :  { %6463 = vmatpush3.bf16.msra.mxu1 %v6654_v3 }
 0x358   :  { %6464 = vmatprep.subr.bf16.mxu1 %v6840_v60 }
 0x35b   :  { %6465 = vmatpush3.bf16.msra.mxu1 %v6655_v58 }
 0x372   :  { %v6351_v29 = vpop.f32.mrf.mxu0 }
 0x374   :  { %v6352_v21 = vpop.f32.mrf.mxu0 }
 0x375   :  { %v6353_v24 = vadd.f32 %v6352_v21, %v6351_v29 }
 0x376   :  { %v6354_v37 = vpop.f32.mrf.mxu0 }
 0x377   :  { %v5579_v10 = vadd.f32 %v6353_v24, %v9484_v41 }
 0x378   :  { %v6355_v5 = vpop.f32.mrf.mxu0 }
 0x379   :  { %v6356_v16 = vadd.f32 %v6355_v5, %v6354_v37 }
 0x37b   :  { %v5582_v1 = vadd.f32 %v6356_v16, %v9484_v41 }
 0x37d   :  { %v6357_v34 = vpop.f32.mrf.mxu0  ;;  %v5680_v50 = vpack.c.bf16 %v5582_v1, %v5579_v10 }
 0x37f   :  { %v6358_v55 = vpop.f32.mrf.mxu0  ;;  %v6313_v12 = vmul.bf16 3216621497, %v5680_v50 }
 0x380   :  { %v6359_v4 = vadd.f32 %v6358_v55, %v6357_v34 }
 0x381   :  { %v6360_v31 = vpop.f32.mrf.mxu0  ;;  %6756 = vpow.bf16 %v6313_v12 }
 0x382   :  { %v5587_v49 = vadd.f32 %v6359_v4, %v9484_v41 }
 0x383   :  { %v6361_v17 = vpop.f32.mrf.mxu0 }
 0x384   :  { %v6362_v6 = vadd.f32 %v6361_v17, %v6360_v31 }
 0x386   :  { %v5590_v42 = vadd.f32 %v6362_v6, %v9484_v41 }
 0x388   :  { %v5681_v11 = vpack.c.bf16 %v5590_v42, %v5587_v49 }
 0x38a   :  { %v6314_v0 = vmul.bf16 3216621497, %v5681_v11  ;;  %v6363_v45 = vpop.f32.mrf.mxu0 }
 0x38c   :  { %6758 = vpow.bf16 %v6314_v0  ;;  %v6364_v51 = vpop.f32.mrf.mxu0 }
 0x38d   :  { %v6365_v47 = vadd.f32 %v6364_v51, %v6363_v45 }
 0x38e   :  { %v6366_v52 = vpop.f32.mrf.mxu0 }
 0x38f   :  { %v6757_v28 = vpop.eup %6756  ;;  %v9491_v7 = vadd.f32 %v6365_v47, %v9484_v41 }
 0x390   :  { %v6367_v23 = vpop.f32.mrf.mxu0  ;;  %v5745_v9 = vadd.bf16 1065369472, %v6757_v28 }
 0x391   :  { %v6368_v8 = vadd.f32 %v6367_v23, %v6366_v52 }
 0x392   :  { %6760 = vrcp.bf16 %v5745_v9 }
 0x393   :  { %v9494_v38 = vadd.f32 %v6368_v8, %v9484_v41 }
 0x395   :  { %v5682_v35 = vpack.c.bf16 %v9494_v38, %v9491_v7 }
 0x397   :  { %v6315_v19 = vmul.bf16 3216621497, %v5682_v35 }
 0x398   :  { %v6369_v39 = vpop.f32.mrf.mxu0 }
 0x399   :  { %6762 = vpow.bf16 %v6315_v19 }
 0x39a   :  { %v6370_v18 = vpop.f32.mrf.mxu0  ;;  %v6759_v56 = vpop.eup %6758 }
 0x39b   :  { %v5746_v43 = vadd.bf16 1065369472, %v6759_v56  ;;  %v6371_v30 = vadd.f32 %v6370_v18, %v6369_v39 }
 0x39c   :  { %v6372_v15 = vpop.f32.mrf.mxu0 }
 0x39d   :  { %6764 = vrcp.bf16 %v5746_v43  ;;  %v9499_v2 = vadd.f32 %v6371_v30, %v9484_v41 }
 0x39e   :  { %v6373_v59 = vpop.f32.mrf.mxu0 }
 0x39f   :  { %v6374_v27 = vadd.f32 %v6373_v59, %v6372_v15 }
 0x3a0   :  { %v6761_v20 = vpop.eup %6760 }
 0x3a1   :  { %v9502_v33 = vadd.f32 %v6374_v27, %v9484_v41  ;;  %v5759_v44 = vmul.bf16 1065369472, %v6761_v20 }
 0x3a3   :  { %v5683_v22 = vpack.c.bf16 %v9502_v33, %v9499_v2  ;;  %v5785_v61 = vunpack.c.h.bf16 %v5759_v44  ;;  %v5784_v62 = vunpack.c.l.bf16 %v5759_v44 }
 0x3a5   :  { %v6375_v36 = vpop.f32.mrf.mxu0  ;;  %v6316_v46 = vmul.bf16 3216621497, %v5683_v22  ;;  %v5810_v63 = vmul.f32 %v5785_v61, %v5582_v1  ;;  %v5809_v48 = vmul.f32 %v5784_v62, %v5579_v10 }
 0x3a7   :  { %v6376_v14 = vpop.f32.mrf.mxu0  ;;  %6766 = vpow.bf16 %v6316_v46  ;;  %v6763_v32 = vpop.eup %6762  ;;  %v5834_v54 = vpack.c.bf16 %v5810_v63, %v5809_v48 }
 0x3a8   :  { %v5747_v40 = vadd.bf16 1065369472, %v6763_v32  ;;  %v6377_v25 = vadd.f32 %v6376_v14, %v6375_v36 }
 0x3a9   :  { %v6378_v53 = vpop.f32.mrf.mxu0  ;;  %6467 = vmatmul.mubr.bf16.vlgmr.msra.gmra.mxu1 %v5834_v54 }
 0x3aa   :  { %6768 = vrcp.bf16 %v5747_v40  ;;  %6470 = vmatprep.mubr.msk.bf16.mxu1 %vm6841_vm1, %v6840_v60  ;;  %v9509_v58 = vadd.f32 %v6377_v25, %v9484_v41 }
 0x3ab   :  { %v6379_v13 = vpop.f32.mrf.mxu0  ;;  %v6765_v57 = vpop.eup %6764 }
 0x3ac   :  { %v6380_v26 = vadd.f32 %v6379_v13, %v6378_v53  ;;  %v5761_v3 = vmul.bf16 1065369472, %v6765_v57 }
 0x3ae   :  { %v9512_v29 = vadd.f32 %v6380_v26, %v9484_v41  ;;  %v5787_v21 = vunpack.c.h.bf16 %v5761_v3  ;;  %v5786_v5 = vunpack.c.l.bf16 %v5761_v3 }
 0x3b0   :  { %v5684_v37 = vpack.c.bf16 %v9512_v29, %v9509_v58  ;;  %v5812_v16 = vmul.f32 %v5787_v21, %v5590_v42  ;;  %v5811_v34 = vmul.f32 %v5786_v5, %v5587_v49 }
 0x3b1   :  { %v6381_v24 = vpop.f32.mrf.mxu0 }
 0x3b2   :  { %v6317_v10 = vmul.bf16 3216621497, %v5684_v37  ;;  %v5835_v55 = vpack.c.bf16 %v5812_v16, %v5811_v34 }
 0x3b3   :  { %v6382_v1 = vpop.f32.mrf.mxu0 }
 0x3b4   :  { %6770 = vpow.bf16 %v6317_v10  ;;  %v6383_v12 = vadd.f32 %v6382_v1, %v6381_v24  ;;  %6471 = vmatmul.mubr.bf16.gmra.mxu1 %v5835_v55 }
 0x3b5   :  { %v6384_v50 = vpop.f32.mrf.mxu0  ;;  %v6767_v31 = vpop.eup %6766  ;;  %6474 = vmatprep.mubr.msk.bf16.mxu1 %vm6841_vm1, %v6840_v60 }
 0x3b6   :  { %v5748_v17 = vadd.bf16 1065369472, %v6767_v31  ;;  %v9519_v11 = vadd.f32 %v6383_v12, %v9484_v41 }
 0x3b7   :  { %v6385_v4 = vpop.f32.mrf.mxu0 }
 0x3b8   :  { %v6386_v6 = vadd.f32 %v6385_v4, %v6384_v50  ;;  %6772 = vrcp.bf16 %v5748_v17  ;;  %v6769_v49 = vpop.eup %6768 }
 0x3b9   :  { %v5763_v0 = vmul.bf16 1065369472, %v6769_v49 }
 0x3ba   :  { %v9522_v42 = vadd.f32 %v6386_v6, %v9484_v41 }
 0x3bb   :  { %v5789_v51 = vunpack.c.h.bf16 %v5763_v0  ;;  %v5788_v28 = vunpack.c.l.bf16 %v5763_v0 }
 0x3bc   :  { %v5685_v45 = vpack.c.bf16 %v9522_v42, %v9519_v11 }
 0x3bd   :  { %v5814_v23 = vmul.f32 %v5789_v51, %v9494_v38  ;;  %v5813_v8 = vmul.f32 %v5788_v28, %v9491_v7 }
 0x3be   :  { %v6318_v52 = vmul.bf16 3216621497, %v5685_v45 }
 0x3bf   :  { %v6387_v47 = vpop.f32.mrf.mxu0  ;;  %v5836_v19 = vpack.c.bf16 %v5814_v23, %v5813_v8 }
 0x3c0   :  { %6774 = vpow.bf16 %v6318_v52 }
 0x3c1   :  { %v6388_v9 = vpop.f32.mrf.mxu0  ;;  %6475 = vmatmul.mubr.bf16.gmra.mxu1 %v5836_v19 }
 0x3c2   :  { %v6771_v39 = vpop.eup %6770  ;;  %v6389_v18 = vadd.f32 %v6388_v9, %v6387_v47  ;;  %6478 = vmatprep.mubr.msk.bf16.mxu1 %vm6841_vm1, %v6840_v60 }
 0x3c3   :  { %v6390_v35 = vpop.f32.mrf.mxu0  ;;  %v5749_v56 = vadd.bf16 1065369472, %v6771_v39 }
 0x3c4   :  { %v9531_v30 = vadd.f32 %v6389_v18, %v9484_v41 }
 0x3c5   :  { %v6391_v43 = vpop.f32.mrf.mxu0  ;;  %6776 = vrcp.bf16 %v5749_v56 }
 0x3c6   :  { %v6392_v15 = vadd.f32 %v6391_v43, %v6390_v35  ;;  %v6773_v59 = vpop.eup %6772 }
 0x3c7   :  { %v5765_v7 = vmul.bf16 1065369472, %v6773_v59 }
 0x3c8   :  { %v9534_v38 = vadd.f32 %v6392_v15, %v9484_v41 }
 0x3c9   :  { %v5791_v44 = vunpack.c.h.bf16 %v5765_v7  ;;  %v5790_v36 = vunpack.c.l.bf16 %v5765_v7 }
 0x3ca   :  { %v5686_v27 = vpack.c.bf16 %v9534_v38, %v9531_v30 }
 0x3cb   :  { %v5816_v46 = vmul.f32 %v5791_v44, %v9502_v33  ;;  %v5815_v62 = vmul.f32 %v5790_v36, %v9499_v2 }
 0x3cc   :  { %v6319_v22 = vmul.bf16 3216621497, %v5686_v27 }
 0x3cd   :  { %v6393_v20 = vpop.f32.mrf.mxu0  ;;  %v5837_v53 = vpack.c.bf16 %v5816_v46, %v5815_v62 }
 0x3ce   :  { %6778 = vpow.bf16 %v6319_v22  ;;  %v6775_v14 = vpop.eup %6774 }
 0x3cf   :  { %v6394_v61 = vpop.f32.mrf.mxu0  ;;  %v5750_v48 = vadd.bf16 1065369472, %v6775_v14  ;;  %6479 = vmatmul.mubr.bf16.gmra.mxu1 %v5837_v53 }
 0x3d0   :  { %v6395_v32 = vadd.f32 %v6394_v61, %v6393_v20  ;;  %6482 = vmatprep.mubr.msk.bf16.mxu1 %vm6841_vm1, %v6840_v60 }
 0x3d1   :  { %v6396_v63 = vpop.f32.mrf.mxu0  ;;  %6780 = vrcp.bf16 %v5750_v48 }
 0x3d2   :  { %v9543_v54 = vadd.f32 %v6395_v32, %v9484_v41 }
 0x3d3   :  { %v6397_v40 = vpop.f32.mrf.mxu0  ;;  %v6777_v13 = vpop.eup %6776 }
 0x3d4   :  { %v6398_v25 = vadd.f32 %v6397_v40, %v6396_v63  ;;  %v5767_v2 = vmul.bf16 1065369472, %v6777_v13 }
 0x3d6   :  { %v9546_v33 = vadd.f32 %v6398_v25, %v9484_v41  ;;  %v5793_v3 = vunpack.c.h.bf16 %v5767_v2  ;;  %v5792_v24 = vunpack.c.l.bf16 %v5767_v2 }
 0x3d8   :  { %v5687_v26 = vpack.c.bf16 %v9546_v33, %v9543_v54  ;;  %v5818_v5 = vmul.f32 %v5793_v3, %v9512_v29  ;;  %v5817_v10 = vmul.f32 %v5792_v24, %v9509_v58 }
 0x3d9   :  { %v6399_v57 = vpop.f32.mrf.mxu0 }
 0x3da   :  { %v6320_v21 = vmul.bf16 3216621497, %v5687_v26  ;;  %v5838_v55 = vpack.c.bf16 %v5818_v5, %v5817_v10 }
 0x3db   :  { %v6400_v37 = vpop.f32.mrf.mxu0 }
 0x3dc   :  { %6782 = vpow.bf16 %v6320_v21  ;;  %v6401_v1 = vadd.f32 %v6400_v37, %v6399_v57  ;;  %v6779_v34 = vpop.eup %6778  ;;  %6483 = vmatmul.mubr.bf16.gmra.mxu1 %v5838_v55 }
 0x3dd   :  { %v6402_v16 = vpop.f32.mrf.mxu0  ;;  %v5751_v12 = vadd.bf16 1065369472, %v6779_v34  ;;  %6486 = vmatprep.mubr.msk.bf16.mxu1 %vm6841_vm1, %v6840_v60 }
 0x3de   :  { %v9553_v4 = vadd.f32 %v6401_v1, %v9484_v41 }
 0x3df   :  { %v6403_v50 = vpop.f32.mrf.mxu0  ;;  %6784 = vrcp.bf16 %v5751_v12  ;;  %v6781_v29 = vpop.eup %6780 }
 0x3e0   :  { %v6404_v31 = vadd.f32 %v6403_v50, %v6402_v16  ;;  %v5769_v6 = vmul.bf16 1065369472, %v6781_v29 }
 0x3e2   :  { %v9556_v17 = vadd.f32 %v6404_v31, %v9484_v41  ;;  %v5795_v49 = vunpack.c.h.bf16 %v5769_v6  ;;  %v5794_v51 = vunpack.c.l.bf16 %v5769_v6 }
 0x3e4   :  { %v5688_v58 = vpack.c.bf16 %v9556_v17, %v9553_v4  ;;  %v5820_v52 = vmul.f32 %v5795_v49, %v9522_v42  ;;  %v5819_v28 = vmul.f32 %v5794_v51, %v9519_v11 }
 0x3e6   :  { %v6321_v0 = vmul.bf16 3216621497, %v5688_v58  ;;  %v5839_v9 = vpack.c.bf16 %v5820_v52, %v5819_v28 }
 0x3e7   :  { %v6405_v45 = vpop.f32.mrf.mxu0 }
 0x3e8   :  { %6786 = vpow.bf16 %v6321_v0  ;;  %6487 = vmatmul.mubr.bf16.gmra.mxu1 %v5839_v9 }
 0x3e9   :  { %v6406_v47 = vpop.f32.mrf.mxu0  ;;  %6490 = vmatprep.mubr.msk.bf16.mxu1 %vm6841_vm1, %v6840_v60 }
 0x3ea   :  { %v6783_v8 = vpop.eup %6782  ;;  %v6407_v35 = vadd.f32 %v6406_v47, %v6405_v45 }
 0x3eb   :  { %v6408_v23 = vpop.f32.mrf.mxu0  ;;  %v5752_v19 = vadd.bf16 1065369472, %v6783_v8 }
 0x3ec   :  { %v9567_v56 = vadd.f32 %v6407_v35, %v9484_v41 }
 0x3ed   :  { %v6409_v39 = vpop.f32.mrf.mxu0  ;;  %6788 = vrcp.bf16 %v5752_v19  ;;  %v6785_v43 = vpop.eup %6784 }
 0x3ee   :  { %v6410_v18 = vadd.f32 %v6409_v39, %v6408_v23  ;;  %v5771_v11 = vmul.bf16 1065369472, %v6785_v43 }
 0x3f0   :  { %v9570_v42 = vadd.f32 %v6410_v18, %v9484_v41  ;;  %v5797_v7 = vunpack.c.h.bf16 %v5771_v11  ;;  %v5796_v20 = vunpack.c.l.bf16 %v5771_v11 }
 0x3f2   :  { %v5689_v15 = vpack.c.bf16 %v9570_v42, %v9567_v56  ;;  %v5822_v22 = vmul.f32 %v5797_v7, %v9534_v38  ;;  %v5821_v36 = vmul.f32 %v5796_v20, %v9531_v30 }
 0x3f4   :  { %v6411_v59 = vpop.f32.mrf.mxu0  ;;  %v6322_v27 = vmul.bf16 3216621497, %v5689_v15  ;;  %v5840_v63 = vpack.c.bf16 %v5822_v22, %v5821_v36 }
 0x3f6   :  { %v6412_v44 = vpop.f32.mrf.mxu0  ;;  %6790 = vpow.bf16 %v6322_v27  ;;  %v6787_v61 = vpop.eup %6786  ;;  %6491 = vmatmul.mubr.bf16.gmra.mxu1 %v5840_v63 }
 0x3f7   :  { %v5753_v62 = vadd.bf16 1065369472, %v6787_v61  ;;  %v6413_v14 = vadd.f32 %v6412_v44, %v6411_v59  ;;  %6494 = vmatprep.mubr.msk.bf16.mxu1 %vm6841_vm1, %v6840_v60 }
 0x3f8   :  { %v6414_v46 = vpop.f32.mrf.mxu0 }
 0x3f9   :  { %6792 = vrcp.bf16 %v5753_v62  ;;  %v9579_v53 = vadd.f32 %v6413_v14, %v9484_v41 }
 0x3fa   :  { %v6415_v48 = vpop.f32.mrf.mxu0 }
 0x3fb   :  { %v6416_v32 = vadd.f32 %v6415_v48, %v6414_v46  ;;  %v6789_v40 = vpop.eup %6788 }
 0x3fc   :  { %v5773_v30 = vmul.bf16 1065369472, %v6789_v40 }
 0x3fd   :  { %v9582_v38 = vadd.f32 %v6416_v32, %v9484_v41 }
 0x3fe   :  { %v5799_v2 = vunpack.c.h.bf16 %v5773_v30  ;;  %v5798_v3 = vunpack.c.l.bf16 %v5773_v30 }
 0x3ff   :  { %v5690_v25 = vpack.c.bf16 %v9582_v38, %v9579_v53 }
 0x400   :  { %v6417_v13 = vpop.f32.mrf.mxu0  ;;  %v5824_v21 = vmul.f32 %v5799_v2, %v9546_v33  ;;  %v5823_v24 = vmul.f32 %v5798_v3, %v9543_v54 }
 0x401   :  { %v6323_v26 = vmul.bf16 3216621497, %v5690_v25 }
 0x402   :  { %v6418_v57 = vpop.f32.mrf.mxu0  ;;  %v5841_v1 = vpack.c.bf16 %v5824_v21, %v5823_v24 }
 0x403   :  { %6794 = vpow.bf16 %v6323_v26  ;;  %v6419_v5 = vadd.f32 %v6418_v57, %v6417_v13  ;;  %v9610_v26 = vld [vmem:[%s9645_s5] ss:$0 sm:$0xff]  ;;  %s6842_s5 = smov [#allocation2]  }
 0x404   :  { %v6420_v37 = vpop.f32.mrf.mxu0  ;;  %v6791_v16 = vpop.eup %6790  ;;  %6495 = vmatmul.mubr.bf16.gmra.mxu1 %v5841_v1  ;;  %s6084_s28 = sshll.u32 %s6842_s5, 4  ;;  %s6085_s28 = int_to_ptr.vmem [resolvable:$true] %s6084_s28 }
 0x405   :  { %v5754_v34 = vadd.bf16 1065369472, %v6791_v16  ;;  %v5667_v12 = vadd.f32 %v6419_v5, %v9484_v41  ;;  %6498 = vmatprep.mubr.msk.bf16.mxu1 %vm6841_vm1, %v6840_v60  ;;  %s6811_s1 = scalar_lea.vmem %s6085_s28, 3200  ;;  %p6816_p1 = scmp.lt.s32.totalorder %s6085_s28, %s6085_s28 }
 0x406   :  { %v6421_v10 = vpop.f32.mrf.mxu0  ;;  %p6812_p0 = scmp.ne.s32.totalorder %s6085_s28, %s6811_s1  ;;  %p6817_p2 = scmp.lt.s32.totalorder %s6811_s1, %s6811_s1 }
 0x407   :  { %v6422_v50 = vadd.f32 %v6421_v10, %v6420_v37  ;;  %6796 = vrcp.bf16 %v5754_v34  ;;  %v6793_v33 = vpop.eup %6792 }
 0x408   :  { %v6423_v55 = vpop.f32.mrf.mxu0  ;;  %v5775_v6 = vmul.bf16 1065369472, %v6793_v33  ;;  %p6818_p3 = por %p6817_p2, %p6816_p1 }
 0x409   :  { %v5670_v31 = vadd.f32 %v6422_v50, %v9484_v41 }
 0x40a   :  { %v6424_v29 = vpop.f32.mrf.mxu0  ;;  %v5801_v0 = vunpack.c.h.bf16 %v5775_v6  ;;  %v5800_v52 = vunpack.c.l.bf16 %v5775_v6  ;;  %p6819_p4 = pnand %p6818_p3, %p6812_p0 }
 0x40b   :  { %v5691_v54 = vpack.c.bf16 %v5670_v31, %v5667_v12  ;;  %v6425_v58 = vadd.f32 %v6424_v29, %v6423_v55 }
 0x40c   :  { %v6426_v49 = vpop.f32.mrf.mxu0  ;;  %v5826_v28 = vmul.f32 %v5801_v0, %v9556_v17  ;;  %v5825_v9 = vmul.f32 %v5800_v52, %v9553_v4 }
 0x40d   :  { %v6324_v45 = vmul.bf16 3216621497, %v5691_v54  ;;  %v5675_v51 = vadd.f32 %v6425_v58, %v9484_v41 }
 0x40e   :  { %v6427_v47 = vpop.f32.mrf.mxu0  ;;  %v5842_v35 = vpack.c.bf16 %v5826_v28, %v5825_v9 }
 0x40f   :  { %6798 = vpow.bf16 %v6324_v45  ;;  %v5692_v23 = vpack.c.bf16 %v5675_v51, %v5675_v51 }
 0x410   :  { %6499 = vmatmul.mubr.bf16.gmra.mxu1 %v5842_v35 }
 0x411   :  { %v6325_v8 = vmul.bf16 3216621497, %v5692_v23  ;;  %v6795_v19 = vpop.eup %6794  ;;  %6502 = vmatprep.mubr.msk.bf16.mxu1 %vm6841_vm1, %v6840_v60 }
 0x412   :  { %v5755_v39 = vadd.bf16 1065369472, %v6795_v19 }
 0x413   :  { %6800 = vpow.bf16 %v6325_v8 }
 0x414   :  { %6802 = vrcp.bf16 %v5755_v39 }
 0x415   :  { %v6797_v18 = vpop.eup %6796 }
 0x416   :  { %v5777_v41 = vmul.bf16 1065369472, %v6797_v18 }
 0x418   :  { %v5803_v43 = vunpack.c.h.bf16 %v5777_v41  ;;  %v5802_v11 = vunpack.c.l.bf16 %v5777_v41 }
 0x41a   :  { %v5828_v17 = vmul.f32 %v5803_v43, %v9570_v42  ;;  %v5827_v15 = vmul.f32 %v5802_v11, %v9567_v56 }
 0x41c   :  { %v5843_v7 = vpack.c.bf16 %v5828_v17, %v5827_v15 }
 0x41d   :  { %v6799_v59 = vpop.eup %6798 }
 0x41e   :  { %v5756_v4 = vadd.bf16 1065369472, %v6799_v59  ;;  %6503 = vmatmul.mubr.bf16.gmra.mxu1 %v5843_v7 }
 0x41f   :  { %6506 = vmatprep.mubr.msk.bf16.mxu1 %vm6841_vm1, %v6840_v60 }
 0x420   :  { %6804 = vrcp.bf16 %v5756_v4 }
 0x421   :  { %v6801_v27 = vpop.eup %6800 }
 0x422   :  { %v5757_v20 = vadd.bf16 1065369472, %v6801_v27  ;;  %v6803_v44 = vpop.eup %6802 }
 0x423   :  { %v5779_v22 = vmul.bf16 1065369472, %v6803_v44 }
 0x424   :  { %6806 = vrcp.bf16 %v5757_v20 }
 0x425   :  { %v5805_v36 = vunpack.c.h.bf16 %v5779_v22  ;;  %v5804_v61 = vunpack.c.l.bf16 %v5779_v22 }
 0x427   :  { %v5830_v46 = vmul.f32 %v5805_v36, %v9582_v38  ;;  %v5829_v42 = vmul.f32 %v5804_v61, %v9579_v53 }
 0x429   :  { %v5844_v56 = vpack.c.bf16 %v5830_v46, %v5829_v42 }
 0x42b   :  { %6507 = vmatmul.mubr.bf16.gmra.mxu1 %v5844_v56 }
 0x42c   :  { %6510 = vmatprep.mubr.msk.bf16.mxu1 %vm6841_vm1, %v6840_v60 }
 0x42e   :  { %v6805_v62 = vpop.eup %6804 }
 0x42f   :  { %v5781_v14 = vmul.bf16 1065369472, %v6805_v62 }
 0x431   :  { %v5807_v63 = vunpack.c.h.bf16 %v5781_v14  ;;  %v5806_v48 = vunpack.c.l.bf16 %v5781_v14 }
 0x432   :  { %v6807_v32 = vpop.eup %6806 }
 0x433   :  { %v5832_v40 = vmul.f32 %v5807_v63, %v5670_v31  ;;  %v5831_v30 = vmul.f32 %v5806_v48, %v5667_v12  ;;  %v5783_v25 = vmul.bf16 1065369472, %v6807_v32 }
 0x435   :  { %v5845_v13 = vpack.c.bf16 %v5832_v40, %v5831_v30  ;;  %v5808_v2 = vunpack.c.l.bf16 %v5783_v25 }
 0x437   :  { %6511 = vmatmul.mubr.bf16.gmra.mxu1 %v5845_v13  ;;  %v5833_v53 = vmul.f32 %v5808_v2, %v5675_v51 }
 0x438   :  { %6514 = vmatprep.mubr.msk.bf16.mxu1 %vm6841_vm1, %v6840_v60 }
 0x439   :  { %v5846_v38 = vpack.c.bf16 %v5833_v53, %v5833_v53 }
 0x43f   :  { %6515 = vmatmul.mubr.bf16.gmra.mxu1 %v5846_v38 }
 0x469   :  { %v5952_v57 = vpop.f32.mrf.mxu1 }
 0x46a   :  { %v5953_v3 = vadd.f32 %v9610_v26, %v5952_v57 }
 0x46b   :  { %v6468_v21 = vpop.f32.mrf.mxu1 }
 0x46c   :  { %6054 = vst [vmem:[#allocation2] sm:$0xff] %v5953_v3 }
 0x46d   :  { %v5955_v37 = vpop.f32.mrf.mxu1 }
 0x46e   :  { %v5956_v24 = vadd.f32 %v9610_v26, %v5955_v37 }
 0x46f   :  { %v6469_v5 = vpop.f32.mrf.mxu1 }
 0x470   :  { %6055 = vst [vmem:[#allocation2 + $0x8] sm:$0xff] %v5956_v24 }
 0x474   :  { %v5960_v16 = vpop.f32.mrf.mxu1 }
 0x475   :  { %v5961_v60 = vadd.f32 %v9610_v26, %v5960_v16 }
 0x476   :  { %v6472_v10 = vpop.f32.mrf.mxu1 }
 0x477   :  { %6056 = vst [vmem:[#allocation2 + $0x10] sm:$0xff] %v5961_v60 }
 0x478   :  { %v5963_v1 = vpop.f32.mrf.mxu1 }
 0x479   :  { %v5964_v34 = vadd.f32 %v9610_v26, %v5963_v1 }
 0x47a   :  { %v6473_v50 = vpop.f32.mrf.mxu1 }
 0x47b   :  { %6057 = vst [vmem:[#allocation2 + $0x18] sm:$0xff] %v5964_v34 }
 0x481   :  { %v5968_v55 = vpop.f32.mrf.mxu1 }
 0x482   :  { %v5969_v12 = vadd.f32 %v9610_v26, %v5968_v55 }
 0x483   :  { %v6476_v31 = vpop.f32.mrf.mxu1 }
 0x484   :  { %6058 = vst [vmem:[#allocation2 + $0x20] sm:$0xff] %v5969_v12 }
 0x485   :  { %v5971_v33 = vpop.f32.mrf.mxu1 }
 0x486   :  { %v5972_v29 = vadd.f32 %v9610_v26, %v5971_v33 }
 0x487   :  { %v6477_v6 = vpop.f32.mrf.mxu1 }
 0x488   :  { %6059 = vst [vmem:[#allocation2 + $0x28] sm:$0xff] %v5972_v29 }
 0x48f   :  { %v5976_v54 = vpop.f32.mrf.mxu1 }
 0x490   :  { %v5977_v58 = vadd.f32 %v9610_v26, %v5976_v54 }
 0x491   :  { %v6480_v49 = vpop.f32.mrf.mxu1 }
 0x492   :  { %6060 = vst [vmem:[#allocation2 + $0x30] sm:$0xff] %v5977_v58 }
 0x493   :  { %v5979_v0 = vpop.f32.mrf.mxu1 }
 0x494   :  { %v5980_v45 = vadd.f32 %v9610_v26, %v5979_v0 }
 0x495   :  { %v6481_v51 = vpop.f32.mrf.mxu1 }
 0x496   :  { %6061 = vst [vmem:[#allocation2 + $0x38] sm:$0xff] %v5980_v45 }
 0x49c   :  { %v5984_v52 = vpop.f32.mrf.mxu1 }
 0x49d   :  { %v5985_v47 = vadd.f32 %v9610_v26, %v5984_v52 }
 0x49e   :  { %v6484_v28 = vpop.f32.mrf.mxu1 }
 0x49f   :  { %6062 = vst [vmem:[#allocation2 + $0x40] sm:$0xff] %v5985_v47 }
 0x4a0   :  { %v5987_v23 = vpop.f32.mrf.mxu1 }
 0x4a1   :  { %v5988_v9 = vadd.f32 %v9610_v26, %v5987_v23 }
 0x4a2   :  { %v6485_v8 = vpop.f32.mrf.mxu1 }
 0x4a3   :  { %6063 = vst [vmem:[#allocation2 + $0x48] sm:$0xff] %v5988_v9 }
 0x4a8   :  { %v5992_v35 = vpop.f32.mrf.mxu1 }
 0x4a9   :  { %v5993_v19 = vadd.f32 %v9610_v26, %v5992_v35 }
 0x4aa   :  { %v6488_v39 = vpop.f32.mrf.mxu1 }
 0x4ab   :  { %6064 = vst [vmem:[#allocation2 + $0x50] sm:$0xff] %v5993_v19 }
 0x4ac   :  { %v5995_v18 = vpop.f32.mrf.mxu1 }
 0x4ad   :  { %v5996_v41 = vadd.f32 %v9610_v26, %v5995_v18 }
 0x4ae   :  { %v6489_v43 = vpop.f32.mrf.mxu1 }
 0x4af   :  { %6065 = vst [vmem:[#allocation2 + $0x58] sm:$0xff] %v5996_v41 }
 0x4b6   :  { %v6000_v11 = vpop.f32.mrf.mxu1 }
 0x4b7   :  { %v6001_v17 = vadd.f32 %v9610_v26, %v6000_v11 }
 0x4b8   :  { %v6492_v15 = vpop.f32.mrf.mxu1 }
 0x4b9   :  { %6066 = vst [vmem:[#allocation2 + $0x60] sm:$0xff] %v6001_v17 }
 0x4ba   :  { %v6003_v59 = vpop.f32.mrf.mxu1 }
 0x4bb   :  { %v6004_v4 = vadd.f32 %v9610_v26, %v6003_v59 }
 0x4bc   :  { %v6493_v7 = vpop.f32.mrf.mxu1 }
 0x4bd   :  { %6067 = vst [vmem:[#allocation2 + $0x68] sm:$0xff] %v6004_v4 }
 0x4c4   :  { %v6008_v27 = vpop.f32.mrf.mxu1 }
 0x4c5   :  { %v6009_v20 = vadd.f32 %v9610_v26, %v6008_v27 }
 0x4c6   :  { %v6496_v44 = vpop.f32.mrf.mxu1 }
 0x4c7   :  { %6068 = vst [vmem:[#allocation2 + $0x70] sm:$0xff] %v6009_v20 }
 0x4c8   :  { %v6011_v22 = vpop.f32.mrf.mxu1 }
 0x4c9   :  { %v6012_v36 = vadd.f32 %v9610_v26, %v6011_v22 }
 0x4ca   :  { %v6497_v61 = vpop.f32.mrf.mxu1 }
 0x4cb   :  { %6069 = vst [vmem:[#allocation2 + $0x78] sm:$0xff] %v6012_v36 }
 0x4d0   :  { %v6016_v46 = vpop.f32.mrf.mxu1 }
 0x4d1   :  { %v6017_v42 = vadd.f32 %v9610_v26, %v6016_v46 }
 0x4d2   :  { %v6500_v56 = vpop.f32.mrf.mxu1 }
 0x4d3   :  { %6070 = vst [vmem:[#allocation2 + $0x80] sm:$0xff] %v6017_v42 }
 0x4d4   :  { %v6019_v62 = vpop.f32.mrf.mxu1 }
 0x4d5   :  { %v6020_v14 = vadd.f32 %v9610_v26, %v6019_v62 }
 0x4d6   :  { %v6501_v63 = vpop.f32.mrf.mxu1 }
 0x4d7   :  { %6071 = vst [vmem:[#allocation2 + $0x88] sm:$0xff] %v6020_v14 }
 0x4de   :  { %v6024_v48 = vpop.f32.mrf.mxu1 }
 0x4df   :  { %v6025_v32 = vadd.f32 %v9610_v26, %v6024_v48 }
 0x4e0   :  { %v6504_v40 = vpop.f32.mrf.mxu1 }
 0x4e1   :  { %6072 = vst [vmem:[#allocation2 + $0x90] sm:$0xff] %v6025_v32 }
 0x4e2   :  { %v6027_v30 = vpop.f32.mrf.mxu1 }
 0x4e3   :  { %v6028_v25 = vadd.f32 %v9610_v26, %v6027_v30 }
 0x4e4   :  { %v6505_v13 = vpop.f32.mrf.mxu1 }
 0x4e5   :  { %6073 = vst [vmem:[#allocation2 + $0x98] sm:$0xff] %v6028_v25 }
 0x4eb   :  { %v6032_v2 = vpop.f32.mrf.mxu1 }
 0x4ec   :  { %v6033_v53 = vadd.f32 %v9610_v26, %v6032_v2 }
 0x4ed   :  { %v6508_v38 = vpop.f32.mrf.mxu1 }
 0x4ee   :  { %6074 = vst [vmem:[#allocation2 + $0xa0] sm:$0xff] %v6033_v53 }
 0x4ef   :  { %v6035_v57 = vpop.f32.mrf.mxu1 }
 0x4f0   :  { %v6036_v3 = vadd.f32 %v9610_v26, %v6035_v57 }
 0x4f1   :  { %v6509_v21 = vpop.f32.mrf.mxu1 }
 0x4f2   :  { %6075 = vst [vmem:[#allocation2 + $0xa8] sm:$0xff] %v6036_v3 }
 0x4f7   :  { %v6040_v37 = vpop.f32.mrf.mxu1 }
 0x4f8   :  { %v6041_v24 = vadd.f32 %v9610_v26, %v6040_v37 }
 0x4f9   :  { %v6512_v5 = vpop.f32.mrf.mxu1 }
 0x4fa   :  { %6076 = vst [vmem:[#allocation2 + $0xb0] sm:$0xff] %v6041_v24 }
 0x4fb   :  { %v6043_v16 = vpop.f32.mrf.mxu1 }
 0x4fc   :  { %v6044_v60 = vadd.f32 %v9610_v26, %v6043_v16 }
 0x4fd   :  { %v6513_v10 = vpop.f32.mrf.mxu1 }
 0x4fe   :  { %6077 = vst [vmem:[#allocation2 + $0xb8] sm:$0xff] %v6044_v60 }
 0x4ff   :  { %v6048_v1 = vpop.f32.mrf.mxu1 }
 0x500   :  { %v6049_v34 = vadd.f32 %v9610_v26, %v6048_v1 }
 0x501   :  { %v6516_v50 = vpop.f32.mrf.mxu1 }
 0x502   :  { %6078 = vst [vmem:[#allocation2 + $0xc0] sm:$0xff] %v6049_v34 }
 0x503   :  { %v6051_v55 = vpop.f32.mrf.mxu1 }
 0x504   :  { %6822 = shalt.err (!%p6819_p4)
}
 0x505   :  { %s6843_s29 = smov 128   ;;  %s6844_s30 = smov 8   ;;  %v6517_v12 = vpop.f32.mrf.mxu1 }
 0x506   :  { %6090 = dma.vmem_to_hbm [thread:$0]  %s6085_s28, 3200, %s9646_s6, [#allocation3], %s6843_s29, %s6843_s29, %s6844_s30  }
 0x507   :  { %6831 = dma.done.wait [#allocation3], 3200  }
 0x508   :  { %6832 = vsyncadd [#allocation3], 4294964096 }
 0x509   :  { %6094 = vsyncpa [#allocation3], 1 }

</bundles_post_ra>
